<compile_context>
chip_gen: v7x
topology: tpu7x:2x2x1
jax: 0.10.0
libtpu: 0.0.40
codegen_flags: <defaults>
</compile_context>

<pallas_src>
import jax
import jax.numpy as jnp
from jax.experimental import pallas as pl
from jax.experimental.pallas import tpu as pltpu


def _ceil_to(x, m):
    return -(-x // m) * m


def _vmem_limit_bytes(L0, L1, D, ks):
    """Rough, generous scoped-VMEM estimate (padded tiles, double buffering)."""
    p = ks // 2
    hp, wp = L0 + 2 * p, L1 + 2 * p
    c = 2 * D
    scratch = hp * _ceil_to(wp, 16) * _ceil_to(c, 128) * 2            # bf16 image
    patches = _ceil_to(L0 * L1, 8) * _ceil_to(ks * ks * c, 128) * 2   # im2col temp
    acc = _ceil_to(L0 * L1, 8) * _ceil_to(max(D, 1), 128) * 4         # f32 result
    blocks = 2 * (2 * _ceil_to(L0, 8) * _ceil_to(D, 128) * 4          # z0/z1 blocks
                  + _ceil_to(L0, 8) * _ceil_to(L1, 128) * 4)          # output block
    weights = 2 * sum(_ceil_to(ks * ks * ci, 16) * 128 * 2 + 8 * 128 * 4
                      for ci in (c, D, max(D // 2, 1), max(D // 4, 1)))
    est = scratch + 3 * (patches + acc) + blocks + weights
    return int(min(max(2 * est, 8 << 20), 112 << 20))


def contact_cnn_forward(z0, z1, params, ks):
    B, L0, D = z0.shape
    _, L1, _ = z1.shape
    p = ks // 2
    H, W = L0, L1
    Hp, Wp = H + 2 * p, W + 2 * p
    C = 2 * D

    # Flatten conv weights (HWIO) to (ks*ks*Cin, Cout) — row order (dh, dw, c)
    # matches the im2col concatenation below — and cast to bf16 for the MXU.
    # Biases stay f32 (accumulation / bias add / activations are f32).
    flat = []
    for w, b in params:
        cin, cout = w.shape[2], w.shape[3]
        flat.append((w.reshape(ks * ks * cin, cout).astype(jnp.bfloat16),
                     b.astype(jnp.float32)))
    (w1, b1), (w2, b2), (w3, b3), (w4, b4) = flat

    def kernel(z0_ref, z1_ref,
               w1_ref, b1_ref, w2_ref, b2_ref,
               w3_ref, b3_ref, w4_ref, b4_ref,
               out_ref, xp_ref):
        # Zero only the p-wide halo border of the shared scratch; the interior
        # is fully overwritten below (and per layer), so no full memset.
        if p > 0:
            row0 = jnp.zeros((p, Wp, C), jnp.bfloat16)
            xp_ref[0:p, :, :] = row0
            xp_ref[Hp - p:Hp, :, :] = row0
            col0 = jnp.zeros((H, p, C), jnp.bfloat16)
            xp_ref[p:p + H, 0:p, :] = col0
            xp_ref[p:p + H, Wp - p:Wp, :] = col0

        # Pairwise features, written straight into the scratch interior:
        # channels [0:D] = |z0 - z1|, channels [D:2D] = z0 * z1 (torch cat
        # order).  Computed in f32, stored bf16.
        z0v = z0_ref[0]                                   # (L0, D) f32
        z1v = z1_ref[0]                                   # (L1, D) f32
        z0e = z0v[:, None, :]
        z1e = z1v[None, :, :]
        xp_ref[p:p + H, p:p + W, 0:D] = jnp.abs(z0e - z1e).astype(jnp.bfloat16)
        xp_ref[p:p + H, p:p + W, D:2 * D] = (z0e * z1e).astype(jnp.bfloat16)

        def conv_same(wf_ref, b_ref):
            """'same' conv as ONE im2col matmul:
            (H*W, ks*ks*Cin) @ (ks*ks*Cin, Cout) with f32 accumulation."""
            kk_cin, cout = wf_ref.shape
            cin = kk_cin // (ks * ks)
            cols = []
            for dh in range(ks):
                for dw in range(ks):
                    # Only the cin channels this layer reads are gathered.
                    cols.append(xp_ref[dh:dh + H, dw:dw + W, 0:cin])
            patches = jnp.concatenate(cols, axis=-1)       # (H, W, ks*ks*cin) bf16
            acc = jnp.dot(patches.reshape(H * W, kk_cin), wf_ref[...],
                          preferred_element_type=jnp.float32)
            return acc.reshape(H, W, cout) + b_ref[...]    # (H, W, cout) f32

        # conv1..conv3 + folded BN + ReLU; activations rewritten in bf16 into
        # the reused scratch interior (next layer reads channels [0:cout]).
        for wf_ref, b_ref in ((w1_ref, b1_ref), (w2_ref, b2_ref), (w3_ref, b3_ref)):
            y = jnp.maximum(conv_same(wf_ref, b_ref), 0.0)
            cout = wf_ref.shape[1]
            xp_ref[p:p + H, p:p + W, 0:cout] = y.astype(jnp.bfloat16)

        # conv4 + folded BN + sigmoid; lane-dense (L0, L1) output store,
        # stable sigmoid via EUP tanh (free slot vs VALU).
        y4 = conv_same(w4_ref, b4_ref)[:, :, 0]            # (L0, L1) f32
        out_ref[0] = 0.5 * (jnp.tanh(0.5 * y4) + 1.0)

    def full_spec(a):
        # Whole-array block with a constant index map (no per-step re-fetch).
        return pl.BlockSpec(a.shape, lambda b, _nd=a.ndim: (0,) * _nd)

    out = pl.pallas_call(
        kernel,
        out_shape=jax.ShapeDtypeStruct((B, L0, L1), jnp.float32),
        grid=(B,),
        in_specs=[
            pl.BlockSpec((1, L0, D), lambda b: (b, 0, 0)),
            pl.BlockSpec((1, L1, D), lambda b: (b, 0, 0)),
            full_spec(w1), full_spec(b1),
            full_spec(w2), full_spec(b2),
            full_spec(w3), full_spec(b3),
            full_spec(w4), full_spec(b4),
        ],
        out_specs=pl.BlockSpec((1, L0, L1), lambda b: (b, 0, 0)),
        scratch_shapes=[pltpu.VMEM((Hp, Wp, C), jnp.bfloat16)],
        compiler_params=pltpu.CompilerParams(
            dimension_semantics=("parallel",),
            vmem_limit_bytes=_vmem_limit_bytes(L0, L1, D, ks)),
    )(z0, z1, w1, b1, w2, b2, w3, b3, w4, b4)

    # (B, L0, L1) -> NCHW (B, 1, L0, L1); free reshape since C == 1.
    return out.reshape(B, 1, L0, L1)


def init_params(key, ks, projection_dim):
    """Deterministic synthetic params. Conv weights in HWIO; eval-mode
    BatchNorm (gamma/beta/running stats) folded into the conv weights/bias."""
    D = projection_dim
    layer_dims = [(2 * D, D), (D, D // 2), (D // 2, D // 4), (D // 4, 1)]
    eps = 1e-5
    params = []
    for i, (cin, cout) in enumerate(layer_dims):
        k_w, k_b, k_g, k_beta, k_m, k_v = jax.random.split(
            jax.random.fold_in(key, i), 6)
        w = 0.1 * jax.random.normal(k_w, (ks, ks, cin, cout), jnp.float32)
        b = 0.1 * jax.random.normal(k_b, (cout,), jnp.float32)
        gamma = 1.0 + 0.1 * jax.random.normal(k_g, (cout,), jnp.float32)
        beta = 0.1 * jax.random.normal(k_beta, (cout,), jnp.float32)
        r_mean = 0.1 * jax.random.normal(k_m, (cout,), jnp.float32)
        r_var = 0.5 + jnp.abs(jax.random.normal(k_v, (cout,), jnp.float32))
        scale = gamma / jnp.sqrt(r_var + eps)
        w_f = w * scale                       # fold BN scale (per out-channel)
        b_f = (b - r_mean) * scale + beta     # fold BN shift
        params.append((w_f, b_f.reshape(1, 1, cout)))
    return params


def reference_forward(z0, z1, params):
    """Pure-JAX f32 reference of the same forward (NHWC convs)."""
    zd = jnp.abs(z0[:, :, None, :] - z1[:, None, :, :])    # (B, L0, L1, D)
    zm = z0[:, :, None, :] * z1[:, None, :, :]
    x = jnp.concatenate([zd, zm], axis=-1)
    acts = [jax.nn.relu, jax.nn.relu, jax.nn.relu, jax.nn.sigmoid]
    for (w, b), act in zip(params, acts):
        x = jax.lax.conv_general_dilated(
            x, w, window_strides=(1, 1), padding="SAME",
            dimension_numbers=("NHWC", "HWIO", "NHWC"))
        x = act(x + b)
    return jnp.transpose(x, (0, 3, 1, 2))


if __name__ == "__main__":
    ks, projection_dim = 3, 16
    B, L0, L1 = 2, 8, 8

    key = jax.random.PRNGKey(0)
    k0, k1, kp = jax.random.split(key, 3)
    z0 = jax.random.normal(k0, (B, L0, projection_dim), jnp.float32)
    z1 = jax.random.normal(k1, (B, L1, projection_dim), jnp.float32)
    params = init_params(kp, ks, projection_dim)

    out = contact_cnn_forward(z0, z1, params, ks)
    out = jax.block_until_ready(out)
    assert out.shape == (B, 1, L0, L1), out.shape

    ref = reference_forward(z0, z1, params)
    # Tolerance loosened vs a pure-f32 path: kernel uses bf16 MXU inputs and
    # bf16 inter-layer activations with f32 accumulation.
    if not jnp.allclose(out, ref, atol=3e-2, rtol=3e-2):
        raise AssertionError("Pallas output does not match JAX reference")
    print("KERNEL_OK")
</pallas_src>

<mosaic_0001>
module attributes {stable_mosaic.version = 11 : i64} {
  func.func @kernel(%arg0: i32, %arg1: memref<1x8x16xf32, #tpu.memory_space<vmem>>, %arg2: memref<1x8x16xf32, #tpu.memory_space<vmem>>, %arg3: memref<288x16xbf16, #tpu.memory_space<vmem>>, %arg4: memref<1x1x16xf32, #tpu.memory_space<vmem>>, %arg5: memref<144x8xbf16, #tpu.memory_space<vmem>>, %arg6: memref<1x1x8xf32, #tpu.memory_space<vmem>>, %arg7: memref<72x4xbf16, #tpu.memory_space<vmem>>, %arg8: memref<1x1x4xf32, #tpu.memory_space<vmem>>, %arg9: memref<36x1xbf16, #tpu.memory_space<vmem>>, %arg10: memref<1x1x1xf32, #tpu.memory_space<vmem>>, %arg11: memref<1x8x8xf32, #tpu.memory_space<vmem>>, %arg12: memref<10x10x32xbf16, #tpu.memory_space<vmem>>) attributes {dimension_semantics = [#tpu.dimension_semantics<parallel>], iteration_bounds = array<i64: 2>, scalar_prefetch = 0 : i64, scratch_operands = 1 : i64, tpu.core_type = #tpu.core_type<tc>, window_params = [{transform_indices = @transform_0, window_bounds = array<i64: 1, 8, 16>}, {transform_indices = @transform_1, window_bounds = array<i64: 1, 8, 16>}, {pipeline_mode = #tpu.pipeline_mode<synchronous>, transform_indices = @transform_2, window_bounds = array<i64: 288, 16>}, {pipeline_mode = #tpu.pipeline_mode<synchronous>, transform_indices = @transform_3, window_bounds = array<i64: 1, 1, 16>}, {pipeline_mode = #tpu.pipeline_mode<synchronous>, transform_indices = @transform_4, window_bounds = array<i64: 144, 8>}, {pipeline_mode = #tpu.pipeline_mode<synchronous>, transform_indices = @transform_5, window_bounds = array<i64: 1, 1, 8>}, {pipeline_mode = #tpu.pipeline_mode<synchronous>, transform_indices = @transform_6, window_bounds = array<i64: 72, 4>}, {pipeline_mode = #tpu.pipeline_mode<synchronous>, transform_indices = @transform_7, window_bounds = array<i64: 1, 1, 4>}, {pipeline_mode = #tpu.pipeline_mode<synchronous>, transform_indices = @transform_8, window_bounds = array<i64: 36, 1>}, {pipeline_mode = #tpu.pipeline_mode<synchronous>, transform_indices = @transform_9, window_bounds = array<i64: 1, 1, 1>}, {transform_indices = @transform_10, window_bounds = array<i64: 1, 8, 8>}]} {
    %cst = arith.constant 0.000000e+00 : bf16
    %0 = vector.broadcast %cst : bf16 to vector<1x10x32xbf16>
    %c0 = arith.constant 0 : index
    %c0_0 = arith.constant 0 : index
    %c0_1 = arith.constant 0 : index
    %1 = vector.load %arg12[%c0, %c0_0, %c0_1] : memref<10x10x32xbf16, #tpu.memory_space<vmem>>, vector<1x10x32xbf16>
    tpu.vector_store %arg12[%c0, %c0_0, %c0_1], %0 {strides = array<i32>} : memref<10x10x32xbf16, #tpu.memory_space<vmem>>, vector<1x10x32xbf16>,
    %c9 = arith.constant 9 : index
    %c0_2 = arith.constant 0 : index
    %c0_3 = arith.constant 0 : index
    %2 = vector.load %arg12[%c9, %c0_2, %c0_3] : memref<10x10x32xbf16, #tpu.memory_space<vmem>>, vector<1x10x32xbf16>
    tpu.vector_store %arg12[%c9, %c0_2, %c0_3], %0 {strides = array<i32>} : memref<10x10x32xbf16, #tpu.memory_space<vmem>>, vector<1x10x32xbf16>,
    %cst_4 = arith.constant 0.000000e+00 : bf16
    %3 = vector.broadcast %cst_4 : bf16 to vector<8x1x32xbf16>
    %c1 = arith.constant 1 : index
    %c0_5 = arith.constant 0 : index
    %c0_6 = arith.constant 0 : index
    %4 = vector.load %arg12[%c1, %c0_5, %c0_6] : memref<10x10x32xbf16, #tpu.memory_space<vmem>>, vector<8x1x32xbf16>
    tpu.vector_store %arg12[%c1, %c0_5, %c0_6], %3 {strides = array<i32>} : memref<10x10x32xbf16, #tpu.memory_space<vmem>>, vector<8x1x32xbf16>,
    %c1_7 = arith.constant 1 : index
    %c9_8 = arith.constant 9 : index
    %c0_9 = arith.constant 0 : index
    %5 = vector.load %arg12[%c1_7, %c9_8, %c0_9] : memref<10x10x32xbf16, #tpu.memory_space<vmem>>, vector<8x1x32xbf16>
    tpu.vector_store %arg12[%c1_7, %c9_8, %c0_9], %3 {strides = array<i32>} : memref<10x10x32xbf16, #tpu.memory_space<vmem>>, vector<8x1x32xbf16>,
    %c0_10 = arith.constant 0 : index
    %c0_11 = arith.constant 0 : index
    %c0_12 = arith.constant 0 : index
    %6 = vector.load %arg1[%c0_10, %c0_11, %c0_12] : memref<1x8x16xf32, #tpu.memory_space<vmem>>, vector<1x8x16xf32>
    %7 = vector.shape_cast %6 : vector<1x8x16xf32> to vector<8x16xf32>
    %c0_13 = arith.constant 0 : index
    %c0_14 = arith.constant 0 : index
    %c0_15 = arith.constant 0 : index
    %8 = vector.load %arg2[%c0_13, %c0_14, %c0_15] : memref<1x8x16xf32, #tpu.memory_space<vmem>>, vector<1x8x16xf32>
    %9 = vector.shape_cast %8 : vector<1x8x16xf32> to vector<8x16xf32>
    %10 = vector.shape_cast %7 : vector<8x16xf32> to vector<8x1x16xf32>
    %11 = vector.shape_cast %9 : vector<8x16xf32> to vector<1x8x16xf32>
    %12 = vector.broadcast %10 : vector<8x1x16xf32> to vector<8x8x16xf32>
    %13 = vector.broadcast %11 : vector<1x8x16xf32> to vector<8x8x16xf32>
    %14 = arith.subf %12, %13 : vector<8x8x16xf32>
    %15 = math.absf %14 : vector<8x8x16xf32>
    %16 = arith.truncf %15 : vector<8x8x16xf32> to vector<8x8x16xbf16>
    %c1_16 = arith.constant 1 : index
    %c1_17 = arith.constant 1 : index
    %c0_18 = arith.constant 0 : index
    %17 = vector.load %arg12[%c1_16, %c1_17, %c0_18] : memref<10x10x32xbf16, #tpu.memory_space<vmem>>, vector<8x8x16xbf16>
    tpu.vector_store %arg12[%c1_16, %c1_17, %c0_18], %16 {strides = array<i32>} : memref<10x10x32xbf16, #tpu.memory_space<vmem>>, vector<8x8x16xbf16>,
    %18 = vector.broadcast %10 : vector<8x1x16xf32> to vector<8x8x16xf32>
    %19 = vector.broadcast %11 : vector<1x8x16xf32> to vector<8x8x16xf32>
    %20 = arith.mulf %18, %19 : vector<8x8x16xf32>
    %21 = arith.truncf %20 : vector<8x8x16xf32> to vector<8x8x16xbf16>
    %c1_19 = arith.constant 1 : index
    %c1_20 = arith.constant 1 : index
    %c16 = arith.constant 16 : index
    %22 = vector.load %arg12[%c1_19, %c1_20, %c16] : memref<10x10x32xbf16, #tpu.memory_space<vmem>>, vector<8x8x16xbf16>
    tpu.vector_store %arg12[%c1_19, %c1_20, %c16], %21 {strides = array<i32>} : memref<10x10x32xbf16, #tpu.memory_space<vmem>>, vector<8x8x16xbf16>,
    %c0_21 = arith.constant 0 : index
    %c0_22 = arith.constant 0 : index
    %c0_23 = arith.constant 0 : index
    %23 = vector.load %arg12[%c0_21, %c0_22, %c0_23] : memref<10x10x32xbf16, #tpu.memory_space<vmem>>, vector<8x8x32xbf16>
    %c0_24 = arith.constant 0 : index
    %c1_25 = arith.constant 1 : index
    %c0_26 = arith.constant 0 : index
    %24 = vector.load %arg12[%c0_24, %c1_25, %c0_26] : memref<10x10x32xbf16, #tpu.memory_space<vmem>>, vector<8x8x32xbf16>
    %c0_27 = arith.constant 0 : index
    %c2 = arith.constant 2 : index
    %c0_28 = arith.constant 0 : index
    %25 = vector.load %arg12[%c0_27, %c2, %c0_28] : memref<10x10x32xbf16, #tpu.memory_space<vmem>>, vector<8x8x32xbf16>
    %c1_29 = arith.constant 1 : index
    %c0_30 = arith.constant 0 : index
    %c0_31 = arith.constant 0 : index
    %26 = vector.load %arg12[%c1_29, %c0_30, %c0_31] : memref<10x10x32xbf16, #tpu.memory_space<vmem>>, vector<8x8x32xbf16>
    %c1_32 = arith.constant 1 : index
    %c1_33 = arith.constant 1 : index
    %c0_34 = arith.constant 0 : index
    %27 = vector.load %arg12[%c1_32, %c1_33, %c0_34] : memref<10x10x32xbf16, #tpu.memory_space<vmem>>, vector<8x8x32xbf16>
    %c1_35 = arith.constant 1 : index
    %c2_36 = arith.constant 2 : index
    %c0_37 = arith.constant 0 : index
    %28 = vector.load %arg12[%c1_35, %c2_36, %c0_37] : memref<10x10x32xbf16, #tpu.memory_space<vmem>>, vector<8x8x32xbf16>
    %c2_38 = arith.constant 2 : index
    %c0_39 = arith.constant 0 : index
    %c0_40 = arith.constant 0 : index
    %29 = vector.load %arg12[%c2_38, %c0_39, %c0_40] : memref<10x10x32xbf16, #tpu.memory_space<vmem>>, vector<8x8x32xbf16>
    %c2_41 = arith.constant 2 : index
    %c1_42 = arith.constant 1 : index
    %c0_43 = arith.constant 0 : index
    %30 = vector.load %arg12[%c2_41, %c1_42, %c0_43] : memref<10x10x32xbf16, #tpu.memory_space<vmem>>, vector<8x8x32xbf16>
    %c2_44 = arith.constant 2 : index
    %c2_45 = arith.constant 2 : index
    %c0_46 = arith.constant 0 : index
    %31 = vector.load %arg12[%c2_44, %c2_45, %c0_46] : memref<10x10x32xbf16, #tpu.memory_space<vmem>>, vector<8x8x32xbf16>
    %32 = tpu.concatenate %23, %24, %25, %26, %27, %28, %29, %30, %31 in 2 : vector<8x8x32xbf16>, vector<8x8x32xbf16>, vector<8x8x32xbf16>, vector<8x8x32xbf16>, vector<8x8x32xbf16>, vector<8x8x32xbf16>, vector<8x8x32xbf16>, vector<8x8x32xbf16>, vector<8x8x32xbf16> -> vector<8x8x288xbf16>
    %33 = vector.shape_cast %32 : vector<8x8x288xbf16> to vector<64x288xbf16>
    %c0_47 = arith.constant 0 : index
    %c0_48 = arith.constant 0 : index
    %34 = vector.load %arg3[%c0_47, %c0_48] : memref<288x16xbf16, #tpu.memory_space<vmem>>, vector<288x16xbf16>
    %cst_49 = arith.constant dense<0.000000e+00> : vector<64x16xf32>
    %35 = tpu.matmul %33, %34, %cst_49 {dimension_numbers = #tpu.dot_dimension_numbers<[1], [0], [0], [1], [0, 0, 1, 1], [], []>} : vector<64x288xbf16>, vector<288x16xbf16>, vector<64x16xf32> -> vector<64x16xf32>
    %36 = vector.shape_cast %35 : vector<64x16xf32> to vector<8x8x16xf32>
    %c0_50 = arith.constant 0 : index
    %c0_51 = arith.constant 0 : index
    %c0_52 = arith.constant 0 : index
    %37 = vector.load %arg4[%c0_50, %c0_51, %c0_52] : memref<1x1x16xf32, #tpu.memory_space<vmem>>, vector<1x1x16xf32>
    %38 = vector.broadcast %37 : vector<1x1x16xf32> to vector<8x8x16xf32>
    %39 = arith.addf %36, %38 : vector<8x8x16xf32>
    %cst_53 = arith.constant 0.000000e+00 : f32
    %40 = vector.broadcast %cst_53 : f32 to vector<8x8x16xf32>
    %41 = arith.maximumf %39, %40 : vector<8x8x16xf32>
    %42 = arith.truncf %41 : vector<8x8x16xf32> to vector<8x8x16xbf16>
    %c1_54 = arith.constant 1 : index
    %c1_55 = arith.constant 1 : index
    %c0_56 = arith.constant 0 : index
    %43 = vector.load %arg12[%c1_54, %c1_55, %c0_56] : memref<10x10x32xbf16, #tpu.memory_space<vmem>>, vector<8x8x16xbf16>
    tpu.vector_store %arg12[%c1_54, %c1_55, %c0_56], %42 {strides = array<i32>} : memref<10x10x32xbf16, #tpu.memory_space<vmem>>, vector<8x8x16xbf16>,
    %c0_57 = arith.constant 0 : index
    %c0_58 = arith.constant 0 : index
    %c0_59 = arith.constant 0 : index
    %44 = vector.load %arg12[%c0_57, %c0_58, %c0_59] : memref<10x10x32xbf16, #tpu.memory_space<vmem>>, vector<8x8x16xbf16>
    %c0_60 = arith.constant 0 : index
    %c1_61 = arith.constant 1 : index
    %c0_62 = arith.constant 0 : index
    %45 = vector.load %arg12[%c0_60, %c1_61, %c0_62] : memref<10x10x32xbf16, #tpu.memory_space<vmem>>, vector<8x8x16xbf16>
    %c0_63 = arith.constant 0 : index
    %c2_64 = arith.constant 2 : index
    %c0_65 = arith.constant 0 : index
    %46 = vector.load %arg12[%c0_63, %c2_64, %c0_65] : memref<10x10x32xbf16, #tpu.memory_space<vmem>>, vector<8x8x16xbf16>
    %c1_66 = arith.constant 1 : index
    %c0_67 = arith.constant 0 : index
    %c0_68 = arith.constant 0 : index
    %47 = vector.load %arg12[%c1_66, %c0_67, %c0_68] : memref<10x10x32xbf16, #tpu.memory_space<vmem>>, vector<8x8x16xbf16>
    %c1_69 = arith.constant 1 : index
    %c1_70 = arith.constant 1 : index
    %c0_71 = arith.constant 0 : index
    %48 = vector.load %arg12[%c1_69, %c1_70, %c0_71] : memref<10x10x32xbf16, #tpu.memory_space<vmem>>, vector<8x8x16xbf16>
    %c1_72 = arith.constant 1 : index
    %c2_73 = arith.constant 2 : index
    %c0_74 = arith.constant 0 : index
    %49 = vector.load %arg12[%c1_72, %c2_73, %c0_74] : memref<10x10x32xbf16, #tpu.memory_space<vmem>>, vector<8x8x16xbf16>
    %c2_75 = arith.constant 2 : index
    %c0_76 = arith.constant 0 : index
    %c0_77 = arith.constant 0 : index
    %50 = vector.load %arg12[%c2_75, %c0_76, %c0_77] : memref<10x10x32xbf16, #tpu.memory_space<vmem>>, vector<8x8x16xbf16>
    %c2_78 = arith.constant 2 : index
    %c1_79 = arith.constant 1 : index
    %c0_80 = arith.constant 0 : index
    %51 = vector.load %arg12[%c2_78, %c1_79, %c0_80] : memref<10x10x32xbf16, #tpu.memory_space<vmem>>, vector<8x8x16xbf16>
    %c2_81 = arith.constant 2 : index
    %c2_82 = arith.constant 2 : index
    %c0_83 = arith.constant 0 : index
    %52 = vector.load %arg12[%c2_81, %c2_82, %c0_83] : memref<10x10x32xbf16, #tpu.memory_space<vmem>>, vector<8x8x16xbf16>
    %53 = tpu.concatenate %44, %45, %46, %47, %48, %49, %50, %51, %52 in 2 : vector<8x8x16xbf16>, vector<8x8x16xbf16>, vector<8x8x16xbf16>, vector<8x8x16xbf16>, vector<8x8x16xbf16>, vector<8x8x16xbf16>, vector<8x8x16xbf16>, vector<8x8x16xbf16>, vector<8x8x16xbf16> -> vector<8x8x144xbf16>
    %54 = vector.shape_cast %53 : vector<8x8x144xbf16> to vector<64x144xbf16>
    %c0_84 = arith.constant 0 : index
    %c0_85 = arith.constant 0 : index
    %55 = vector.load %arg5[%c0_84, %c0_85] : memref<144x8xbf16, #tpu.memory_space<vmem>>, vector<144x8xbf16>
    %cst_86 = arith.constant dense<0.000000e+00> : vector<64x8xf32>
    %56 = tpu.matmul %54, %55, %cst_86 {dimension_numbers = #tpu.dot_dimension_numbers<[1], [0], [0], [1], [0, 0, 1, 1], [], []>} : vector<64x144xbf16>, vector<144x8xbf16>, vector<64x8xf32> -> vector<64x8xf32>
    %57 = vector.shape_cast %56 : vector<64x8xf32> to vector<8x8x8xf32>
    %c0_87 = arith.constant 0 : index
    %c0_88 = arith.constant 0 : index
    %c0_89 = arith.constant 0 : index
    %58 = vector.load %arg6[%c0_87, %c0_88, %c0_89] : memref<1x1x8xf32, #tpu.memory_space<vmem>>, vector<1x1x8xf32>
    %59 = vector.broadcast %58 : vector<1x1x8xf32> to vector<8x8x8xf32>
    %60 = arith.addf %57, %59 : vector<8x8x8xf32>
    %cst_90 = arith.constant 0.000000e+00 : f32
    %61 = vector.broadcast %cst_90 : f32 to vector<8x8x8xf32>
    %62 = arith.maximumf %60, %61 : vector<8x8x8xf32>
    %63 = arith.truncf %62 : vector<8x8x8xf32> to vector<8x8x8xbf16>
    %c1_91 = arith.constant 1 : index
    %c1_92 = arith.constant 1 : index
    %c0_93 = arith.constant 0 : index
    %64 = vector.load %arg12[%c1_91, %c1_92, %c0_93] : memref<10x10x32xbf16, #tpu.memory_space<vmem>>, vector<8x8x8xbf16>
    tpu.vector_store %arg12[%c1_91, %c1_92, %c0_93], %63 {strides = array<i32>} : memref<10x10x32xbf16, #tpu.memory_space<vmem>>, vector<8x8x8xbf16>,
    %c0_94 = arith.constant 0 : index
    %c0_95 = arith.constant 0 : index
    %c0_96 = arith.constant 0 : index
    %65 = vector.load %arg12[%c0_94, %c0_95, %c0_96] : memref<10x10x32xbf16, #tpu.memory_space<vmem>>, vector<8x8x8xbf16>
    %c0_97 = arith.constant 0 : index
    %c1_98 = arith.constant 1 : index
    %c0_99 = arith.constant 0 : index
    %66 = vector.load %arg12[%c0_97, %c1_98, %c0_99] : memref<10x10x32xbf16, #tpu.memory_space<vmem>>, vector<8x8x8xbf16>
    %c0_100 = arith.constant 0 : index
    %c2_101 = arith.constant 2 : index
    %c0_102 = arith.constant 0 : index
    %67 = vector.load %arg12[%c0_100, %c2_101, %c0_102] : memref<10x10x32xbf16, #tpu.memory_space<vmem>>, vector<8x8x8xbf16>
    %c1_103 = arith.constant 1 : index
    %c0_104 = arith.constant 0 : index
    %c0_105 = arith.constant 0 : index
    %68 = vector.load %arg12[%c1_103, %c0_104, %c0_105] : memref<10x10x32xbf16, #tpu.memory_space<vmem>>, vector<8x8x8xbf16>
    %c1_106 = arith.constant 1 : index
    %c1_107 = arith.constant 1 : index
    %c0_108 = arith.constant 0 : index
    %69 = vector.load %arg12[%c1_106, %c1_107, %c0_108] : memref<10x10x32xbf16, #tpu.memory_space<vmem>>, vector<8x8x8xbf16>
    %c1_109 = arith.constant 1 : index
    %c2_110 = arith.constant 2 : index
    %c0_111 = arith.constant 0 : index
    %70 = vector.load %arg12[%c1_109, %c2_110, %c0_111] : memref<10x10x32xbf16, #tpu.memory_space<vmem>>, vector<8x8x8xbf16>
    %c2_112 = arith.constant 2 : index
    %c0_113 = arith.constant 0 : index
    %c0_114 = arith.constant 0 : index
    %71 = vector.load %arg12[%c2_112, %c0_113, %c0_114] : memref<10x10x32xbf16, #tpu.memory_space<vmem>>, vector<8x8x8xbf16>
    %c2_115 = arith.constant 2 : index
    %c1_116 = arith.constant 1 : index
    %c0_117 = arith.constant 0 : index
    %72 = vector.load %arg12[%c2_115, %c1_116, %c0_117] : memref<10x10x32xbf16, #tpu.memory_space<vmem>>, vector<8x8x8xbf16>
    %c2_118 = arith.constant 2 : index
    %c2_119 = arith.constant 2 : index
    %c0_120 = arith.constant 0 : index
    %73 = vector.load %arg12[%c2_118, %c2_119, %c0_120] : memref<10x10x32xbf16, #tpu.memory_space<vmem>>, vector<8x8x8xbf16>
    %74 = tpu.concatenate %65, %66, %67, %68, %69, %70, %71, %72, %73 in 2 : vector<8x8x8xbf16>, vector<8x8x8xbf16>, vector<8x8x8xbf16>, vector<8x8x8xbf16>, vector<8x8x8xbf16>, vector<8x8x8xbf16>, vector<8x8x8xbf16>, vector<8x8x8xbf16>, vector<8x8x8xbf16> -> vector<8x8x72xbf16>
    %75 = vector.shape_cast %74 : vector<8x8x72xbf16> to vector<64x72xbf16>
    %c0_121 = arith.constant 0 : index
    %c0_122 = arith.constant 0 : index
    %76 = vector.load %arg7[%c0_121, %c0_122] : memref<72x4xbf16, #tpu.memory_space<vmem>>, vector<72x4xbf16>
    %cst_123 = arith.constant dense<0.000000e+00> : vector<64x4xf32>
    %77 = tpu.matmul %75, %76, %cst_123 {dimension_numbers = #tpu.dot_dimension_numbers<[1], [0], [0], [1], [0, 0, 1, 1], [], []>} : vector<64x72xbf16>, vector<72x4xbf16>, vector<64x4xf32> -> vector<64x4xf32>
    %78 = vector.shape_cast %77 : vector<64x4xf32> to vector<8x8x4xf32>
    %c0_124 = arith.constant 0 : index
    %c0_125 = arith.constant 0 : index
    %c0_126 = arith.constant 0 : index
    %79 = vector.load %arg8[%c0_124, %c0_125, %c0_126] : memref<1x1x4xf32, #tpu.memory_space<vmem>>, vector<1x1x4xf32>
    %80 = vector.broadcast %79 : vector<1x1x4xf32> to vector<8x8x4xf32>
    %81 = arith.addf %78, %80 : vector<8x8x4xf32>
    %cst_127 = arith.constant 0.000000e+00 : f32
    %82 = vector.broadcast %cst_127 : f32 to vector<8x8x4xf32>
    %83 = arith.maximumf %81, %82 : vector<8x8x4xf32>
    %84 = arith.truncf %83 : vector<8x8x4xf32> to vector<8x8x4xbf16>
    %c1_128 = arith.constant 1 : index
    %c1_129 = arith.constant 1 : index
    %c0_130 = arith.constant 0 : index
    %85 = vector.load %arg12[%c1_128, %c1_129, %c0_130] : memref<10x10x32xbf16, #tpu.memory_space<vmem>>, vector<8x8x4xbf16>
    tpu.vector_store %arg12[%c1_128, %c1_129, %c0_130], %84 {strides = array<i32>} : memref<10x10x32xbf16, #tpu.memory_space<vmem>>, vector<8x8x4xbf16>,
    %c0_131 = arith.constant 0 : index
    %c0_132 = arith.constant 0 : index
    %c0_133 = arith.constant 0 : index
    %86 = vector.load %arg12[%c0_131, %c0_132, %c0_133] : memref<10x10x32xbf16, #tpu.memory_space<vmem>>, vector<8x8x4xbf16>
    %c0_134 = arith.constant 0 : index
    %c1_135 = arith.constant 1 : index
    %c0_136 = arith.constant 0 : index
    %87 = vector.load %arg12[%c0_134, %c1_135, %c0_136] : memref<10x10x32xbf16, #tpu.memory_space<vmem>>, vector<8x8x4xbf16>
    %c0_137 = arith.constant 0 : index
    %c2_138 = arith.constant 2 : index
    %c0_139 = arith.constant 0 : index
    %88 = vector.load %arg12[%c0_137, %c2_138, %c0_139] : memref<10x10x32xbf16, #tpu.memory_space<vmem>>, vector<8x8x4xbf16>
    %c1_140 = arith.constant 1 : index
    %c0_141 = arith.constant 0 : index
    %c0_142 = arith.constant 0 : index
    %89 = vector.load %arg12[%c1_140, %c0_141, %c0_142] : memref<10x10x32xbf16, #tpu.memory_space<vmem>>, vector<8x8x4xbf16>
    %c1_143 = arith.constant 1 : index
    %c1_144 = arith.constant 1 : index
    %c0_145 = arith.constant 0 : index
    %90 = vector.load %arg12[%c1_143, %c1_144, %c0_145] : memref<10x10x32xbf16, #tpu.memory_space<vmem>>, vector<8x8x4xbf16>
    %c1_146 = arith.constant 1 : index
    %c2_147 = arith.constant 2 : index
    %c0_148 = arith.constant 0 : index
    %91 = vector.load %arg12[%c1_146, %c2_147, %c0_148] : memref<10x10x32xbf16, #tpu.memory_space<vmem>>, vector<8x8x4xbf16>
    %c2_149 = arith.constant 2 : index
    %c0_150 = arith.constant 0 : index
    %c0_151 = arith.constant 0 : index
    %92 = vector.load %arg12[%c2_149, %c0_150, %c0_151] : memref<10x10x32xbf16, #tpu.memory_space<vmem>>, vector<8x8x4xbf16>
    %c2_152 = arith.constant 2 : index
    %c1_153 = arith.constant 1 : index
    %c0_154 = arith.constant 0 : index
    %93 = vector.load %arg12[%c2_152, %c1_153, %c0_154] : memref<10x10x32xbf16, #tpu.memory_space<vmem>>, vector<8x8x4xbf16>
    %c2_155 = arith.constant 2 : index
    %c2_156 = arith.constant 2 : index
    %c0_157 = arith.constant 0 : index
    %94 = vector.load %arg12[%c2_155, %c2_156, %c0_157] : memref<10x10x32xbf16, #tpu.memory_space<vmem>>, vector<8x8x4xbf16>
    %95 = tpu.concatenate %86, %87, %88, %89, %90, %91, %92, %93, %94 in 2 : vector<8x8x4xbf16>, vector<8x8x4xbf16>, vector<8x8x4xbf16>, vector<8x8x4xbf16>, vector<8x8x4xbf16>, vector<8x8x4xbf16>, vector<8x8x4xbf16>, vector<8x8x4xbf16>, vector<8x8x4xbf16> -> vector<8x8x36xbf16>
    %96 = vector.shape_cast %95 : vector<8x8x36xbf16> to vector<64x36xbf16>
    %c0_158 = arith.constant 0 : index
    %c0_159 = arith.constant 0 : index
    %97 = vector.load %arg9[%c0_158, %c0_159] : memref<36x1xbf16, #tpu.memory_space<vmem>>, vector<36x1xbf16>
    %cst_160 = arith.constant dense<0.000000e+00> : vector<64x1xf32>
    %98 = tpu.matmul %96, %97, %cst_160 {dimension_numbers = #tpu.dot_dimension_numbers<[1], [0], [0], [1], [0, 0, 1, 1], [], []>} : vector<64x36xbf16>, vector<36x1xbf16>, vector<64x1xf32> -> vector<64x1xf32>
    %99 = vector.shape_cast %98 : vector<64x1xf32> to vector<8x8x1xf32>
    %c0_161 = arith.constant 0 : index
    %c0_162 = arith.constant 0 : index
    %c0_163 = arith.constant 0 : index
    %100 = vector.load %arg10[%c0_161, %c0_162, %c0_163] : memref<1x1x1xf32, #tpu.memory_space<vmem>>, vector<1x1x1xf32>
    %101 = vector.broadcast %100 : vector<1x1x1xf32> to vector<8x8x1xf32>
    %102 = arith.addf %99, %101 : vector<8x8x1xf32>
    %103 = vector.shape_cast %102 : vector<8x8x1xf32> to vector<8x8xf32>
    %cst_164 = arith.constant 5.000000e-01 : f32
    %104 = vector.broadcast %cst_164 : f32 to vector<8x8xf32>
    %105 = arith.mulf %104, %103 : vector<8x8xf32>
    %106 = math.tanh %105 : vector<8x8xf32>
    %cst_165 = arith.constant 1.000000e+00 : f32
    %107 = vector.broadcast %cst_165 : f32 to vector<8x8xf32>
    %108 = arith.addf %106, %107 : vector<8x8xf32>
    %cst_166 = arith.constant 5.000000e-01 : f32
    %109 = vector.broadcast %cst_166 : f32 to vector<8x8xf32>
    %110 = arith.mulf %109, %108 : vector<8x8xf32>
    %c0_167 = arith.constant 0 : index
    %c0_168 = arith.constant 0 : index
    %c0_169 = arith.constant 0 : index
    %111 = vector.load %arg11[%c0_167, %c0_168, %c0_169] : memref<1x8x8xf32, #tpu.memory_space<vmem>>, vector<1x8x8xf32>
    %112 = vector.shape_cast %111 : vector<1x8x8xf32> to vector<8x8xf32>
    %113 = vector.shape_cast %110 : vector<8x8xf32> to vector<1x8x8xf32>
    tpu.vector_store %arg11[%c0_167, %c0_168, %c0_169], %113 {strides = array<i32>} : memref<1x8x8xf32, #tpu.memory_space<vmem>>, vector<1x8x8xf32>,
    return
  }
  func.func @transform_0(%arg0: i32) -> (i32, i32, i32) {
    %c0_i32 = arith.constant 0 : i32
    %c0_i32_0 = arith.constant 0 : i32
    %c0_i32_1 = arith.constant 0 : i32
    return %arg0, %c0_i32, %c0_i32_0 : i32, i32, i32
  }
  func.func @transform_1(%arg0: i32) -> (i32, i32, i32) {
    %c0_i32 = arith.constant 0 : i32
    %c0_i32_0 = arith.constant 0 : i32
    %c0_i32_1 = arith.constant 0 : i32
    return %arg0, %c0_i32, %c0_i32_0 : i32, i32, i32
  }
  func.func @transform_2(%arg0: i32) -> (i32, i32) {
    %c0_i32 = arith.constant 0 : i32
    %c0_i32_0 = arith.constant 0 : i32
    %c0_i32_1 = arith.constant 0 : i32
    return %c0_i32, %c0_i32_0 : i32, i32
  }
  func.func @transform_3(%arg0: i32) -> (i32, i32, i32) {
    %c0_i32 = arith.constant 0 : i32
    %c0_i32_0 = arith.constant 0 : i32
    %c0_i32_1 = arith.constant 0 : i32
    %c0_i32_2 = arith.constant 0 : i32
    return %c0_i32, %c0_i32_0, %c0_i32_1 : i32, i32, i32
  }
  func.func @transform_4(%arg0: i32) -> (i32, i32) {
    %c0_i32 = arith.constant 0 : i32
    %c0_i32_0 = arith.constant 0 : i32
    %c0_i32_1 = arith.constant 0 : i32
    return %c0_i32, %c0_i32_0 : i32, i32
  }
  func.func @transform_5(%arg0: i32) -> (i32, i32, i32) {
    %c0_i32 = arith.constant 0 : i32
    %c0_i32_0 = arith.constant 0 : i32
    %c0_i32_1 = arith.constant 0 : i32
    %c0_i32_2 = arith.constant 0 : i32
    return %c0_i32, %c0_i32_0, %c0_i32_1 : i32, i32, i32
  }
  func.func @transform_6(%arg0: i32) -> (i32, i32) {
    %c0_i32 = arith.constant 0 : i32
    %c0_i32_0 = arith.constant 0 : i32
    %c0_i32_1 = arith.constant 0 : i32
    return %c0_i32, %c0_i32_0 : i32, i32
  }
  func.func @transform_7(%arg0: i32) -> (i32, i32, i32) {
    %c0_i32 = arith.constant 0 : i32
    %c0_i32_0 = arith.constant 0 : i32
    %c0_i32_1 = arith.constant 0 : i32
    %c0_i32_2 = arith.constant 0 : i32
    return %c0_i32, %c0_i32_0, %c0_i32_1 : i32, i32, i32
  }
  func.func @transform_8(%arg0: i32) -> (i32, i32) {
    %c0_i32 = arith.constant 0 : i32
    %c0_i32_0 = arith.constant 0 : i32
    %c0_i32_1 = arith.constant 0 : i32
    return %c0_i32, %c0_i32_0 : i32, i32
  }
  func.func @transform_9(%arg0: i32) -> (i32, i32, i32) {
    %c0_i32 = arith.constant 0 : i32
    %c0_i32_0 = arith.constant 0 : i32
    %c0_i32_1 = arith.constant 0 : i32
    %c0_i32_2 = arith.constant 0 : i32
    return %c0_i32, %c0_i32_0, %c0_i32_1 : i32, i32, i32
  }
  func.func @transform_10(%arg0: i32) -> (i32, i32, i32) {
    %c0_i32 = arith.constant 0 : i32
    %c0_i32_0 = arith.constant 0 : i32
    %c0_i32_1 = arith.constant 0 : i32
    return %arg0, %c0_i32, %c0_i32_0 : i32, i32, i32
  }
}

</mosaic_0001>

<bundles_post_ra>
// kernel: tpu_custom_call.1
= control target key start
LH: loop header
LB: loop body
LE: loop exit
PB: predicated region body
PF: predicated region fallthrough
CT: control target
= control target key end

     0   :  { %s8101_s0 = inlined_call_operand.vmem [shape: f32[2,8,16], index: 0, kind: input, shape index: {}]   ;;  %s8102_s1 = inlined_call_operand.vmem [shape: f32[2,8,16], index: 1, kind: input, shape index: {}]   ;;  %s8103_s2 = inlined_call_operand.vmem [shape: bf16[288,16], index: 2, kind: input, shape index: {}]   ;;  %s8104_s3 = inlined_call_operand.vmem [shape: f32[1,1,16], index: 3, kind: input, shape index: {}]   ;;  %s8105_s4 = inlined_call_operand.vmem [shape: bf16[144,8], index: 4, kind: input, shape index: {}]   ;;  %s8106_s5 = inlined_call_operand.vmem [shape: f32[1,1,8], index: 5, kind: input, shape index: {}]   ;;  %s8107_s6 = inlined_call_operand.vmem [shape: bf16[72,4], index: 6, kind: input, shape index: {}]   ;;  %s8108_s7 = inlined_call_operand.vmem [shape: f32[1,1,4], index: 7, kind: input, shape index: {}]   ;;  %s8109_s8 = inlined_call_operand.vmem [shape: bf16[36,1], index: 8, kind: input, shape index: {}]   ;;  %s8110_s9 = inlined_call_operand.<no memory space> [shape: f32[1,1,1], index: 9, kind: input, shape index: {}]   ;;  %s8111_s10 = inlined_call_operand.hbm [shape: f32[2,8,8], index: 10, kind: output, shape index: {}]  }
   0x1   :  { %v15_v0 = vstv %s8110_s9 }
   0x2   :  { %16 = vst [vmem:[#allocation3] sm:$0x1] %v15_v0 }
   0x3   :  { %17 = vsyncpa [#allocation5], 0 }
   0x4   :  { %19 = vsyncpa [#allocation5 + $0x1], 0  ;;  %s6397_s15 = smov 0   ;;  %s6399_s16 = smov 0  }
   0x5   :  { %s6401_s17 = smov 0   ;;  %s6403_s18 = smov 0  }
   0x6 LB: > { %s6418_s9 = sadd.s32 4294967295, %s6319_s18   ;;  %s5343_s19 = sadd.s32 4294967294, %s6319_s18   ;;  %s6319_s18 = sphi %s6403_s18, %s8155_s18   ;;  %s6315_s17 = sphi %s6401_s17, %s8154_s17   ;;  %s6311_s16 = sphi %s6399_s16, %s8153_s16   ;;  %s6307_s15 = sphi %s6397_s15, %s8152_s15  }
   0x7   : > { %s6422_s20 = sadd.s32 1, %s6319_s18   ;;  %s252_s21 = sadd.s32 1, %s6315_s17 }
   0x8   : > { %s249_s22 = ssub.s32 %s6319_s18, %s6422_s20  ;;  %p262_p0 = scmp.ne.s32.totalorder %s6315_s17, %s6311_s16 }
   0x9   : > { %p250_p1 = scmp.eq.s32.totalorder %s249_s22, 0  ;;  %p263_p2 = scmp.eq.s32.totalorder %s6418_s9, 1 }
   0xa   : > { %p268_p3 = scmp.ne.s32.totalorder %s6311_s16, %s6307_s15  ;;  %p269_p4 = scmp.eq.s32.totalorder %s5343_s19, 1 }
   0xb   : > { %s6433_s23 = scalar_select %p250_p1, %s6315_s17, %s252_s21  }
   0xc   : > { %p6435_p5 = por %p263_p2, %p262_p0  ;;  %p6439_p6 = por %p269_p4, %p268_p3 }
   0xd   : > { %p5346_p7 = scmp.ge.s32.totalorder %s6319_s18, 1  ;;  %p325_p8 = scmp.lt.s32.totalorder %s6319_s18, 3 }
   0xf   : > { %p326_p9 = pnand %p5346_p7, %p325_p8 }
  0x11   : > { %329 = sbr.rel (%p326_p9) target bundleno = 2041 (0x7f9), region = 60 }
  0x18   : > { %p366_p10 = scmp.lt.s32.totalorder %s6418_s9, 1  ;;  %v8112_v1 = vlaneseq  ;;  %vm377_vm0 = vcmask 253952   ;;  %v6321_v2 = vmov 1966171168   ;;  %v8113_v4 = vmov 0   ;;  %s6323_s14 = smov 16  }
  0x19   : > { %v441_v3 = vunpack.c.l.s4 %v6321_v2  ;;  %378 = vst.msk [vmem:[#allocation2 + $0x4] sm:$0x1] %vm377_vm0, %v8113_v4  ;;  %381 = vst.msk [vmem:[#allocation2 + $0x4c] sm:$0x1] %vm377_vm0, %v8113_v4  ;;  %vm384_vm1 = vsmask.f32 256  ;;  %5944 = vset.pattern.permute.xlu1 %v8113_v4  ;;  %5945 = vset.pattern.permute.xlu0 %v8113_v4 }
  0x1a   : > { %v386_v5 = vld [vmem:[#allocation2 + $0x8] sm:$0x1]  ;;  %vm410_vm2 = vsmask.f32 7938  ;;  %s6453_s26 = scalar_select %p366_p10, %s6418_s9, 1  ;;  %v6456_v6 = vshrl.u32 %v8112_v1, 7  ;;  %vm6460_vm3 = vmand %vm377_vm0, %vm384_vm1 }
  0x1b   : > { %v442_v8 = vunpack.c.0.s8 %v441_v3  ;;  %v387_v9 = vsel %vm6460_vm3, 0, %v386_v5  ;;  %vm6468_vm4 = vmand %vm377_vm0, %vm410_vm2  ;;  %v389_v11 = vld [vmem:[#allocation2 + $0x10] sm:$0x1]  ;;  %v412_v12 = vld [vmem:[#allocation2 + $0xc] sm:$0x1]  ;;  %vm375_vm5 = vcmask 257024  }
  0x1c   : > { %8122 = vst [vmem:[#allocation7_spill] sm:$0xff] %v6456_v6  ;;  %s5348_s27 = sshll.u32 %s6453_s26, 3  ;;  %388 = vst [vmem:[#allocation2 + $0x8] sm:$0x1] %v387_v9  ;;  %v390_v13 = vsel %vm6460_vm3, 0, %v389_v11  ;;  %v413_v14 = vsel %vm6468_vm4, 0, %v412_v12 }
  0x1d   : > { %376 = vst.msk [vmem:[#allocation2] sm:$0xf] %vm375_vm5, %v8113_v4  ;;  %380 = vst.msk [vmem:[#allocation2 + $0x48] sm:$0xf] %vm375_vm5, %v8113_v4  ;;  %v415_v15 = vld [vmem:[#allocation2 + $0x14] sm:$0x1]  ;;  %s369_s30 = scalar_lea.vmem %s8101_s0, %s5348_s27  ;;  %v6483_v16 = vsub.s32 %v442_v8, %v6456_v6  ;;  %s373_s13 = scalar_lea.vmem %s8102_s1, %s5348_s27 }
  0x1e   : > { %391 = vst [vmem:[#allocation2 + $0x10] sm:$0x1] %v390_v13  ;;  %414 = vst [vmem:[#allocation2 + $0xc] sm:$0x1] %v413_v14  ;;  %v416_v17 = vsel %vm6468_vm4, 0, %v415_v15  ;;  %v436_v20 = vld [vmem:[%s369_s30] sm:$0xff] }
  0x1f   : > { %v392_v18 = vld [vmem:[#allocation2 + $0x18] sm:$0x1]  ;;  %v418_v19 = vld [vmem:[#allocation2 + $0x1c] sm:$0x1]  ;;  %v6488_v21 = vsub.s32 0, %v6456_v6  ;;  %v446_v24 = vrot.slane %v436_v20, %v6483_v16  ;;  %v439_v25 = vcombine.high %v436_v20, %v436_v20  ;;  %v6500_v32 = vld [vmem:[%s373_s13] sm:$0xff] }
  0x20   : > { %417 = vst [vmem:[#allocation2 + $0x14] sm:$0x1] %v416_v17  ;;  %v393_v22 = vsel %vm6460_vm3, 0, %v392_v18  ;;  %v419_v23 = vsel %vm6468_vm4, 0, %v418_v19  ;;  %v424_v29 = vld [vmem:[#allocation2 + $0x2c] sm:$0x1] }
  0x21   : > { %394 = vst [vmem:[#allocation2 + $0x18] sm:$0x1] %v393_v22  ;;  %420 = vst [vmem:[#allocation2 + $0x1c] sm:$0x1] %v419_v23  ;;  %v462_v26 = vrot.slane %v446_v24, %v6483_v16  ;;  %v454_v27 = vcombine.high %v446_v24, %v446_v24  ;;  %v453_v28 = vrot.slane %v439_v25, %v6483_v16  ;;  %v398_v30 = vld [vmem:[#allocation2 + $0x28] sm:$0x1] }
  0x22   : > { %v421_v31 = vld [vmem:[#allocation2 + $0x24] sm:$0x1]  ;;  %v425_v33 = vsel %vm6468_vm4, 0, %v424_v29  ;;  %v399_v34 = vsel %vm6460_vm3, 0, %v398_v30  ;;  %vm656_vm6 = vcmask 125952   ;;  %vm661_vm7 = vcmask 122880  }
  0x23   : > { %v422_v35 = vsel %vm6468_vm4, 0, %v421_v31  ;;  %v491_v36 = vrot.slane %v462_v26, %v6488_v21  ;;  %v484_v37 = vcombine.high %v462_v26, %v462_v26  ;;  %v476_v38 = vrot.slane %v454_v27, %v6483_v16  ;;  %426 = vst [vmem:[#allocation2 + $0x2c] sm:$0x1] %v425_v33  ;;  %400 = vst [vmem:[#allocation2 + $0x28] sm:$0x1] %v399_v34  ;;  %s6324_s27 = smov 32  }
  0x24   : > { %v469_v39 = vrot.slane %v453_v28, %v6483_v16  ;;  %423 = vst [vmem:[#allocation2 + $0x24] sm:$0x1] %v422_v35  ;;  %v455_v60 = vcombine.high %v453_v28, %v453_v28  ;;  %vm6583_vm8 = vmand %vm656_vm6, %vm410_vm2  ;;  %s6325_s28 = smov 64   ;;  %vm860_vm10 = vcmask 257152   ;;  %vm865_vm12 = vcmask 254080   ;;  %s6326_s29 = smov 96  }
  0x25   : > { %v708_v40 = vmul.f32 %v491_v36, %v6500_v32  ;;  %v528_v41 = vsub.f32 %v491_v36, %v6500_v32  ;;  %v495_v42 = vrot.slane %v476_v38, %v6488_v21  ;;  %v499_v43 = vrot.slane %v484_v37, %v6488_v21  ;;  %vm6594_vm9 = vmand %vm661_vm7, %vm384_vm1  ;;  %s6327_s22 = smov 48   ;;  %s6328_s11 = smov 80  }
  0x26   : > { %v507_v44 = vrot.slane %v469_v39, %v6488_v21  ;;  %v486_v11 = vcombine.high %v476_v38, %v476_v38  ;;  %v6529_v17 = vrot.slane %v455_v60, %v6483_v16  ;;  %v485_v18 = vcombine.high %v469_v39, %v469_v39  ;;  %v5956_v60 = vld [vmem:[%s8103_s2 + $0x80] sm:$0xff]   ;;  %vm6691_vm11 = vmand %vm860_vm10, %vm410_vm2  ;;  %s6329_s19 = smov 112   ;;  %s6332_s21 = smov 24  }
  0x27   : > { %v5741_v45 = vpack.c.bf16 %v708_v40, %v708_v40  ;;  %v536_v46 = vand.u32 2147483647, %v528_v41  ;;  %v709_v47 = vmul.f32 %v495_v42, %v6500_v32  ;;  %v529_v48 = vsub.f32 %v495_v42, %v6500_v32  ;;  %v912_v42 = vld [vmem:[#allocation2] sm:$0xf]  ;;  %5835 = vmatprep.subr.bf16.mxu1 %v5956_v60  ;;  %vm6698_vm13 = vmand %vm865_vm12, %vm384_vm1  ;;  %s6333_s26 = smov 40   ;;  %s6336_s13 = smov 12  }
  0x28   : > { %v710_v49 = vmul.f32 %v499_v43, %v6500_v32  ;;  %v530_v50 = vsub.f32 %v499_v43, %v6500_v32  ;;  %v712_v54 = vmul.f32 %v507_v44, %v6500_v32  ;;  %v532_v0 = vsub.f32 %v507_v44, %v6500_v32  ;;  %v6554_v43 = vld [vmem:[#allocation2 + $0x4] sm:$0x1]  ;;  %5836 = vmatpush3.bf16.msra.mxu1 %v5956_v60 }
  0x29   : > { %v749_v51 = vshrl.u32 %v5741_v45, 16  ;;  %v752_v52 = vshll.u32 %v5741_v45, 16  ;;  %v5742_v53 = vpack.c.bf16 %v709_v47, %v709_v47  ;;  %v6521_v55 = vpack.c.bf16 %v536_v46, %v536_v46 }
  0x2a   : > { %v537_v56 = vand.u32 2147483647, %v529_v48  ;;  %v5743_v57 = vpack.c.bf16 %v710_v49, %v710_v49  ;;  %v538_v5 = vand.u32 2147483647, %v530_v50  ;;  %v5745_v8 = vpack.c.bf16 %v712_v54, %v712_v54 }
  0x2b   : > { %v751_v58 = vrot.slane %v749_v51, 7  ;;  %v757_v59 = vshrl.u32 %v5742_v53, 16  ;;  %v760_v61 = vshll.u32 %v5742_v53, 16  ;;  %v577_v9 = vshrl.u32 %v6521_v55, 16 }
  0x2c   : > { %v6523_v62 = vpack.c.bf16 %v537_v56, %v537_v56  ;;  %v765_v63 = vshrl.u32 %v5743_v57, 16  ;;  %v768_v13 = vshll.u32 %v5743_v57, 16  ;;  %v580_v19 = vshll.u32 %v6521_v55, 16 }
  0x2d   : > { %v754_v2 = vor.u32 %v752_v52, %v751_v58  ;;  %v759_v3 = vrot.slane %v757_v59, 7  ;;  %v755_v15 = vrot.slane %v751_v58, 4  ;;  %v6534_v23 = vpack.c.bf16 %v538_v5, %v538_v5 }
  0x2e   : > { %v767_v12 = vrot.slane %v765_v63, 7  ;;  %v585_v20 = vshrl.u32 %v6523_v62, 16  ;;  %v781_v24 = vshrl.u32 %v5745_v8, 16  ;;  %v540_v25 = vand.u32 2147483647, %v532_v0 }
  0x2f   : > { %812 = vrot.lane.b32.xlu0 %v754_v2, %s6323_s14  ;;  %v762_v14 = vor.u32 %v760_v61, %v759_v3  ;;  %v763_v22 = vrot.slane %v759_v3, 4  ;;  %v6536_v26 = vrot.slane %v577_v9, 7  ;;  %v784_v28 = vshll.u32 %v5745_v8, 16  ;;  %v658_v9 = vld [vmem:[#allocation2 + $0x8] sm:$0xf] }
  0x30   : > { %v770_v27 = vor.u32 %v768_v13, %v767_v12  ;;  %v503_v16 = vrot.slane %v486_v11, %v6488_v21  ;;  %v783_v29 = vrot.slane %v781_v24, 7  ;;  %v6540_v30 = vpack.c.bf16 %v540_v25, %v540_v25  ;;  %v663_v24 = vld [vmem:[#allocation2 + $0xc] sm:$0x1] }
  0x31   : > { %816 = vrot.lane.b32.xlu1 %v762_v14, %s6323_s14  ;;  %v511_v31 = vrot.slane %v6529_v17, %v6488_v21  ;;  %v515_v33 = vrot.slane %v485_v18, %v6488_v21  ;;  %v583_v34 = vrot.slane %v6536_v26, 4  ;;  %v588_v35 = vshll.u32 %v6523_v62, 16  ;;  %v666_v18 = vld [vmem:[#allocation2 + $0x10] sm:$0xf]  ;;  %v5961_v25 = vld [vmem:[%s8103_s2 + $0x88] sm:$0xff]  }
  0x32   : > { %v531_v36 = vsub.f32 %v503_v16, %v6500_v32  ;;  %v711_v37 = vmul.f32 %v503_v16, %v6500_v32  ;;  %v6549_v38 = vrot.slane %v585_v20, 7  ;;  %v593_v39 = vshrl.u32 %v6534_v23, 16  ;;  %5837 = vmatprep.subr.bf16.mxu1 %v5961_v25 }
  0x33   : > { %814 = vrot.lane.b32.xlu0 %v755_v15, %s6323_s14  ;;  %v771_v40 = vrot.slane %v767_v12, 4  ;;  %v609_v41 = vshrl.u32 %v6540_v30, 16  ;;  %v713_v46 = vmul.f32 %v511_v31, %v6500_v32  ;;  %v533_v47 = vsub.f32 %v511_v31, %v6500_v32  ;;  %v669_v31 = vld [vmem:[#allocation2 + $0x14] sm:$0x1]  ;;  %5838 = vmatpush3.bf16.msra.mxu1 %v5961_v25 }
  0x34   : > { %v539_v44 = vand.u32 2147483647, %v531_v36  ;;  %v5744_v45 = vpack.c.bf16 %v711_v37, %v711_v37  ;;  %v596_v48 = vshll.u32 %v6534_v23, 16  ;;  %v786_v49 = vor.u32 %v784_v28, %v783_v29  ;;  %2952 = vmatprep.subr.bf16.mxu1 %v8113_v4 }
  0x35   : > { %818 = vrot.lane.b32.xlu1 %v763_v22, %s6323_s14  ;;  %v534_v50 = vsub.f32 %v515_v33, %v6500_v32  ;;  %v714_v51 = vmul.f32 %v515_v33, %v6500_v32  ;;  %v5746_v55 = vpack.c.bf16 %v713_v46, %v713_v46  ;;  %v6564_v56 = vrot.slane %v593_v39, 7  ;;  %v672_v33 = vld [vmem:[#allocation2 + $0x18] sm:$0xf] }
  0x36   : > { %v6562_v52 = vpack.c.bf16 %v539_v44, %v539_v44  ;;  %v773_v53 = vshrl.u32 %v5744_v45, 16  ;;  %v776_v54 = vshll.u32 %v5744_v45, 16  ;;  %v787_v57 = vrot.slane %v783_v29, 4  ;;  %v687_v44 = vld [vmem:[#allocation2 + $0x2c] sm:$0x1] }
  0x37   : > { %820 = vrot.lane.b32.xlu0 %v770_v27, %s6323_s14  ;;  %v6567_v58 = vrot.slane %v609_v41, 7  ;;  %v541_v59 = vand.u32 2147483647, %v533_v47  ;;  %v789_v62 = vshrl.u32 %v5746_v55, 16  ;;  %v542_v63 = vand.u32 2147483647, %v534_v50 }
  0x38   : > { %v775_v61 = vrot.slane %v773_v53, 7  ;;  %v6573_v0 = vcombine.low %v912_v42, %v6554_v43  ;;  %v582_v2 = vor.u32 %v580_v19, %v6536_v26  ;;  %v601_v3 = vshrl.u32 %v6562_v52, 16  ;;  %v675_v42 = vld [vmem:[#allocation2 + $0x1c] sm:$0x1] }
  0x39   : > { %822 = vrot.lane.b32.xlu1 %v771_v40, %s6323_s14  ;;  %v792_v5 = vshll.u32 %v5746_v55, 16  ;;  %v5747_v8 = vpack.c.bf16 %v714_v51, %v714_v51  ;;  %v590_v11 = vor.u32 %v588_v35, %v6549_v38  ;;  %v791_v13 = vrot.slane %v789_v62, 7  ;;  %v681_v62 = vld [vmem:[#allocation2 + $0x24] sm:$0x1] }
  0x3a   : > { %v778_v12 = vor.u32 %v776_v54, %v775_v61  ;;  %v487_v14 = vcombine.high %v6529_v17, %v6529_v17  ;;  %v8127_v15 = vmov 0  ;;  %v591_v19 = vrot.slane %v6549_v38, 4 }
  0x3b   : > { %828 = vrot.lane.b32.xlu0 %v786_v49, %s6323_s14  ;;  %v8128_v15 = vsel %vm6583_vm8, 4294967295, %v8127_v15  ;;  %v599_v20 = vrot.slane %v6564_v56, 4  ;;  %v779_v22 = vrot.slane %v775_v61, 4  ;;  %v6590_v23 = vpack.c.bf16 %v541_v59, %v541_v59 }
  0x3c   : > { %8129 = vst [vmem:[#allocation8_spill] sm:$0xff] %v8128_v15  ;;  %v8130_v17 = vmov 0  ;;  %v598_v27 = vor.u32 %v596_v48, %v6564_v56  ;;  %v612_v28 = vshll.u32 %v6540_v30, 16  ;;  %v615_v16 = vrot.slane %v6567_v58, 4  ;;  %v684_v48 = vld [vmem:[#allocation2 + $0x28] sm:$0xf] }
  0x3d   : > { %830 = vrot.lane.b32.xlu1 %v787_v57, %s6323_s14  ;;  %v8131_v17 = vsel %vm6594_vm9, 4294967295, %v8130_v17  ;;  %v6604_v29 = vpack.c.bf16 %v542_v63, %v542_v63  ;;  %v6606_v35 = vrot.slane %v601_v3, 7  ;;  %v794_v36 = vor.u32 %v792_v5, %v791_v13  ;;  %v6253_v15 = vld [vmem:[#allocation2] sm:$0xf] }
  0x3e   : > { %8132 = vst [vmem:[#allocation9_spill] sm:$0xff] %v8131_v17  ;;  %v797_v37 = vshrl.u32 %v5747_v8, 16  ;;  %v800_v38 = vshll.u32 %v5747_v8, 16  ;;  %v519_v39 = vrot.slane %v487_v14, %v6488_v21  ;;  %v659_v40 = vsel %vm6583_vm8, %v582_v2, %v658_v9  ;;  %v427_v8 = vld [vmem:[#allocation2 + $0x34] sm:$0x1] }
  0x3f   : > { %824 = vrot.lane.b32.xlu0 %v778_v12, %s6323_s14  ;;  %v667_v30 = vsel %vm6583_vm8, %v590_v11, %v666_v18  ;;  %v664_v41 = vsel %vm6594_vm9, %v583_v34, %v663_v24  ;;  %v795_v45 = vrot.slane %v791_v13, 4  ;;  %v617_v46 = vshrl.u32 %v6590_v23, 16  ;;  %660 = vst [vmem:[#allocation2 + $0x8] sm:$0xf] %v659_v40  ;;  %v401_v9 = vld [vmem:[#allocation2 + $0x30] sm:$0x1] }
  0x40   : > { %668 = vst [vmem:[#allocation2 + $0x10] sm:$0xf] %v667_v30  ;;  %665 = vst [vmem:[#allocation2 + $0xc] sm:$0x1] %v664_v41  ;;  %v614_v21 = vor.u32 %v612_v28, %v6567_v58  ;;  %v799_v47 = vrot.slane %v797_v37, 7  ;;  %v715_v26 = vmul.f32 %v519_v39, %v6500_v32  ;;  %v535_v34 = vsub.f32 %v519_v39, %v6500_v32 }
  0x41   : > { %826 = vrot.lane.b32.xlu1 %v779_v22, %s6323_s14  ;;  %v607_v49 = vrot.slane %v6606_v35, 4  ;;  %v625_v50 = vshrl.u32 %v6604_v29, 16  ;;  %v670_v51 = vsel %vm6594_vm9, %v591_v19, %v669_v31  ;;  %v673_v53 = vsel %vm6583_vm8, %v598_v27, %v672_v33  ;;  %v395_v32 = vld [vmem:[#allocation2 + $0x20] sm:$0x1]  ;;  %v928_v11 = vld [vmem:[#allocation2] sm:$0xe] }
  0x42   : > { %v802_v54 = vor.u32 %v800_v38, %v799_v47  ;;  %v5748_v55 = vpack.c.bf16 %v715_v26, %v715_v26  ;;  %v543_v56 = vand.u32 2147483647, %v535_v34  ;;  %v1028_v57 = vshll.u32 %v6573_v0, 16  ;;  %671 = vst [vmem:[#allocation2 + $0x14] sm:$0x1] %v670_v51 }
  0x43   : > { %832 = vrot.lane.b32.xlu0 %v794_v36, %s6323_s14  ;;  %674 = vst [vmem:[#allocation2 + $0x18] sm:$0xf] %v673_v53  ;;  %v6633_v58 = vrot.slane %v617_v46, 7  ;;  %v803_v59 = vrot.slane %v799_v47, 4  ;;  %v676_v60 = vsel %vm6594_vm9, %v599_v20, %v675_v42  ;;  %v688_v61 = vsel %vm6594_vm9, %v615_v16, %v687_v44  ;;  %v430_v12 = vld [vmem:[#allocation2 + $0x3c] sm:$0x1] }
  0x44   : > { %v805_v63 = vshrl.u32 %v5748_v55, 16  ;;  %v808_v2 = vshll.u32 %v5748_v55, 16  ;;  %v5740_v3 = vpack.c.bf16 %v543_v56, %v543_v56  ;;  %677 = vst [vmem:[#allocation2 + $0x1c] sm:$0x1] %v676_v60  ;;  %689 = vst [vmem:[#allocation2 + $0x2c] sm:$0x1] %v688_v61  ;;  %v685_v5 = vsel %vm6583_vm8, %v614_v21, %v684_v48 }
  0x45   : > { %834 = vrot.lane.b32.xlu1 %v795_v45, %s6323_s14  ;;  %686 = vst [vmem:[#allocation2 + $0x28] sm:$0xf] %v685_v5  ;;  %v1026_v14 = vshrl.u32 %v6573_v0, 16  ;;  %v1030_v18 = vrot.slane %v1028_v57, 1  ;;  %v6643_v19 = vld [vmem:[#allocation2 + $0x48] sm:$0xf]  ;;  %v682_v20 = vsel %vm6594_vm9, %v607_v49, %v681_v62  ;;  %v5374_v40 = vcombine.low %v928_v11, %v6554_v43 }
  0x46   : > { %v807_v13 = vrot.slane %v805_v63, 7  ;;  %v404_v22 = vld [vmem:[#allocation2 + $0x38] sm:$0x1]  ;;  %v604_v24 = vshll.u32 %v6562_v52, 16  ;;  %v620_v25 = vshll.u32 %v6590_v23, 16  ;;  %v627_v27 = vrot.slane %v625_v50, 7 }
  0x47   : > { %836 = vrot.lane.b32.xlu0 %v802_v54, %s6323_s14  ;;  %683 = vst [vmem:[#allocation2 + $0x24] sm:$0x1] %v682_v20  ;;  %v396_v28 = vsel %vm6460_vm3, 0, %v395_v32  ;;  %v407_v16 = vld [vmem:[#allocation2 + $0x40] sm:$0x1]  ;;  %v633_v31 = vshrl.u32 %v5740_v3, 16  ;;  %v1031_v39 = vor.u32 %v1030_v18, %v1026_v14  ;;  %v5413_v42 = vcombine.low %v6643_v19, %v6643_v19 }
  0x48   : > { %v810_v0 = vor.u32 %v808_v2, %v807_v13  ;;  %v811_v33 = vrot.slane %v807_v13, 4  ;;  %397 = vst [vmem:[#allocation2 + $0x20] sm:$0x1] %v396_v28  ;;  %v433_v36 = vld [vmem:[#allocation2 + $0x44] sm:$0x1]  ;;  %v623_v37 = vrot.slane %v6633_v58, 4  ;;  %v606_v45 = vor.u32 %v604_v24, %v6606_v35 }
  0x49   : > { %838 = vrot.lane.b32.xlu1 %v803_v59, %s6323_s14  ;;  %v628_v38 = vshll.u32 %v6604_v29, 16  ;;  %v428_v52 = vsel %vm6468_vm4, 0, %v427_v8  ;;  %v402_v23 = vsel %vm6460_vm3, 0, %v401_v9  ;;  %v431_v30 = vsel %vm6468_vm4, 0, %v430_v12  ;;  %v862_v62 = vld [vmem:[#allocation2 + $0x8] sm:$0xf] }
  0x4a   : > { %429 = vst [vmem:[#allocation2 + $0x34] sm:$0x1] %v428_v52  ;;  %403 = vst [vmem:[#allocation2 + $0x30] sm:$0x1] %v402_v23  ;;  %v405_v41 = vsel %vm6460_vm3, 0, %v404_v22  ;;  %v631_v29 = vrot.slane %v627_v27, 4  ;;  %v622_v47 = vor.u32 %v620_v25, %v6633_v58 }
  0x4b   : > { %840 = vrot.lane.b32.xlu0 %v810_v0, %s6323_s14  ;;  %432 = vst [vmem:[#allocation2 + $0x3c] sm:$0x1] %v431_v30  ;;  %406 = vst [vmem:[#allocation2 + $0x38] sm:$0x1] %v405_v41  ;;  %v408_v44 = vsel %vm6460_vm3, 0, %v407_v16  ;;  %v434_v43 = vsel %vm6468_vm4, 0, %v433_v36  ;;  %v630_v48 = vor.u32 %v628_v38, %v627_v27 }
  0x4c   : > { %v635_v46 = vrot.slane %v633_v31, 7  ;;  %v636_v21 = vshll.u32 %v5740_v3, 16  ;;  %409 = vst [vmem:[#allocation2 + $0x40] sm:$0x1] %v408_v44  ;;  %435 = vst [vmem:[#allocation2 + $0x44] sm:$0x1] %v434_v43 }
  0x4d   : > { %842 = vrot.lane.b32.xlu1 %v811_v33, %s6323_s14  ;;  %v1121_v34 = vrot.slane %v5374_v40, 1  ;;  %v870_v2 = vld [vmem:[#allocation2 + $0x10] sm:$0xf]  ;;  %v867_v9 = vld [vmem:[#allocation2 + $0xc] sm:$0x1]  ;;  %vm1481_vm14 = vcmask 261120  }
  0x4e   : > { %v639_v26 = vrot.slane %v635_v46, 4  ;;  %v638_v10 = vor.u32 %v636_v21, %v635_v46  ;;  %v873_v13 = vld [vmem:[#allocation2 + $0x14] sm:$0x1]  ;;  %v876_v20 = vld [vmem:[#allocation2 + $0x18] sm:$0xf]  ;;  %vm1506_vm15 = vcmask 523264  }
  0x4f   : > { %1081 = vrot.lane.b32.xlu0 %v1031_v39, %s6324_s27  ;;  %v678_v7 = vld [vmem:[#allocation2 + $0x20] sm:$0xf]  ;;  %v879_v25 = vld [vmem:[#allocation2 + $0x1c] sm:$0x1]  ;;  %v888_v31 = vld [vmem:[#allocation2 + $0x28] sm:$0xf] }
  0x50   : > { %v679_v35 = vsel %vm6583_vm8, %v606_v45, %v678_v7  ;;  %v891_v36 = vld [vmem:[#allocation2 + $0x2c] sm:$0x1]  ;;  %v885_v45 = vld [vmem:[#allocation2 + $0x24] sm:$0x1]  ;;  %vm1523_vm0 = vcmask 785408   ;;  %vm2708_vm3 = vcmask 130048  }
  0x51   : > { %1351 = vrot.lane.b32.xlu1 %v5413_v42, %s6325_s28  ;;  %680 = vst [vmem:[#allocation2 + $0x20] sm:$0xf] %v679_v35  ;;  %v693_v49 = vld [vmem:[#allocation2 + $0x34] sm:$0x1]  ;;  %v690_v50 = vld [vmem:[#allocation2 + $0x30] sm:$0xf] }
  0x52   : > { %v694_v51 = vsel %vm6594_vm9, %v623_v37, %v693_v49  ;;  %v691_v53 = vsel %vm6583_vm8, %v622_v47, %v690_v50  ;;  %v699_v54 = vld [vmem:[#allocation2 + $0x3c] sm:$0x1]  ;;  %v696_v55 = vld [vmem:[#allocation2 + $0x38] sm:$0xf]  ;;  %vm2749_vm4 = vcmask 392192   ;;  %vm2782_vm5 = vcmask 654336  }
  0x53   : > { %1129 = vrot.lane.b32.xlu0 %v1121_v34, %s6325_s28  ;;  %695 = vst [vmem:[#allocation2 + $0x34] sm:$0x1] %v694_v51  ;;  %692 = vst [vmem:[#allocation2 + $0x30] sm:$0xf] %v691_v53  ;;  %v700_v56 = vsel %vm6594_vm9, %v631_v29, %v699_v54  ;;  %v697_v57 = vsel %vm6583_vm8, %v630_v48, %v696_v55  ;;  %v702_v32 = vld [vmem:[#allocation2 + $0x40] sm:$0xf] }
  0x54   : > { %v705_v58 = vld [vmem:[#allocation2 + $0x44] sm:$0x1]  ;;  %701 = vst [vmem:[#allocation2 + $0x3c] sm:$0x1] %v700_v56  ;;  %698 = vst [vmem:[#allocation2 + $0x38] sm:$0xf] %v697_v57  ;;  %v703_v59 = vsel %vm6583_vm8, %v638_v10, %v702_v32 }
  0x55   : > { %v706_v60 = vsel %vm6594_vm9, %v639_v26, %v705_v58  ;;  %704 = vst [vmem:[#allocation2 + $0x40] sm:$0xf] %v703_v59  ;;  %vm2815_vm6 = vcmask 916480   ;;  %vm3152_vm7 = vcmask 60416   ;;  %vm3803_vm12 = vcmask 64512  }
  0x56   : > { %707 = vst [vmem:[#allocation2 + $0x44] sm:$0x1] %v706_v60 }
  0x58   : > { %v882_v30 = vld [vmem:[#allocation2 + $0x20] sm:$0xf] }
  0x5a   : > { %v894_v50 = vld [vmem:[#allocation2 + $0x30] sm:$0xf]  ;;  %v897_v57 = vld [vmem:[#allocation2 + $0x34] sm:$0x1] }
  0xa1   : > { %v813_v63 = vpop.permute.xlu0 %812 }
  0xa2   : > { %v863_v3 = vsel %vm6691_vm11, %v813_v63, %v862_v62 }
  0xa3   : > { %864 = vst [vmem:[#allocation2 + $0x8] sm:$0xf] %v863_v3  ;;  %v817_v5 = vpop.permute.xlu1 %816  ;;  %v900_v3 = vld [vmem:[#allocation2 + $0x38] sm:$0xf] }
  0xa4   : > { %v871_v11 = vsel %vm6691_vm11, %v817_v5, %v870_v2 }
  0xa5   : > { %872 = vst [vmem:[#allocation2 + $0x10] sm:$0xf] %v871_v11  ;;  %v815_v12 = vpop.permute.xlu0 %814 }
  0xa6   : > { %v868_v14 = vsel %vm6698_vm13, %v815_v12, %v867_v9 }
  0xa7   : > { %869 = vst [vmem:[#allocation2 + $0xc] sm:$0x1] %v868_v14  ;;  %v819_v18 = vpop.permute.xlu1 %818 }
  0xa8   : > { %v874_v22 = vsel %vm6698_vm13, %v819_v18, %v873_v13 }
  0xa9   : > { %875 = vst [vmem:[#allocation2 + $0x14] sm:$0x1] %v874_v22  ;;  %v821_v24 = vpop.permute.xlu0 %820 }
  0xaa   : > { %v877_v27 = vsel %vm6691_vm11, %v821_v24, %v876_v20  ;;  %v6710_v28 = vld [vmem:[#allocation2 + $0x8] sm:$0xf]  ;;  %v903_v20 = vld [vmem:[#allocation2 + $0x3c] sm:$0x1] }
  0xab   : > { %878 = vst [vmem:[#allocation2 + $0x18] sm:$0xf] %v877_v27  ;;  %v823_v16 = vpop.permute.xlu1 %822  ;;  %v5382_v0 = vcombine.low %v6710_v28, %v6710_v28  ;;  %v952_v23 = vld [vmem:[#allocation2 + $0x8] sm:$0xe] }
  0xac   : > { %v880_v33 = vsel %vm6698_vm13, %v823_v16, %v879_v25  ;;  %v977_v39 = vld [vmem:[#allocation2 + $0x10] sm:$0xe]  ;;  %v929_v48 = vld [vmem:[#allocation2 + $0x8] sm:$0xe] }
  0xad   : > { %881 = vst [vmem:[#allocation2 + $0x1c] sm:$0x1] %v880_v33  ;;  %1169 = vrot.lane.b32.xlu0 %v5382_v0, %s6326_s29  ;;  %v829_v37 = vpop.permute.xlu0 %828  ;;  %v6724_v42 = vld [vmem:[#allocation2 + $0x10] sm:$0xf] }
  0xae   : > { %v889_v38 = vsel %vm6691_vm11, %v829_v37, %v888_v31  ;;  %v6719_v52 = vld [vmem:[#allocation2 + $0xc] sm:$0x1]  ;;  %v5406_v35 = vcombine.low %v6724_v42, %v6724_v42  ;;  %v6754_v9 = vld [vmem:[#allocation2 + $0x10] sm:$0xf] }
  0xaf   : > { %v831_v40 = vpop.permute.xlu1 %830  ;;  %890 = vst [vmem:[#allocation2 + $0x28] sm:$0xf] %v889_v38  ;;  %v5398_v41 = vcombine.low %v952_v23, %v6719_v52  ;;  %v6726_v44 = vld [vmem:[#allocation2 + $0xc] sm:$0x1]  ;;  %v5383_v18 = vcombine.low %v6754_v9, %v6754_v9  ;;  %v953_v33 = vld [vmem:[#allocation2 + $0x10] sm:$0xe] }
  0xb0   : > { %v892_v29 = vsel %vm6698_vm13, %v831_v40, %v891_v36  ;;  %v6728_v43 = vld [vmem:[#allocation2 + $0x14] sm:$0x1]  ;;  %v5375_v49 = vcombine.low %v929_v48, %v6726_v44  ;;  %v906_v36 = vld [vmem:[#allocation2 + $0x40] sm:$0xf] }
  0xb1   : > { %893 = vst [vmem:[#allocation2 + $0x2c] sm:$0x1] %v892_v29  ;;  %v825_v46 = vpop.permute.xlu0 %824  ;;  %v1289_v21 = vrot.slane %v5398_v41, 1  ;;  %v5422_v47 = vcombine.low %v977_v39, %v6728_v43 }
  0xb2   : > { %v883_v26 = vsel %vm6691_vm11, %v825_v46, %v882_v30  ;;  %v6733_v34 = vld [vmem:[#allocation2 + $0x18] sm:$0xf]  ;;  %v1122_v62 = vrot.slane %v5375_v49, 1  ;;  %v6785_v46 = vld [vmem:[#allocation2 + $0x14] sm:$0x1] }
  0xb3   : > { %v827_v7 = vpop.permute.xlu1 %826  ;;  %884 = vst [vmem:[#allocation2 + $0x20] sm:$0xf] %v883_v26  ;;  %1297 = vrot.lane.b32.xlu0 %v1289_v21, %s6324_s27  ;;  %v5407_v10 = vcombine.low %v6733_v34, %v6733_v34  ;;  %v978_v54 = vld [vmem:[#allocation2 + $0x18] sm:$0xe]  ;;  %v1473_v56 = vrot.slane %v5422_v47, 1  ;;  %v5399_v48 = vcombine.low %v953_v33, %v6785_v46 }
  0xb4   : > { %v886_v51 = vsel %vm6698_vm13, %v827_v7, %v885_v45  ;;  %v6743_v53 = vld [vmem:[#allocation2 + $0x1c] sm:$0x1]  ;;  %v6747_v58 = vld [vmem:[#allocation2 + $0x18] sm:$0xf]  ;;  %v909_v45 = vld [vmem:[#allocation2 + $0x44] sm:$0x1] }
  0xb5   : > { %887 = vst [vmem:[#allocation2 + $0x24] sm:$0x1] %v886_v51  ;;  %1339 = vrot.lane.b32.xlu1 %v5407_v10, %s6325_s28  ;;  %v5423_v55 = vcombine.low %v978_v54, %v6743_v53  ;;  %v833_v32 = vpop.permute.xlu0 %832  ;;  %v5384_v14 = vcombine.low %v6747_v58, %v6747_v58  ;;  %v6768_v16 = vld [vmem:[#allocation2 + $0x1c] sm:$0x1]  ;;  %v954_v39 = vld [vmem:[#allocation2 + $0x18] sm:$0xe] }
  0xb6   : > { %v895_v59 = vsel %vm6691_vm11, %v833_v32, %v894_v50  ;;  %v980_v60 = vld [vmem:[#allocation2 + $0x28] sm:$0xe]  ;;  %v5400_v29 = vcombine.low %v954_v39, %v6768_v16  ;;  %v6793_v49 = vld [vmem:[#allocation2 + $0x1c] sm:$0x1]  ;;  %v6799_v54 = vld [vmem:[#allocation2 + $0x4c] sm:$0x1] }
  0xb7   : > { %1337 = vrot.lane.b32.xlu0 %v5406_v35, %s6325_s28  ;;  %v1474_v63 = vrot.slane %v5423_v55, 1  ;;  %v835_v2 = vpop.permute.xlu1 %834  ;;  %896 = vst [vmem:[#allocation2 + $0x30] sm:$0xf] %v895_v59  ;;  %v6756_v11 = vld [vmem:[#allocation2 + $0x28] sm:$0xf] }
  0xb8   : > { %v898_v5 = vsel %vm6698_vm13, %v835_v2, %v897_v57  ;;  %v6758_v12 = vld [vmem:[#allocation2 + $0x2c] sm:$0x1]  ;;  %v5386_v0 = vcombine.low %v6756_v11, %v6756_v11  ;;  %v6776_v38 = vld [vmem:[#allocation2 + $0x28] sm:$0xf]  ;;  %v1291_v57 = vrot.slane %v5400_v29, 1  ;;  %v6008_v2 = vld [vmem:[%s8103_s2 + $0x40] sm:$0xff]  }
  0xb9   : > { %1131 = vrot.lane.b32.xlu1 %v1122_v62, %s6325_s28  ;;  %v5432_v13 = vcombine.low %v1473_v56, %v1474_v63  ;;  %899 = vst [vmem:[#allocation2 + $0x34] sm:$0x1] %v898_v5  ;;  %v837_v22 = vpop.permute.xlu0 %836  ;;  %v5425_v24 = vcombine.low %v980_v60, %v6758_v12  ;;  %v5409_v40 = vcombine.low %v6776_v38, %v6776_v38  ;;  %v984_v55 = vld [vmem:[#allocation2 + $0x48] sm:$0xe]  ;;  %v931_v32 = vld [vmem:[#allocation2 + $0x18] sm:$0xe] }
  0xba   : > { %v901_v25 = vsel %vm6691_vm11, %v837_v22, %v900_v3  ;;  %v979_v27 = vld [vmem:[#allocation2 + $0x20] sm:$0xe]  ;;  %v930_v59 = vld [vmem:[#allocation2 + $0x10] sm:$0xe]  ;;  %v1290_v62 = vrot.slane %v5399_v48, 1  ;;  %v5377_v63 = vcombine.low %v931_v32, %v6793_v49  ;;  %v5429_v3 = vcombine.low %v984_v55, %v6799_v54  ;;  %5773 = vmatprep.subr.bf16.mxu0 %v6008_v2 }
  0xbb   : > { %5839 = vmatprep.mubr.msk.bf16.mxu1 %vm1481_vm14, %v5432_v13  ;;  %1173 = vrot.lane.b32.xlu0 %v5384_v14, %s6326_s29  ;;  %v839_v31 = vpop.permute.xlu1 %838  ;;  %902 = vst [vmem:[#allocation2 + $0x38] sm:$0xf] %v901_v25  ;;  %v1476_v41 = vrot.slane %v5425_v24, 1  ;;  %v6791_v35 = vld [vmem:[#allocation2 + $0x20] sm:$0xf] }
  0xbc   : > { %v904_v37 = vsel %vm6698_vm13, %v839_v31, %v903_v20  ;;  %v6778_v23 = vld [vmem:[#allocation2 + $0x24] sm:$0x1]  ;;  %v5408_v8 = vcombine.low %v6791_v35, %v6791_v35  ;;  %v6812_v5 = vld [vmem:[#allocation2 + $0x14] sm:$0x1]  ;;  %v956_v22 = vld [vmem:[#allocation2 + $0x28] sm:$0xe] }
  0xbd   : > { %1171 = vrot.lane.b32.xlu1 %v5383_v18, %s6326_s29  ;;  %905 = vst [vmem:[#allocation2 + $0x3c] sm:$0x1] %v904_v37  ;;  %v5424_v30 = vcombine.low %v979_v27, %v6778_v23  ;;  %v841_v47 = vpop.permute.xlu0 %840  ;;  %v5376_v14 = vcombine.low %v930_v59, %v6812_v5  ;;  %v6009_v24 = vld [vmem:[%s8103_s2] sm:$0xff]   ;;  %v1124_v25 = vrot.slane %v5377_v63, 1  ;;  %v1480_v31 = vrot.slane %v5429_v3, 1  ;;  %v6010_v37 = vld [vmem:[%s8103_s2 + $0x48] sm:$0xff]  }
  0xbe   : > { %v981_v21 = vld [vmem:[#allocation2 + $0x30] sm:$0xe]  ;;  %v907_v7 = vsel %vm6691_vm11, %v841_v47, %v906_v36  ;;  %v6823_v33 = vld [vmem:[#allocation2 + $0x2c] sm:$0x1]  ;;  %5774 = vmatpush3.bf16.msra.mxu0 %v6009_v24  ;;  %v6833_v29 = vld [vmem:[#allocation2 + $0x20] sm:$0xf] }
  0xbf   : > { %1177 = vrot.lane.b32.xlu0 %v5386_v0, %s6326_s29  ;;  %v1475_v26 = vrot.slane %v5424_v30, 1  ;;  %v843_v10 = vpop.permute.xlu1 %842  ;;  %908 = vst [vmem:[#allocation2 + $0x40] sm:$0xf] %v907_v7  ;;  %v1123_v39 = vrot.slane %v5376_v14, 1  ;;  %5775 = vmatprep.subr.bf16.mxu0 %v6010_v37  ;;  %v933_v7 = vld [vmem:[#allocation2 + $0x28] sm:$0xe] }
  0xc0   : > { %v6795_v50 = vld [vmem:[#allocation2 + $0x34] sm:$0x1]  ;;  %v910_v51 = vsel %vm6698_vm13, %v843_v10, %v909_v45  ;;  %v6011_v45 = vld [vmem:[%s8103_s2 + $0x8] sm:$0xff]   ;;  %v6015_v3 = vld [vmem:[%s8103_s2 + $0x58] sm:$0xff]   ;;  %vm4012_vm11 = vcmask 1043456   ;;  %vm3844_vm13 = vcmask 195584  }
  0xc1   : > { %1343 = vrot.lane.b32.xlu1 %v5409_v40, %s6325_s28  ;;  %v5435_v56 = vcombine.low %v1475_v26, %v1476_v41  ;;  %v5426_v61 = vcombine.low %v981_v21, %v6795_v50  ;;  %911 = vst [vmem:[#allocation2 + $0x44] sm:$0x1] %v910_v51  ;;  %v5402_v40 = vcombine.low %v956_v22, %v6823_v33  ;;  %v6012_v26 = vld [vmem:[%s8103_s2 + $0x50] sm:$0xff]   ;;  %v6855_v32 = vld [vmem:[#allocation2 + $0x8] sm:$0xf]  ;;  %v6018_v24 = vld [vmem:[%s8103_s2 + $0x60] sm:$0xff]  }
  0xc2   : > { %v982_v60 = vld [vmem:[#allocation2 + $0x38] sm:$0xe]  ;;  %v5385_v21 = vcombine.low %v6833_v29, %v6833_v29  ;;  %5776 = vmatpush3.bf16.msra.mxu0 %v6011_v45  ;;  %v6013_v10 = vld [vmem:[%s8103_s2 + $0x10] sm:$0xff]   ;;  %v6022_v45 = vld [vmem:[%s8103_s2 + $0x28] sm:$0xff]  }
  0xc3   : > { %5840 = vmatmul.mubr.msk.bf16.vlgmr.msra.gmra.mrb[0].mxu1 %vm1481_vm14, %v5435_v56  ;;  %1301 = vrot.lane.b32.xlu0 %v1291_v57, %s6324_s27  ;;  %v1477_v20 = vrot.slane %v5426_v61, 1  ;;  %v6845_v48 = vld [vmem:[#allocation2 + $0x38] sm:$0xf]  ;;  %v1293_v51 = vrot.slane %v5402_v40, 1  ;;  %v6853_v57 = vld [vmem:[#allocation2 + $0x2c] sm:$0x1] }
  0xc4   : > { %v6814_v13 = vld [vmem:[#allocation2 + $0x3c] sm:$0x1]  ;;  %v5411_v55 = vcombine.low %v6845_v48, %v6845_v48  ;;  %5777 = vmatprep.subr.bf16.mxu0 %v6012_v26  ;;  %v932_v61 = vld [vmem:[#allocation2 + $0x20] sm:$0xe]  ;;  %v5379_v59 = vcombine.low %v933_v7, %v6853_v57  ;;  %v958_v14 = vld [vmem:[#allocation2 + $0x38] sm:$0xe]  ;;  %v5414_v26 = vcombine.low %v6724_v42, %v6728_v43 }
  0xc5   : > { %1299 = vrot.lane.b32.xlu1 %v1290_v62, %s6324_s27  ;;  %v5427_v18 = vcombine.low %v982_v60, %v6814_v13  ;;  %v5367_v60 = vcombine.low %v6855_v32, %v6726_v44  ;;  %v6862_v62 = vld [vmem:[#allocation2 + $0x30] sm:$0xf]  ;;  %v6016_v44 = vld [vmem:[%s8103_s2 + $0x18] sm:$0xff]   ;;  %v955_v40 = vld [vmem:[#allocation2 + $0x20] sm:$0xe] }
  0xc6   : > { %v983_v0 = vld [vmem:[#allocation2 + $0x40] sm:$0xe]  ;;  %5778 = vmatpush3.bf16.msra.mxu0 %v6013_v10  ;;  %v5410_v63 = vcombine.low %v6862_v62, %v6862_v62  ;;  %v6877_v22 = vld [vmem:[#allocation2 + $0x3c] sm:$0x1]  ;;  %v6903_v7 = vld [vmem:[#allocation2 + $0x24] sm:$0x1] }
  0xc7   : > { %1341 = vrot.lane.b32.xlu0 %v5408_v8, %s6325_s28  ;;  %v1478_v27 = vrot.slane %v5427_v18, 1  ;;  %v6864_v8 = vld [vmem:[#allocation2 + $0x24] sm:$0x1]  ;;  %v1126_v18 = vrot.slane %v5379_v59, 1  ;;  %5779 = vmatprep.subr.bf16.mxu0 %v6015_v3  ;;  %v934_v10 = vld [vmem:[#allocation2 + $0x30] sm:$0xe] }
  0xc8   : > { %v6825_v36 = vld [vmem:[#allocation2 + $0x44] sm:$0x1]  ;;  %v5378_v2 = vcombine.low %v932_v61, %v6864_v8  ;;  %v5401_v61 = vcombine.low %v955_v40, %v6903_v7  ;;  %v6023_v59 = vld [vmem:[%s8103_s2 + $0x70] sm:$0xff]   ;;  %v5416_v40 = vcombine.low %v6791_v35, %v6778_v23 }
  0xc9   : > { %1135 = vrot.lane.b32.xlu1 %v1124_v25, %s6325_s28  ;;  %v5438_v30 = vcombine.low %v1477_v20, %v1478_v27  ;;  %v5428_v41 = vcombine.low %v983_v0, %v6825_v36  ;;  %v1035_v20 = vshll.u32 %v5367_v60, 16  ;;  %v6019_v25 = vld [vmem:[%s8103_s2 + $0x20] sm:$0xff]   ;;  %v5404_v0 = vcombine.low %v958_v14, %v6877_v22  ;;  %v957_v42 = vld [vmem:[#allocation2 + $0x30] sm:$0xe] }
  0xca   : > { %5780 = vmatpush3.bf16.msra.mxu0 %v6016_v44  ;;  %v1125_v27 = vrot.slane %v5378_v2, 1  ;;  %v6024_v43 = vld [vmem:[%s8103_s2 + $0x30] sm:$0xff]   ;;  %v1380_v2 = vshll.u32 %v5414_v26, 16  ;;  %v1292_v14 = vrot.slane %v5401_v61, 1 }
  0xcb   : > { %1133 = vrot.lane.b32.xlu0 %v1123_v39, %s6325_s28  ;;  %5843 = vmatprep.mubr.msk.bf16.mxu1 %vm1481_vm14, %v5438_v30  ;;  %v1479_v47 = vrot.slane %v5428_v41, 1  ;;  %v1037_v39 = vrot.slane %v1035_v20, 1  ;;  %v6892_v30 = vld [vmem:[#allocation2 + $0x40] sm:$0xf]  ;;  %v6021_v41 = vld [vmem:[%s8103_s2 + $0x68] sm:$0xff]   ;;  %v5415_v20 = vcombine.low %v6733_v34, %v6743_v53 }
  0xcc   : > { %5781 = vmatprep.subr.bf16.mxu0 %v6018_v24  ;;  %v6920_v44 = vld [vmem:[#allocation2 + $0x34] sm:$0x1]  ;;  %v6025_v24 = vld [vmem:[%s8103_s2 + $0x78] sm:$0xff]   ;;  %v6935_v34 = vld [vmem:[#allocation2 + $0x20] sm:$0xf] }
  0xcd   : > { %1175 = vrot.lane.b32.xlu1 %v5385_v21, %s6326_s29  ;;  %v5441_v56 = vcombine.low %v1479_v47, %v1480_v31  ;;  %v6887_v31 = vld [vmem:[#allocation2 + $0x30] sm:$0xf]  ;;  %v1295_v21 = vrot.slane %v5404_v0, 1  ;;  %v1033_v47 = vshrl.u32 %v5367_v60, 16  ;;  %v926_v60 = vld [vmem:[#allocation2 + $0x34] sm:$0x1] }
  0xce   : > { %v5387_v37 = vcombine.low %v6887_v31, %v6887_v31  ;;  %5782 = vmatpush3.bf16.msra.mxu0 %v6019_v25  ;;  %v1378_v25 = vshrl.u32 %v5414_v26, 16  ;;  %v6937_v53 = vld [vmem:[#allocation2 + $0x3c] sm:$0x1] }
  0xcf   : > { %1305 = vrot.lane.b32.xlu0 %v1293_v51, %s6324_s27  ;;  %5844 = vmatmul.mubr.msk.bf16.gmra.mrb[4].mxu1 %vm1481_vm14, %v5441_v56  ;;  %v6905_v51 = vld [vmem:[#allocation2 + $0x10] sm:$0xf]  ;;  %v5412_v56 = vcombine.low %v6892_v30, %v6892_v30 }
  0xd0   : > { %5783 = vmatprep.subr.bf16.mxu0 %v6021_v41  ;;  %v5368_v3 = vcombine.low %v6905_v51, %v6812_v5  ;;  %v6026_v5 = vld [vmem:[%s8103_s2 + $0x38] sm:$0xff]  }
  0xd1   : > { %1347 = vrot.lane.b32.xlu1 %v5411_v55, %s6325_s28  ;;  %v1038_v55 = vor.u32 %v1037_v39, %v1033_v47  ;;  %v6939_v41 = vld [vmem:[#allocation2 + $0x18] sm:$0xf]  ;;  %v1387_v47 = vshll.u32 %v5415_v20, 16 }
  0xd2   : > { %5784 = vmatpush3.bf16.msra.mxu0 %v6022_v45  ;;  %v1042_v39 = vshll.u32 %v5368_v3, 16  ;;  %v5369_v26 = vcombine.low %v6939_v41, %v6793_v49  ;;  %v1040_v35 = vshrl.u32 %v5368_v3, 16  ;;  %v5418_v49 = vcombine.low %v6862_v62, %v6795_v50 }
  0xd3   : > { %1345 = vrot.lane.b32.xlu0 %v5410_v63, %s6325_s28  ;;  %v5380_v63 = vcombine.low %v934_v10, %v926_v60  ;;  %5785 = vmatprep.subr.bf16.mxu0 %v6023_v59  ;;  %v5370_v10 = vcombine.low %v6935_v34, %v6864_v8  ;;  %v1389_v59 = vrot.slane %v1387_v47, 1  ;;  %v6953_v8 = vld [vmem:[#allocation2 + $0x28] sm:$0xf]  ;;  %v1392_v3 = vshrl.u32 %v5416_v40, 16 }
  0xd4   : > { %v1406_v47 = vshrl.u32 %v5418_v49, 16 }
  0xd5   : > { %1139 = vrot.lane.b32.xlu1 %v1126_v18, %s6325_s28  ;;  %v5403_v18 = vcombine.low %v957_v42, %v6920_v44  ;;  %v1127_v0 = vrot.slane %v5380_v63, 1  ;;  %v1049_v42 = vshll.u32 %v5369_v26, 16  ;;  %v1385_v63 = vshrl.u32 %v5415_v20, 16 }
  0xd6   : > { %5786 = vmatpush3.bf16.msra.mxu0 %v6024_v43  ;;  %v5417_v43 = vcombine.low %v6776_v38, %v6758_v12  ;;  %v5371_v12 = vcombine.low %v6953_v8, %v6853_v57  ;;  %v1047_v38 = vshrl.u32 %v5369_v26, 16  ;;  %v1054_v20 = vshrl.u32 %v5370_v10, 16 }
  0xd7   : > { %1137 = vrot.lane.b32.xlu0 %v1125_v27, %s6325_s28  ;;  %v935_v27 = vld [vmem:[#allocation2 + $0x38] sm:$0xe]  ;;  %5787 = vmatprep.subr.bf16.mxu0 %v6025_v24  ;;  %v1294_v45 = vrot.slane %v5403_v18, 1  ;;  %v1056_v18 = vshll.u32 %v5370_v10, 16  ;;  %v6956_v24 = vld [vmem:[#allocation2 + $0x30] sm:$0xf] }
  0xd8   : > { %v5372_v50 = vcombine.low %v6956_v24, %v926_v60  ;;  %v5420_v60 = vcombine.low %v6892_v30, %v6825_v36 }
  0xd9   : > { %1179 = vrot.lane.b32.xlu1 %v5387_v37, %s6326_s29  ;;  %v1382_v37 = vrot.slane %v1380_v2, 1 }
  0xda   : > { %5788 = vmatpush3.bf16.msra.mxu0 %v6026_v5  ;;  %v1401_v5 = vshll.u32 %v5417_v43, 16  ;;  %v1070_v26 = vshll.u32 %v5372_v50, 16 }
  0xdb   : > { %1309 = vrot.lane.b32.xlu0 %v1295_v21, %s6324_s27  ;;  %v5381_v21 = vcombine.low %v935_v27, %v6937_v53  ;;  %v1383_v23 = vor.u32 %v1382_v37, %v1378_v25  ;;  %v1390_v25 = vor.u32 %v1389_v59, %v1385_v63  ;;  %v1051_v27 = vrot.slane %v1049_v42, 1  ;;  %v959_v59 = vld [vmem:[#allocation2 + $0x40] sm:$0xe] }
  0xdc   : > { %v1408_v37 = vshll.u32 %v5418_v49, 16  ;;  %v1072_v63 = vrot.slane %v1070_v26, 1  ;;  %v1422_v49 = vshll.u32 %v5420_v60, 16 }
  0xdd   : > { %1083 = vrot.lane.b32.xlu1 %v1038_v55, %s6324_s27  ;;  %v1044_v55 = vrot.slane %v1042_v39, 1  ;;  %v1128_v61 = vrot.slane %v5381_v21, 1  ;;  %v1052_v39 = vor.u32 %v1051_v27, %v1047_v38  ;;  %v1063_v21 = vshll.u32 %v5371_v12, 16 }
  0xde   : > { %v1410_v57 = vrot.slane %v1408_v37, 1 }
  0xdf   : > { %1349 = vrot.lane.b32.xlu0 %v5412_v56, %s6325_s28  ;;  %v1394_v56 = vshll.u32 %v5416_v40, 16  ;;  %v1045_v2 = vor.u32 %v1044_v55, %v1040_v35  ;;  %v1399_v40 = vshrl.u32 %v5417_v43, 16  ;;  %v1061_v35 = vshrl.u32 %v5371_v12, 16 }
  0xe0   : > { %v1065_v55 = vrot.slane %v1063_v21, 1  ;;  %v1411_v42 = vor.u32 %v1410_v57, %v1406_v47  ;;  %v1068_v43 = vshrl.u32 %v5372_v50, 16  ;;  %v6993_v21 = vld [vmem:[#allocation2 + $0x40] sm:$0xf] }
  0xe1   : > { %1303 = vrot.lane.b32.xlu1 %v1292_v14, %s6324_s27  ;;  %v1396_v14 = vrot.slane %v1394_v56, 1  ;;  %v5419_v56 = vcombine.low %v6845_v48, %v6814_v13  ;;  %v1424_v13 = vrot.slane %v1422_v49, 1  ;;  %v5389_v47 = vcombine.low %v6993_v21, %v6993_v21 }
  0xe2   : > { %v1066_v36 = vor.u32 %v1065_v55, %v1061_v35 }
  0xe3   : > { %1141 = vrot.lane.b32.xlu0 %v1127_v0, %s6325_s28  ;;  %v1397_v62 = vor.u32 %v1396_v14, %v1392_v3  ;;  %v1058_v0 = vrot.slane %v1056_v18, 1  ;;  %v1415_v3 = vshll.u32 %v5419_v56, 16  ;;  %v6977_v14 = vld [vmem:[#allocation2 + $0x38] sm:$0xf] }
  0xe5   : > { %1307 = vrot.lane.b32.xlu1 %v1294_v45, %s6324_s27  ;;  %v1403_v45 = vrot.slane %v1401_v5, 1  ;;  %v1417_v27 = vrot.slane %v1415_v3, 1  ;;  %v5373_v5 = vcombine.low %v6977_v14, %v6937_v53 }
  0xe7   : > { %1433 = vrot.lane.b32.xlu0 %v1383_v23, %s6326_s29  ;;  %v1059_v23 = vor.u32 %v1058_v0, %v1054_v20  ;;  %v1404_v10 = vor.u32 %v1403_v45, %v1399_v40  ;;  %v1077_v20 = vshll.u32 %v5373_v5, 16  ;;  %v6985_v0 = vld [vmem:[#allocation2 + $0x38] sm:$0xf]  ;;  %v1075_v53 = vshrl.u32 %v5373_v5, 16 }
  0xe8   : > { %v5388_v37 = vcombine.low %v6985_v0, %v6985_v0 }
  0xe9   : > { %1143 = vrot.lane.b32.xlu1 %v1128_v61, %s6325_s28  ;;  %v5421_v61 = vcombine.low %v6643_v19, %v6799_v54  ;;  %v1073_v19 = vor.u32 %v1072_v63, %v1068_v43  ;;  %v1420_v54 = vshrl.u32 %v5420_v60, 16  ;;  %v1079_v40 = vrot.slane %v1077_v20, 1  ;;  %v7000_v60 = vpop.permute.xlu1 %1351 }
  0xeb   : > { %1085 = vrot.lane.b32.xlu0 %v1045_v2, %s6324_s27  ;;  %v6973_v2 = vld [vmem:[#allocation2 + $0x44] sm:$0x1]  ;;  %v1429_v48 = vshll.u32 %v5421_v61, 16  ;;  %v1425_v12 = vor.u32 %v1424_v13, %v1420_v54  ;;  %v1427_v38 = vshrl.u32 %v5421_v61, 16  ;;  %v1080_v45 = vor.u32 %v1079_v40, %v1075_v53 }
  0xec   : > { %v5405_v30 = vcombine.low %v959_v59, %v6973_v2 }
  0xed   : > { %1435 = vrot.lane.b32.xlu1 %v1390_v25, %s6326_s29  ;;  %v1413_v25 = vshrl.u32 %v5419_v56, 16  ;;  %v1431_v50 = vrot.slane %v1429_v48, 1 }
  0xee   : > { %v1296_v18 = vrot.slane %v5405_v30, 1 }
  0xef   : > { %1437 = vrot.lane.b32.xlu0 %v1397_v62, %s6326_s29  ;;  %v1418_v62 = vor.u32 %v1417_v27, %v1413_v25 }
  0xf1   : > { %1087 = vrot.lane.b32.xlu1 %v1052_v39, %s6324_s27  ;;  %v1432_v39 = vor.u32 %v1431_v50, %v1427_v38  ;;  %v5390_v50 = vcombine.low %v6710_v28, %v6719_v52 }
  0xf3   : > { %1089 = vrot.lane.b32.xlu0 %v1059_v23, %s6324_s27  ;;  %v1082_v23 = vpop.permute.xlu0 %1081 }
  0xf5   : > { %1439 = vrot.lane.b32.xlu1 %v1404_v10, %s6326_s29 }
  0xf7   : > { %1441 = vrot.lane.b32.xlu0 %v1411_v42, %s6326_s29  ;;  %v1130_v57 = vpop.permute.xlu0 %1129 }
  0xf9   : > { %1091 = vrot.lane.b32.xlu1 %v1066_v36, %s6324_s27 }
  0xfb   : > { %1093 = vrot.lane.b32.xlu0 %v1073_v19, %s6324_s27 }
  0xfd   : > { %1311 = vrot.lane.b32.xlu1 %v1296_v18, %s6324_s27 }
  0xff   : > { %1445 = vrot.lane.b32.xlu0 %v1425_v12, %s6326_s29  ;;  %v5391_v12 = vcombine.low %v6754_v9, %v6785_v46  ;;  %v5392_v9 = vcombine.low %v6747_v58, %v6768_v16  ;;  %v1210_v46 = vshrl.u32 %v5390_v50, 16 }
 0x101   : > { %1443 = vrot.lane.b32.xlu1 %v1418_v62, %s6326_s29  ;;  %v1219_v20 = vshll.u32 %v5391_v12, 16  ;;  %v1217_v40 = vshrl.u32 %v5391_v12, 16  ;;  %v1484_v12 = vsel %vm1481_vm14, %v6253_v15, %v1082_v23 }
 0x102   : > { %v1508_v16 = vsel %vm1506_vm15, %v1484_v12, %v1130_v57 }
 0x103   : > { %1181 = vrot.lane.b32.xlu0 %v5388_v37, %s6326_s29 }
 0x105   : > { %1447 = vrot.lane.b32.xlu1 %v1432_v39, %s6326_s29  ;;  %v1212_v39 = vshll.u32 %v5390_v50, 16 }
 0x107   : > { %v1214_v4 = vrot.slane %v1212_v39, 1 }
 0x109   : > { %1095 = vrot.lane.b32.xlu1 %v1080_v45, %s6324_s27  ;;  %v1221_v45 = vrot.slane %v1219_v20, 1 }
 0x10b   : > { %v1222_v6 = vor.u32 %v1221_v45, %v1217_v40 }
 0x10d   : > { %1183 = vrot.lane.b32.xlu1 %v5389_v47, %s6326_s29  ;;  %v5393_v47 = vcombine.low %v6833_v29, %v6903_v7  ;;  %v1215_v29 = vor.u32 %v1214_v4, %v1210_v46  ;;  %v1226_v7 = vshll.u32 %v5392_v9, 16 }
 0x10f   : > { %v1233_v17 = vshll.u32 %v5393_v47, 16  ;;  %v1228_v45 = vrot.slane %v1226_v7, 1 }
 0x111   : > { %v1235_v50 = vrot.slane %v1233_v17, 1  ;;  %v5395_v17 = vcombine.low %v6887_v31, %v6920_v44 }
 0x11f   : > { %v6998_v26 = vpop.permute.xlu0 %1169 }
 0x125   : > { %v1298_v10 = vpop.permute.xlu0 %1297 }
 0x127   : > { %v1340_v35 = vpop.permute.xlu1 %1339 }
 0x129   : > { %v1338_v55 = vpop.permute.xlu0 %1337 }
 0x12b   : > { %v1132_v56 = vpop.permute.xlu1 %1131 }
 0x12d   : > { %v7002_v61 = vpop.permute.xlu0 %1173 }
 0x12f   : > { %v1172_v59 = vpop.permute.xlu1 %1171 }
 0x131   : > { %v7004_v42 = vpop.permute.xlu0 %1177 }
 0x133   : > { %v7006_v43 = vpop.permute.xlu1 %1343 }
 0x135   : > { %v7008_v63 = vpop.permute.xlu0 %1301 }
 0x137   : > { %v1300_v49 = vpop.permute.xlu1 %1299 }
 0x138   : > { %v1545_v39 = vsel %vm1481_vm14, %v1222_v6, %v1300_v49  ;;  %v1525_v49 = vsel %vm1523_vm0, %v1508_v16, %v6998_v26 }
 0x139   : > { %v7010_v36 = vpop.permute.xlu0 %1341  ;;  %v1567_v23 = vsel %vm1506_vm15, %v1545_v39, %v1340_v35 }
 0x13b   : > { %v7012_v30 = vpop.permute.xlu1 %1135 }
 0x13d   : > { %v7014_v3 = vpop.permute.xlu0 %1133 }
 0x13f   : > { %v7016_v19 = vpop.permute.xlu1 %1175 }
 0x141   : > { %v7018_v54 = vpop.permute.xlu0 %1305 }
 0x143   : > { %v7020_v13 = vpop.permute.xlu1 %1347 }
 0x145   : > { %v7022_v48 = vpop.permute.xlu0 %1345 }
 0x147   : > { %v7024_v18 = vpop.permute.xlu1 %1139 }
 0x149   : > { %v7026_v25 = vpop.permute.xlu0 %1137 }
 0x14b   : > { %v7028_v27 = vpop.permute.xlu1 %1179 }
 0x14d   : > { %v7030_v5 = vpop.permute.xlu0 %1309 }
 0x14f   : > { %v1084_v38 = vpop.permute.xlu1 %1083 }
 0x150   : > { %v1487_v28 = vsel %vm1481_vm14, %v6855_v32, %v1084_v38  ;;  %v1542_v32 = vsel %vm1481_vm14, %v1215_v29, %v1298_v10  ;;  %v1231_v38 = vshrl.u32 %v5393_v47, 16  ;;  %v1224_v10 = vshrl.u32 %v5392_v9, 16 }
 0x151   : > { %v7036_v62 = vpop.permute.xlu0 %1349  ;;  %v1565_v40 = vsel %vm1506_vm15, %v1542_v32, %v1338_v55 }
 0x152   : > { %v1236_v47 = vor.u32 %v1235_v50, %v1231_v38 }
 0x153   : > { %v1304_v37 = vpop.permute.xlu1 %1303 }
 0x154   : > { %v1551_v46 = vsel %vm1481_vm14, %v1236_v47, %v1304_v37 }
 0x155   : > { %v7038_v53 = vpop.permute.xlu0 %1141 }
 0x156   : > { %8137 = vst [vmem:[#allocation10_spill] sm:$0xff] %v7038_v53  ;;  %v1510_v53 = vsel %vm1506_vm15, %v1487_v28, %v1132_v56 }
 0x157   : > { %v7042_v1 = vpop.permute.xlu1 %1307  ;;  %v1527_v4 = vsel %vm1523_vm0, %v1510_v53, %v1172_v59  ;;  %v1229_v53 = vor.u32 %v1228_v45, %v1224_v10 }
 0x158   : > { %v5430_v55 = vcombine.low %v1525_v49, %v1527_v4 }
 0x159   : > { %v1434_v52 = vpop.permute.xlu0 %1433  ;;  %v1548_v44 = vsel %vm1481_vm14, %v1229_v53, %v7008_v63  ;;  %v5396_v63 = vcombine.low %v6985_v0, %v6877_v22 }
 0x15a   : > { %v1581_v6 = vsel %vm1523_vm0, %v1565_v40, %v1434_v52  ;;  %v5394_v52 = vcombine.low %v6756_v11, %v6823_v33  ;;  %v5397_v11 = vcombine.low %v6993_v21, %v6973_v2  ;;  %v1569_v33 = vsel %vm1506_vm15, %v1548_v44, %v7010_v36 }
 0x15b   : > { %v7049_v20 = vpop.permute.xlu1 %1143  ;;  %v1245_v36 = vshrl.u32 %v5395_v17, 16  ;;  %v1254_v50 = vshll.u32 %v5396_v63, 16 }
 0x15c   : > { %v1240_v29 = vshll.u32 %v5394_v52, 16  ;;  %v1261_v16 = vshll.u32 %v5397_v11, 16  ;;  %v1259_v40 = vshrl.u32 %v5397_v11, 16 }
 0x15d   : > { %v1086_v58 = vpop.permute.xlu0 %1085 }
 0x15e   : > { %v1490_v35 = vsel %vm1481_vm14, %v6905_v51, %v1086_v58  ;;  %v1247_v51 = vshll.u32 %v5395_v17, 16  ;;  %v1242_v38 = vrot.slane %v1240_v29, 1 }
 0x15f   : > { %v1436_v15 = vpop.permute.xlu1 %1435  ;;  %v1512_v12 = vsel %vm1506_vm15, %v1490_v35, %v7014_v3 }
 0x160   : > { %v1583_v56 = vsel %vm1523_vm0, %v1567_v23, %v1436_v15  ;;  %v1529_v21 = vsel %vm1523_vm0, %v1512_v12, %v7002_v61  ;;  %v1249_v58 = vrot.slane %v1247_v51, 1  ;;  %v1263_v15 = vrot.slane %v1261_v16, 1  ;;  %v8138_v51 = vld [vmem:[#allocation10_spill] sm:$0xff] }
 0x161   : > { %v1438_v57 = vpop.permute.xlu0 %1437  ;;  %v5431_v28 = vcombine.low %v1581_v6, %v1583_v56  ;;  %v1252_v23 = vshrl.u32 %v5396_v63, 16  ;;  %v1256_v56 = vrot.slane %v1254_v50, 1 }
 0x162   : > { %v1585_v7 = vsel %vm1523_vm0, %v1569_v33, %v1438_v57  ;;  %v1250_v0 = vor.u32 %v1249_v58, %v1245_v36  ;;  %v1264_v10 = vor.u32 %v1263_v15, %v1259_v40 }
 0x163   : > { %v1088_v59 = vpop.permute.xlu1 %1087  ;;  %1844 = vmatprep.mubr.bf16.mxu0 %v5431_v28 }
 0x164   : > { %v1493_v26 = vsel %vm1481_vm14, %v6939_v41, %v1088_v59  ;;  %1845 = vmatmul.mubr.bf16.vlgmr.msra.gmra.mrb[0].mxu0 %v5430_v55  ;;  %v1571_v41 = vsel %vm1506_vm15, %v1551_v46, %v7006_v43  ;;  %v1557_v49 = vsel %vm1481_vm14, %v1250_v0, %v7042_v1  ;;  %v1257_v55 = vor.u32 %v1256_v56, %v1252_v23 }
 0x165   : > { %v1514_v9 = vsel %vm1506_vm15, %v1493_v26, %v7012_v30  ;;  %v1090_v31 = vpop.permute.xlu0 %1089  ;;  %v1575_v47 = vsel %vm1506_vm15, %v1557_v49, %v7020_v13 }
 0x166   : > { %v1531_v30 = vsel %vm1523_vm0, %v1514_v9, %v7016_v19  ;;  %v1238_v19 = vshrl.u32 %v5394_v52, 16  ;;  %v1496_v61 = vsel %vm1481_vm14, %v6935_v34, %v1090_v31 }
 0x167   : > { %v1440_v37 = vpop.permute.xlu1 %1439  ;;  %v5433_v43 = vcombine.low %v1529_v21, %v1531_v30  ;;  %v1516_v28 = vsel %vm1506_vm15, %v1496_v61, %v7026_v25  ;;  %v7153_v61 = vld [vmem:[%s8104_s3] ss:$0 sm:$0xff] }
 0x168   : > { %v1587_v3 = vsel %vm1523_vm0, %v1571_v41, %v1440_v37  ;;  %v1243_v6 = vor.u32 %v1242_v38, %v1238_v19  ;;  %v1533_v53 = vsel %vm1523_vm0, %v1516_v28, %v7004_v42  ;;  %v7144_v19 = vld [vmem:[#allocation2 + $0x48] sm:$0xf] }
 0x169   : > { %v5434_v39 = vcombine.low %v1585_v7, %v1587_v3  ;;  %v1442_v2 = vpop.permute.xlu0 %1441  ;;  %v5520_v50 = vcombine.low %v7144_v19, %v7144_v19 }
 0x16b   : > { %v1092_v32 = vpop.permute.xlu1 %1091  ;;  %1852 = vmatprep.mubr.bf16.mxu0 %v5434_v39  ;;  %2578 = vrot.lane.b32.xlu1 %v5520_v50, %s6326_s29 }
 0x16c   : > { %1853 = vmatmul.mubr.bf16.gmra.mrb[4].mxu0 %v5433_v43  ;;  %v1499_v22 = vsel %vm1481_vm14, %v6953_v8, %v1092_v32  ;;  %v1554_v8 = vsel %vm1481_vm14, %v1243_v6, %v7018_v54  ;;  %v2140_v32 = vld [vmem:[#allocation2] sm:$0xe] }
 0x16d   : > { %v1094_v4 = vpop.permute.xlu0 %1093  ;;  %v1518_v57 = vsel %vm1506_vm15, %v1499_v22, %v7024_v18  ;;  %v1573_v34 = vsel %vm1506_vm15, %v1554_v8, %v7022_v48  ;;  %v1560_v48 = vsel %vm1481_vm14, %v1257_v55, %v7030_v5 }
 0x16e   : > { %v1535_v1 = vsel %vm1523_vm0, %v1518_v57, %v7028_v27  ;;  %v1589_v18 = vsel %vm1523_vm0, %v1573_v34, %v1442_v2  ;;  %v1577_v52 = vsel %vm1506_vm15, %v1560_v48, %v7036_v62  ;;  %v1502_v42 = vsel %vm1481_vm14, %v6956_v24, %v1094_v4  ;;  %v2132_v2 = vld [vmem:[#allocation2 + $0x4] sm:$0x1] }
 0x16f   : > { %v1312_v45 = vpop.permute.xlu1 %1311  ;;  %v5436_v13 = vcombine.low %v1533_v53, %v1535_v1  ;;  %v1520_v12 = vsel %vm1506_vm15, %v1502_v42, %v8138_v51  ;;  %v5481_v38 = vcombine.low %v2140_v32, %v2132_v2  ;;  %v6087_v32 = vld [vmem:[%s8105_s4] sm:$0xff]  }
 0x170   : > { %v1563_v35 = vsel %vm1481_vm14, %v1264_v10, %v1312_v45  ;;  %2953 = vmatpush1.bf16.msra.mxu1 %v6087_v32  ;;  %v6089_v32 = vld [vmem:[%s8105_s4 + $0x10] sm:$0xff]  }
 0x171   : > { %v1446_v59 = vpop.permute.xlu0 %1445  ;;  %v1579_v46 = vsel %vm1506_vm15, %v1563_v35, %v7000_v60  ;;  %v2332_v22 = vrot.slane %v5481_v38, 1 }
 0x172   : > { %v1593_v26 = vsel %vm1523_vm0, %v1577_v52, %v1446_v59 }
 0x173   : > { %v1444_v17 = vpop.permute.xlu1 %1443 }
 0x174   : > { %v1591_v54 = vsel %vm1523_vm0, %v1575_v47, %v1444_v17 }
 0x175   : > { %v5437_v25 = vcombine.low %v1589_v18, %v1591_v54  ;;  %v1182_v62 = vpop.permute.xlu0 %1181 }
 0x176   : > { %v1537_v33 = vsel %vm1523_vm0, %v1520_v12, %v1182_v62 }
 0x177   : > { %1860 = vmatprep.mubr.bf16.mxu0 %v5437_v25  ;;  %v1448_v27 = vpop.permute.xlu1 %1447 }
 0x178   : > { %v1595_v9 = vsel %vm1523_vm0, %v1579_v46, %v1448_v27  ;;  %1861 = vmatmul.mubr.bf16.gmra.mrb[8].mxu0 %v5436_v13 }
 0x179   : > { %v5440_v31 = vcombine.low %v1593_v26, %v1595_v9 }
 0x17b   : > { %v1096_v44 = vpop.permute.xlu1 %1095  ;;  %1868 = vmatprep.mubr.bf16.mxu0 %v5440_v31 }
 0x17c   : > { %v1505_v5 = vsel %vm1481_vm14, %v6977_v14, %v1096_v44  ;;  %v2079_v44 = vld [vmem:[#allocation2 + $0xc] sm:$0x1] }
 0x17d   : > { %v1522_v60 = vsel %vm1506_vm15, %v1505_v5, %v7049_v20  ;;  %v7140_v20 = vld [vmem:[#allocation2] sm:$0xf]  ;;  %v6254_v5 = vld [vmem:[#allocation2 + $0x8] sm:$0xf] }
 0x17e   : > { %v5473_v21 = vcombine.low %v7140_v20, %v2132_v2 }
 0x17f   : > { %v1184_v11 = vpop.permute.xlu1 %1183 }
 0x180   : > { %v1539_v41 = vsel %vm1523_vm0, %v1522_v60, %v1184_v11  ;;  %v2237_v36 = vshrl.u32 %v5473_v21, 16  ;;  %v2239_v58 = vshll.u32 %v5473_v21, 16 }
 0x181   : > { %v5439_v37 = vcombine.low %v1537_v33, %v1539_v41  ;;  %v2082_v41 = vld [vmem:[#allocation2 + $0x10] sm:$0xf] }
 0x182   : > { %v2241_v43 = vrot.slane %v2239_v58, 1 }
 0x183   : > { %1869 = vmatmul.mubr.bf16.gmra.mrb[12].mxu0 %v5439_v37  ;;  %v2085_v37 = vld [vmem:[#allocation2 + $0x14] sm:$0x1] }
 0x184   : > { %v2242_v16 = vor.u32 %v2241_v43, %v2237_v36 }
 0x186   : > { %2292 = vrot.lane.b32.xlu0 %v2242_v16, %s6323_s14 }
 0x18a   : > { %2340 = vrot.lane.b32.xlu0 %v2332_v22, %s6324_s27 }
 0x196   : > { %v5841_v30 = vpop.f32.mrb[0].mxu1 }
 0x197   : > { %v1911_v29 = vpop.f32.mrb[1].mxu1 }
 0x198   : > { %v5842_v24 = vpop.f32.mrb[2].mxu1 }
 0x199   : > { %v1914_v63 = vpop.f32.mrb[3].mxu1 }
 0x1a2   : > { %v7132_v7 = vpop.f32.mrb[4].mxu1 }
 0x1a3   : > { %v7134_v14 = vpop.f32.mrb[5].mxu1 }
 0x1a4   : > { %v7136_v3 = vpop.f32.mrb[6].mxu1 }
 0x1a5   : > { %v7138_v39 = vpop.f32.mrb[7].mxu1 }
 0x237   : > { %v5789_v0 = vpop.f32.mrb[0].mxu0 }
 0x238   : > { %v5790_v40 = vpop.f32.mrb[1].mxu0 }
 0x239   : > { %v5791_v15 = vadd.f32 %v5790_v40, %v5789_v0  ;;  %v5792_v23 = vpop.f32.mrb[2].mxu0  ;;  %v2088_v40 = vld [vmem:[#allocation2 + $0x18] sm:$0xf] }
 0x23a   : > { %v5793_v4 = vpop.f32.mrb[3].mxu0 }
 0x23b   : > { %v1912_v45 = vadd.f32 %v5791_v15, %v1911_v29  ;;  %v5794_v6 = vadd.f32 %v5793_v4, %v5792_v23 }
 0x23d   : > { %v1949_v56 = vadd.f32 %v7153_v61, %v1912_v45  ;;  %v1915_v49 = vadd.f32 %v5794_v6, %v1914_v63  ;;  %v2091_v6 = vld [vmem:[#allocation2 + $0x1c] sm:$0x1] }
 0x23f   : > { %v1957_v57 = vmax.f32 %v1949_v56, 0.0  ;;  %v1950_v8 = vadd.f32 %v7153_v61, %v1915_v49  ;;  %v5795_v28 = vpop.f32.mrb[4].mxu0 }
 0x240   : > { %v5796_v10 = vpop.f32.mrb[5].mxu0 }
 0x241   : > { %v5749_v34 = vpack.c.bf16 %v1957_v57, %v1957_v57  ;;  %v1958_v47 = vmax.f32 %v1950_v8, 0.0  ;;  %v5797_v17 = vadd.f32 %v5796_v10, %v5795_v28  ;;  %v5798_v1 = vpop.f32.mrb[6].mxu0  ;;  %v8141_v57 = vmov 0   ;;  %v2094_v8 = vld [vmem:[#allocation2 + $0x20] sm:$0xf] }
 0x242   : > { %v5799_v55 = vpop.f32.mrb[7].mxu0  ;;  %2954 = vmatprep.subr.bf16.mxu1 %v8141_v57  ;;  %v2097_v28 = vld [vmem:[#allocation2 + $0x24] sm:$0x1] }
 0x243   : > { %v1998_v18 = vshrl.u32 %v5749_v34, 16  ;;  %v5750_v35 = vpack.c.bf16 %v1958_v47, %v1958_v47  ;;  %v1920_v54 = vadd.f32 %v5841_v30, %v5797_v17  ;;  %v5800_v59 = vadd.f32 %v5799_v55, %v5798_v1 }
 0x244   : > { %v2001_v53 = vshll.u32 %v5749_v34, 16 }
 0x245   : > { %v2000_v25 = vrot.slane %v1998_v18, 7  ;;  %v2006_v48 = vshrl.u32 %v5750_v35, 16  ;;  %v1951_v13 = vadd.f32 %v7153_v61, %v1920_v54  ;;  %v2009_v52 = vshll.u32 %v5750_v35, 16 }
 0x246   : > { %v1923_v27 = vadd.f32 %v5842_v24, %v5800_v59 }
 0x247   : > { %v2003_v46 = vor.u32 %v2001_v53, %v2000_v25  ;;  %v2004_v26 = vrot.slane %v2000_v25, 4  ;;  %v2008_v9 = vrot.slane %v2006_v48, 7  ;;  %v1959_v31 = vmax.f32 %v1951_v13, 0.0  ;;  %v6088_v25 = vld [vmem:[%s8105_s4 + $0x8] sm:$0xff]  }
 0x248   : > { %v1952_v42 = vadd.f32 %v7153_v61, %v1923_v27  ;;  %2955 = vmatpush1.bf16.msra.mxu1 %v6088_v25 }
 0x249   : > { %v2077_v51 = vsel %vm6583_vm8, %v2003_v46, %v6254_v5  ;;  %v2080_v60 = vsel %vm6594_vm9, %v2004_v26, %v2079_v44  ;;  %v2011_v11 = vor.u32 %v2009_v52, %v2008_v9  ;;  %v2012_v33 = vrot.slane %v2008_v9, 4  ;;  %2956 = vmatprep.subr.bf16.mxu1 %v8141_v57 }
 0x24a   : > { %2078 = vst [vmem:[#allocation2 + $0x8] sm:$0xf] %v2077_v51  ;;  %2081 = vst [vmem:[#allocation2 + $0xc] sm:$0x1] %v2080_v60  ;;  %v5751_v30 = vpack.c.bf16 %v1959_v31, %v1959_v31  ;;  %v1960_v29 = vmax.f32 %v1952_v42, 0.0 }
 0x24b   : > { %v2083_v24 = vsel %vm6583_vm8, %v2011_v11, %v2082_v41  ;;  %v2086_v63 = vsel %vm6594_vm9, %v2012_v33, %v2085_v37  ;;  %v5801_v2 = vpop.f32.mrb[8].mxu0 }
 0x24c   : > { %2087 = vst [vmem:[#allocation2 + $0x14] sm:$0x1] %v2086_v63  ;;  %2084 = vst [vmem:[#allocation2 + $0x10] sm:$0xf] %v2083_v24  ;;  %v2014_v21 = vshrl.u32 %v5751_v30, 16  ;;  %v5752_v36 = vpack.c.bf16 %v1960_v29, %v1960_v29  ;;  %v5802_v58 = vpop.f32.mrb[9].mxu0  ;;  %2957 = vmatpush1.bf16.msra.mxu1 %v6089_v32 }
 0x24d   : > { %v5803_v43 = vadd.f32 %v5802_v58, %v5801_v2  ;;  %v5804_v16 = vpop.f32.mrb[10].mxu0  ;;  %v2017_v50 = vshll.u32 %v5751_v30, 16  ;;  %2958 = vmatprep.subr.bf16.mxu1 %v8141_v57 }
 0x24e   : > { %v2016_v38 = vrot.slane %v2014_v21, 7  ;;  %v2022_v22 = vshrl.u32 %v5752_v36, 16  ;;  %v5805_v0 = vpop.f32.mrb[11].mxu0  ;;  %v2025_v49 = vshll.u32 %v5752_v36, 16 }
 0x24f   : > { %v1928_v15 = vadd.f32 %v5803_v43, %v7134_v14  ;;  %v5806_v23 = vadd.f32 %v5805_v0, %v5804_v16 }
 0x250   : > { %v2019_v4 = vor.u32 %v2017_v50, %v2016_v38  ;;  %v2020_v45 = vrot.slane %v2016_v38, 4  ;;  %v2024_v56 = vrot.slane %v2022_v22, 7 }
 0x251   : > { %v1953_v10 = vadd.f32 %v7153_v61, %v1928_v15  ;;  %v1931_v34 = vadd.f32 %v5806_v23, %v7138_v39  ;;  %v2148_v47 = vld [vmem:[#allocation2 + $0x8] sm:$0xf]  ;;  %v2133_v17 = vld [vmem:[#allocation2 + $0xc] sm:$0x1] }
 0x252   : > { %v2141_v1 = vld [vmem:[#allocation2 + $0x8] sm:$0xe]  ;;  %v2089_v14 = vsel %vm6583_vm8, %v2019_v4, %v2088_v40  ;;  %v2092_v55 = vsel %vm6594_vm9, %v2020_v45, %v2091_v6  ;;  %v2027_v18 = vor.u32 %v2025_v49, %v2024_v56  ;;  %v2028_v35 = vrot.slane %v2024_v56, 4  ;;  %v2156_v54 = vld [vmem:[#allocation2 + $0xc] sm:$0x1] }
 0x253   : > { %v2164_v59 = vld [vmem:[#allocation2 + $0x8] sm:$0xe]  ;;  %2093 = vst [vmem:[#allocation2 + $0x1c] sm:$0x1] %v2092_v55  ;;  %2090 = vst [vmem:[#allocation2 + $0x18] sm:$0xf] %v2089_v14  ;;  %v1954_v53 = vadd.f32 %v7153_v61, %v1931_v34  ;;  %v5489_v48 = vcombine.low %v2148_v47, %v2148_v47  ;;  %v5482_v13 = vcombine.low %v2141_v1, %v2133_v17 }
 0x254   : > { %v1961_v39 = vmax.f32 %v1953_v10, 0.0  ;;  %v7182_v52 = vld [vmem:[#allocation2 + $0x10] sm:$0xf]  ;;  %v2095_v46 = vsel %vm6583_vm8, %v2027_v18, %v2094_v8  ;;  %v2098_v26 = vsel %vm6594_vm9, %v2028_v35, %v2097_v28  ;;  %v5505_v9 = vcombine.low %v2164_v59, %v2156_v54  ;;  %v7190_v31 = vld [vmem:[#allocation2 + $0x14] sm:$0x1] }
 0x255   : > { %v7184_v27 = vld [vmem:[#allocation2 + $0x10] sm:$0xf]  ;;  %v7192_v42 = vld [vmem:[#allocation2 + $0x14] sm:$0x1]  ;;  %2099 = vst [vmem:[#allocation2 + $0x24] sm:$0x1] %v2098_v26  ;;  %2380 = vrot.lane.b32.xlu0 %v5489_v48, %s6327_s22  ;;  %v5490_v37 = vcombine.low %v7182_v52, %v7182_v52  ;;  %v7207_v16 = vcombine.low %v2148_v47, %v2156_v54 }
 0x256   : > { %v2165_v44 = vld [vmem:[#allocation2 + $0x10] sm:$0xe]  ;;  %2096 = vst [vmem:[#allocation2 + $0x20] sm:$0xf] %v2095_v46  ;;  %v5753_v5 = vpack.c.bf16 %v1961_v39, %v1961_v39  ;;  %v1962_v51 = vmax.f32 %v1954_v53, 0.0  ;;  %v2333_v60 = vrot.slane %v5482_v13, 1  ;;  %v5513_v30 = vcombine.low %v7184_v27, %v7184_v27 }
 0x257   : > { %v2142_v11 = vld [vmem:[#allocation2 + $0x10] sm:$0xe]  ;;  %v7195_v33 = vld [vmem:[#allocation2 + $0x14] sm:$0x1]  ;;  %v5807_v41 = vpop.f32.mrb[12].mxu0  ;;  %v5506_v29 = vcombine.low %v2165_v44, %v7190_v31  ;;  %v2516_v43 = vrot.slane %v5505_v9, 1 }
 0x258   : > { %v5483_v24 = vcombine.low %v2142_v11, %v7192_v42  ;;  %v2188_v63 = vld [vmem:[#allocation2 + $0x10] sm:$0xe]  ;;  %v7204_v2 = vld [vmem:[#allocation2 + $0x8] sm:$0xf]  ;;  %v2030_v21 = vshrl.u32 %v5753_v5, 16  ;;  %v5754_v36 = vpack.c.bf16 %v1962_v51, %v1962_v51  ;;  %2342 = vrot.lane.b32.xlu1 %v2333_v60, %s6324_s27  ;;  %v5808_v58 = vpop.f32.mrb[13].mxu0 }
 0x259   : > { %v2033_v38 = vshll.u32 %v5753_v5, 16  ;;  %v5809_v50 = vadd.f32 %v5808_v58, %v5807_v41  ;;  %v5810_v22 = vpop.f32.mrb[14].mxu0  ;;  %v5529_v0 = vcombine.low %v2188_v63, %v7195_v33  ;;  %v5474_v40 = vcombine.low %v7204_v2, %v2133_v17  ;;  %2524 = vrot.lane.b32.xlu0 %v2516_v43, %s6328_s11  ;;  %v2100_v55 = vld [vmem:[#allocation2 + $0x28] sm:$0xf]  ;;  %v2103_v18 = vld [vmem:[#allocation2 + $0x2c] sm:$0x1] }
 0x25a   : > { %v2032_v15 = vrot.slane %v2030_v21, 7  ;;  %v2038_v23 = vshrl.u32 %v5754_v36, 16  ;;  %v5811_v4 = vpop.f32.mrb[15].mxu0  ;;  %v2517_v45 = vrot.slane %v5506_v29, 1  ;;  %v2334_v6 = vrot.slane %v5483_v24, 1  ;;  %v6090_v46 = vld [vmem:[%s8105_s4 + $0x18] sm:$0xff]  }
 0x25b   : > { %v2041_v56 = vshll.u32 %v5754_v36, 16  ;;  %v1936_v49 = vadd.f32 %v7132_v7, %v5809_v50  ;;  %v5812_v8 = vadd.f32 %v5811_v4, %v5810_v22  ;;  %v7216_v28 = vld [vmem:[#allocation2 + $0x1c] sm:$0x1]  ;;  %v2189_v10 = vld [vmem:[#allocation2 + $0x18] sm:$0xe]  ;;  %v2246_v34 = vshll.u32 %v5474_v40, 16  ;;  %2959 = vmatpush1.bf16.msra.mxu1 %v6090_v46 }
 0x25c   : > { %v2035_v47 = vor.u32 %v2033_v38, %v2032_v15  ;;  %v2036_v17 = vrot.slane %v2032_v15, 4  ;;  %v2040_v1 = vrot.slane %v2038_v23, 7  ;;  %2382 = vrot.lane.b32.xlu1 %v5490_v37, %s6327_s22  ;;  %v5530_v14 = vcombine.low %v2189_v10, %v7216_v28  ;;  %v2106_v13 = vld [vmem:[#allocation2 + $0x30] sm:$0xf]  ;;  %2960 = vmatprep.subr.bf16.mxu1 %v8141_v57  ;;  %v2173_v15 = vld [vmem:[#allocation2 + $0x18] sm:$0xf] }
 0x25d   : > { %v1955_v35 = vadd.f32 %v7153_v61, %v1936_v49  ;;  %v1939_v7 = vadd.f32 %v7136_v3, %v5812_v8  ;;  %v2700_v54 = vrot.slane %v5529_v0, 1  ;;  %v2248_v59 = vrot.slane %v2246_v34, 1  ;;  %2564 = vrot.lane.b32.xlu0 %v5513_v30, %s6326_s29  ;;  %v2109_v3 = vld [vmem:[#allocation2 + $0x34] sm:$0x1]  ;;  %v7245_v63 = vld [vmem:[#allocation2 + $0x10] sm:$0xf] }
 0x25e   : > { %v2101_v25 = vsel %vm6583_vm8, %v2035_v47, %v2100_v55  ;;  %v2104_v39 = vsel %vm6594_vm9, %v2036_v17, %v2103_v18  ;;  %v2043_v53 = vor.u32 %v2041_v56, %v2040_v1  ;;  %v2044_v48 = vrot.slane %v2040_v1, 4  ;;  %v2135_v56 = vld [vmem:[#allocation2 + $0x1c] sm:$0x1]  ;;  %v2143_v34 = vld [vmem:[#allocation2 + $0x18] sm:$0xe]  ;;  %v6093_v55 = vld [vmem:[%s8105_s4 + $0x30] sm:$0xff]  }
 0x25f   : > { %2105 = vst [vmem:[#allocation2 + $0x2c] sm:$0x1] %v2104_v39  ;;  %2102 = vst [vmem:[#allocation2 + $0x28] sm:$0xf] %v2101_v25  ;;  %v1963_v26 = vmax.f32 %v1955_v35, 0.0  ;;  %v1956_v9 = vadd.f32 %v7153_v61, %v1939_v7  ;;  %v2701_v44 = vrot.slane %v5530_v14, 1  ;;  %v5498_v41 = vcombine.low %v7182_v52, %v7190_v31 }
 0x260   : > { %v2244_v5 = vshrl.u32 %v5474_v40, 16  ;;  %v2107_v51 = vsel %vm6583_vm8, %v2043_v53, %v2106_v13  ;;  %v2110_v60 = vsel %vm6594_vm9, %v2044_v48, %v2109_v3  ;;  %2526 = vrot.lane.b32.xlu1 %v2517_v45, %s6328_s11  ;;  %v2423_v11 = vshll.u32 %v7207_v16, 16  ;;  %v6091_v61 = vld [vmem:[%s8105_s4 + $0x20] sm:$0xff]   ;;  %v2112_v47 = vld [vmem:[#allocation2 + $0x38] sm:$0xf] }
 0x261   : > { %2111 = vst [vmem:[#allocation2 + $0x34] sm:$0x1] %v2110_v60  ;;  %2108 = vst [vmem:[#allocation2 + $0x30] sm:$0xf] %v2107_v51  ;;  %v5755_v37 = vpack.c.bf16 %v1963_v26, %v1963_v26  ;;  %v1964_v30 = vmax.f32 %v1956_v9, 0.0  ;;  %v5538_v29 = vcombine.low %v2700_v54, %v2701_v44  ;;  %v5521_v24 = vcombine.low %v7184_v27, %v7195_v33 }
 0x262   : > { %2344 = vrot.lane.b32.xlu0 %v2334_v6, %s6324_s27  ;;  %v2249_v52 = vor.u32 %v2248_v59, %v2244_v5  ;;  %v2421_v31 = vshrl.u32 %v7207_v16, 16  ;;  %v2425_v21 = vrot.slane %v2423_v11, 1  ;;  %v2430_v36 = vshll.u32 %v5498_v41, 16  ;;  %2961 = vmatpush1.bf16.msra.mxu1 %v6091_v61  ;;  %v6092_v16 = vld [vmem:[%s8105_s4 + $0x28] sm:$0xff]   ;;  %v2115_v17 = vld [vmem:[#allocation2 + $0x3c] sm:$0x1] }
 0x263   : > { %v2046_v58 = vshrl.u32 %v5755_v37, 16  ;;  %v5756_v43 = vpack.c.bf16 %v1964_v30, %v1964_v30  ;;  %5554 = vmatprep.mubr.msk.bf16.mxu1 %vm2708_vm3, %v5538_v29  ;;  %v2428_v32 = vshrl.u32 %v5498_v41, 16  ;;  %v2607_v33 = vshll.u32 %v5521_v24, 16  ;;  %2962 = vmatprep.subr.bf16.mxu1 %v8141_v57  ;;  %v2118_v59 = vld [vmem:[#allocation2 + $0x40] sm:$0xf]  ;;  %v6094_v5 = vld [vmem:[%s8105_s4 + $0x38] sm:$0xff]  }
 0x264   : > { %2294 = vrot.lane.b32.xlu1 %v2249_v52, %s6323_s14  ;;  %v2426_v38 = vor.u32 %v2425_v21, %v2421_v31  ;;  %v2432_v27 = vrot.slane %v2430_v36, 1  ;;  %v5475_v50 = vcombine.low %v7245_v63, %v7192_v42  ;;  %v2049_v0 = vshll.u32 %v5755_v37, 16  ;;  %v2121_v25 = vld [vmem:[#allocation2 + $0x44] sm:$0x1]  ;;  %v2150_v26 = vld [vmem:[#allocation2 + $0x18] sm:$0xf] }
 0x265   : > { %v2048_v22 = vrot.slane %v2046_v58, 7  ;;  %v2054_v40 = vshrl.u32 %v5756_v43, 16  ;;  %v2605_v4 = vshrl.u32 %v5521_v24, 16  ;;  %v2609_v45 = vrot.slane %v2607_v33, 1  ;;  %v2158_v9 = vld [vmem:[#allocation2 + $0x1c] sm:$0x1] }
 0x266   : > { %2476 = vrot.lane.b32.xlu0 %v2426_v38, %s6325_s28  ;;  %v2433_v23 = vor.u32 %v2432_v27, %v2428_v32  ;;  %v2253_v6 = vshll.u32 %v5475_v50, 16  ;;  %v2057_v10 = vshll.u32 %v5756_v43, 16  ;;  %2963 = vmatpush1.bf16.msra.mxu1 %v6092_v16  ;;  %v5514_v39 = vcombine.low %v2173_v15, %v2173_v15  ;;  %v2166_v44 = vld [vmem:[#allocation2 + $0x18] sm:$0xe]  ;;  %v2151_v12 = vld [vmem:[#allocation2 + $0x20] sm:$0xf] }
 0x267   : > { %v2051_v49 = vor.u32 %v2049_v0, %v2048_v22  ;;  %v2052_v42 = vrot.slane %v2048_v22, 4  ;;  %v2056_v8 = vrot.slane %v2054_v40, 7  ;;  %v2610_v1 = vor.u32 %v2609_v45, %v2605_v4  ;;  %2964 = vmatprep.subr.bf16.mxu1 %v8141_v57  ;;  %v2159_v60 = vld [vmem:[#allocation2 + $0x24] sm:$0x1]  ;;  %v2167_v11 = vld [vmem:[#allocation2 + $0x20] sm:$0xe] }
 0x268   : > { %2478 = vrot.lane.b32.xlu1 %v2433_v23, %s6325_s28  ;;  %v2255_v14 = vrot.slane %v2253_v6, 1  ;;  %v2251_v53 = vshrl.u32 %v5475_v50, 16  ;;  %v5484_v48 = vcombine.low %v2143_v34, %v2135_v56  ;;  %v5522_v51 = vcombine.low %v2173_v15, %v7216_v28  ;;  %v7280_v41 = vld [vmem:[#allocation2 + $0x18] sm:$0xf]  ;;  %v6095_v30 = vld [vmem:[%s8105_s4 + $0x40] sm:$0xff]  }
 0x269   : > { %v2113_v18 = vsel %vm6583_vm8, %v2051_v49, %v2112_v47  ;;  %v2116_v35 = vsel %vm6594_vm9, %v2052_v42, %v2115_v17  ;;  %v2059_v7 = vor.u32 %v2057_v10, %v2056_v8  ;;  %v2060_v54 = vrot.slane %v2056_v8, 4  ;;  %v2136_v21 = vld [vmem:[#allocation2 + $0x24] sm:$0x1]  ;;  %v2144_v36 = vld [vmem:[#allocation2 + $0x20] sm:$0xe] }
 0x26a   : > { %2117 = vst [vmem:[#allocation2 + $0x3c] sm:$0x1] %v2116_v35  ;;  %2114 = vst [vmem:[#allocation2 + $0x38] sm:$0xf] %v2113_v18  ;;  %2660 = vrot.lane.b32.xlu0 %v2610_v1, %s6329_s19  ;;  %v2256_v3 = vor.u32 %v2255_v14, %v2251_v53  ;;  %2965 = vmatpush1.bf16.msra.mxu1 %v6093_v55  ;;  %v2335_v62 = vrot.slane %v5484_v48, 1  ;;  %v5491_v61 = vcombine.low %v2150_v26, %v2150_v26 }
 0x26b   : > { %v2119_v13 = vsel %vm6583_vm8, %v2059_v7, %v2118_v59  ;;  %v2122_v46 = vsel %vm6594_vm9, %v2060_v54, %v2121_v25  ;;  %2966 = vmatprep.subr.bf16.mxu1 %v8141_v57  ;;  %v5507_v37 = vcombine.low %v2166_v44, %v2158_v9  ;;  %v5492_v29 = vcombine.low %v2151_v12, %v2151_v12  ;;  %v2174_v43 = vld [vmem:[#allocation2 + $0x20] sm:$0xf]  ;;  %v7290_v32 = vld [vmem:[#allocation2 + $0x24] sm:$0x1]  ;;  %v2175_v7 = vld [vmem:[#allocation2 + $0x28] sm:$0xf] }
 0x26c   : > { %2120 = vst [vmem:[#allocation2 + $0x40] sm:$0xf] %v2119_v13  ;;  %2123 = vst [vmem:[#allocation2 + $0x44] sm:$0x1] %v2122_v46  ;;  %2566 = vrot.lane.b32.xlu1 %v5514_v39, %s6326_s29  ;;  %v5508_v24 = vcombine.low %v2167_v11, %v2159_v60  ;;  %v2614_v28 = vshll.u32 %v5522_v51, 16  ;;  %v5476_v52 = vcombine.low %v7280_v41, %v2135_v56  ;;  %v2612_v22 = vshrl.u32 %v5522_v51, 16 }
 0x26d   : > { %v2518_v31 = vrot.slane %v5507_v37, 1  ;;  %v5499_v58 = vcombine.low %v2150_v26, %v2158_v9  ;;  %v5500_v33 = vcombine.low %v2151_v12, %v2159_v60  ;;  %v5485_v50 = vcombine.low %v2144_v36, %v2136_v21  ;;  %v7295_v15 = vld [vmem:[#allocation2 + $0x20] sm:$0xf]  ;;  %v2137_v54 = vld [vmem:[#allocation2 + $0x2c] sm:$0x1]  ;;  %vm7452_vm9 = vmand %vm3152_vm7, %vm410_vm2 }
 0x26e   : > { %2296 = vrot.lane.b32.xlu0 %v2256_v3, %s6323_s14  ;;  %2967 = vmatpush1.bf16.msra.mxu1 %v6094_v5  ;;  %v2616_v38 = vrot.slane %v2614_v28, 1  ;;  %v2260_v27 = vshll.u32 %v5476_v52, 16  ;;  %v5515_v16 = vcombine.low %v2174_v43, %v2174_v43  ;;  %v5523_v40 = vcombine.low %v2174_v43, %v7290_v32  ;;  %v2145_v59 = vld [vmem:[#allocation2 + $0x28] sm:$0xe]  ;;  %v7305_v46 = vld [vmem:[#allocation2 + $0x2c] sm:$0x1] }
 0x26f   : > { %2968 = vmatprep.subr.bf16.mxu1 %v8141_v57  ;;  %v2519_v57 = vrot.slane %v5508_v24, 1  ;;  %v2437_v0 = vshll.u32 %v5499_v58, 16  ;;  %v2444_v45 = vshll.u32 %v5500_v33, 16  ;;  %v2336_v6 = vrot.slane %v5485_v50, 1  ;;  %v2152_v26 = vld [vmem:[#allocation2 + $0x28] sm:$0xf] }
 0x270   : > { %2346 = vrot.lane.b32.xlu1 %v2335_v62, %s6324_s27  ;;  %v2617_v23 = vor.u32 %v2616_v38, %v2612_v22  ;;  %v2262_v4 = vrot.slane %v2260_v27, 1  ;;  %v2258_v56 = vshrl.u32 %v5476_v52, 16  ;;  %v2621_v42 = vshll.u32 %v5523_v40, 16  ;;  %v2160_v9 = vld [vmem:[#allocation2 + $0x2c] sm:$0x1] }
 0x271   : > { %v2439_v49 = vrot.slane %v2437_v0, 1  ;;  %v5477_v8 = vcombine.low %v7295_v15, %v2136_v21  ;;  %v2435_v34 = vshrl.u32 %v5499_v58, 16  ;;  %v2446_v47 = vrot.slane %v2444_v45, 1  ;;  %v2168_v44 = vld [vmem:[#allocation2 + $0x28] sm:$0xe] }
 0x272   : > { %2384 = vrot.lane.b32.xlu0 %v5491_v61, %s6327_s22  ;;  %2969 = vmatpush1.bf16.msra.mxu1 %v6095_v30  ;;  %v2263_v10 = vor.u32 %v2262_v4, %v2258_v56  ;;  %v2442_v1 = vshrl.u32 %v5500_v33, 16  ;;  %v2623_v14 = vrot.slane %v2621_v42, 1  ;;  %v2619_v35 = vshrl.u32 %v5523_v40, 16  ;;  %v2153_v62 = vld [vmem:[#allocation2 + $0x30] sm:$0xf] }
 0x273   : > { %v2440_v17 = vor.u32 %v2439_v49, %v2435_v34  ;;  %v2267_v55 = vshll.u32 %v5477_v8, 16  ;;  %v5516_v53 = vcombine.low %v2175_v7, %v2175_v7  ;;  %v2265_v48 = vshrl.u32 %v5477_v8, 16  ;;  %v2161_v51 = vld [vmem:[#allocation2 + $0x34] sm:$0x1]  ;;  %v2169_v60 = vld [vmem:[#allocation2 + $0x30] sm:$0xe] }
 0x274   : > { %2386 = vrot.lane.b32.xlu1 %v5492_v29, %s6327_s22  ;;  %v2447_v18 = vor.u32 %v2446_v47, %v2442_v1  ;;  %v2624_v25 = vor.u32 %v2623_v14, %v2619_v35  ;;  %v5486_v13 = vcombine.low %v2145_v59, %v2137_v54  ;;  %v5524_v12 = vcombine.low %v2175_v7, %v7305_v46  ;;  %v7310_v11 = vld [vmem:[#allocation2 + $0x28] sm:$0xf]  ;;  %v2146_v21 = vld [vmem:[#allocation2 + $0x30] sm:$0xe]  ;;  %v7316_v43 = vld [vmem:[#allocation2 + $0x34] sm:$0x1] }
 0x275   : > { %v2269_v39 = vrot.slane %v2267_v55, 1  ;;  %v5493_v61 = vcombine.low %v2152_v26, %v2152_v26  ;;  %v5509_v37 = vcombine.low %v2168_v44, %v2160_v9  ;;  %v5494_v30 = vcombine.low %v2153_v62, %v2153_v62  ;;  %v2176_v58 = vld [vmem:[#allocation2 + $0x30] sm:$0xf]  ;;  %v2139_v59 = vld [vmem:[#allocation2 + $0x3c] sm:$0x1] }
 0x276   : > { %2528 = vrot.lane.b32.xlu0 %v2518_v31, %s6328_s11  ;;  %v2337_v5 = vrot.slane %v5486_v13, 1  ;;  %v5510_v29 = vcombine.low %v2169_v60, %v2161_v51  ;;  %v2628_v24 = vshll.u32 %v5524_v12, 16  ;;  %v5478_v28 = vcombine.low %v7310_v11, %v2137_v54  ;;  %v2138_v31 = vld [vmem:[#allocation2 + $0x34] sm:$0x1]  ;;  %v2177_v54 = vld [vmem:[#allocation2 + $0x38] sm:$0xf] }
 0x277   : > { %v2270_v3 = vor.u32 %v2269_v39, %v2265_v48  ;;  %v2520_v52 = vrot.slane %v5509_v37, 1  ;;  %v5501_v36 = vcombine.low %v2152_v26, %v2160_v9  ;;  %v5502_v33 = vcombine.low %v2153_v62, %v2161_v51  ;;  %v7331_v26 = vld [vmem:[#allocation2 + $0x3c] sm:$0x1]  ;;  %v2154_v44 = vld [vmem:[#allocation2 + $0x38] sm:$0xf] }
 0x278   : > { %2530 = vrot.lane.b32.xlu1 %v2519_v57, %s6328_s11  ;;  %v2521_v57 = vrot.slane %v5510_v29, 1  ;;  %v2630_v38 = vrot.slane %v2628_v24, 1  ;;  %v2274_v27 = vshll.u32 %v5478_v28, 16  ;;  %v5487_v50 = vcombine.low %v2146_v21, %v2138_v31  ;;  %v2170_v62 = vld [vmem:[#allocation2 + $0x38] sm:$0xe] }
 0x279   : > { %v2626_v22 = vshrl.u32 %v5524_v12, 16  ;;  %v2451_v0 = vshll.u32 %v5501_v36, 16  ;;  %v5525_v40 = vcombine.low %v2176_v58, %v7316_v43  ;;  %v2272_v49 = vshrl.u32 %v5478_v28, 16  ;;  %v2155_v51 = vld [vmem:[#allocation2 + $0x40] sm:$0xf] }
 0x27a   : > { %2568 = vrot.lane.b32.xlu0 %v5515_v16, %s6326_s29  ;;  %v5517_v16 = vcombine.low %v2176_v58, %v2176_v58  ;;  %v2276_v45 = vrot.slane %v2274_v27, 1  ;;  %v2338_v56 = vrot.slane %v5487_v50, 1  ;;  %v2449_v47 = vshrl.u32 %v5501_v36, 16  ;;  %v2171_v37 = vld [vmem:[#allocation2 + $0x40] sm:$0xe] }
 0x27b   : > { %v2631_v4 = vor.u32 %v2630_v38, %v2626_v22  ;;  %v2453_v42 = vrot.slane %v2451_v0, 1  ;;  %v2635_v8 = vshll.u32 %v5525_v40, 16  ;;  %v2456_v14 = vshrl.u32 %v5502_v33, 16  ;;  %v7345_v50 = vld [vmem:[#allocation2 + $0x4c] sm:$0x1] }
 0x27c   : > { %2662 = vrot.lane.b32.xlu1 %v2617_v23, %s6329_s19  ;;  %v7321_v23 = vld [vmem:[#allocation2 + $0x30] sm:$0xf]  ;;  %v2277_v34 = vor.u32 %v2276_v45, %v2272_v49  ;;  %v2633_v7 = vshrl.u32 %v5525_v40, 16  ;;  %v5518_v48 = vcombine.low %v2177_v54, %v2177_v54  ;;  %v5526_v60 = vcombine.low %v2177_v54, %v7331_v26 }
 0x27d   : > { %v2454_v1 = vor.u32 %v2453_v42, %v2449_v47  ;;  %v2637_v55 = vrot.slane %v2635_v8, 1  ;;  %v5495_v29 = vcombine.low %v2154_v44, %v2154_v44  ;;  %v5496_v21 = vcombine.low %v2155_v51, %v2155_v51 }
 0x27e   : > { %2348 = vrot.lane.b32.xlu0 %v2336_v6, %s6324_s27  ;;  %v2458_v6 = vshll.u32 %v5502_v33, 16  ;;  %v2642_v58 = vshll.u32 %v5526_v60, 16  ;;  %vm3156_vm8 = vcmask 57344  }
 0x27f   : > { %v2638_v39 = vor.u32 %v2637_v55, %v2633_v7  ;;  %vm7457_vm10 = vmand %vm3156_vm8, %vm384_vm1 }
 0x280   : > { %2298 = vrot.lane.b32.xlu1 %v2263_v10, %s6323_s14  ;;  %v5479_v10 = vcombine.low %v7321_v23, %v2138_v31  ;;  %v7339_v31 = vld [vmem:[#allocation2 + $0x44] sm:$0x1]  ;;  %v2644_v22 = vrot.slane %v2642_v58, 1 }
 0x282   : > { %2480 = vrot.lane.b32.xlu0 %v2440_v17, %s6325_s28  ;;  %v2460_v17 = vrot.slane %v2458_v6, 1  ;;  %v2279_v13 = vshrl.u32 %v5479_v10, 16  ;;  %v2640_v6 = vshrl.u32 %v5526_v60, 16 }
 0x284   : > { %2482 = vrot.lane.b32.xlu1 %v2447_v18, %s6325_s28  ;;  %v2281_v18 = vshll.u32 %v5479_v10, 16  ;;  %v2461_v35 = vor.u32 %v2460_v17, %v2456_v14  ;;  %v2645_v42 = vor.u32 %v2644_v22, %v2640_v6  ;;  %v2191_v22 = vld [vmem:[#allocation2 + $0x28] sm:$0xe] }
 0x286   : > { %2664 = vrot.lane.b32.xlu0 %v2624_v25, %s6329_s19  ;;  %v2147_v25 = vld [vmem:[#allocation2 + $0x38] sm:$0xe] }
 0x288   : > { %2570 = vrot.lane.b32.xlu1 %v5516_v53, %s6326_s29  ;;  %v2283_v53 = vrot.slane %v2281_v18, 1 }
 0x28a   : > { %2300 = vrot.lane.b32.xlu0 %v2270_v3, %s6323_s14  ;;  %v5488_v3 = vcombine.low %v2147_v25, %v2139_v59  ;;  %v2284_v9 = vor.u32 %v2283_v53, %v2279_v13  ;;  %v7358_v13 = vpop.permute.xlu1 %2578 }
 0x28c   : > { %2350 = vrot.lane.b32.xlu1 %v2337_v5, %s6324_s27  ;;  %v2162_v5 = vld [vmem:[#allocation2 + $0x3c] sm:$0x1]  ;;  %v2339_v12 = vrot.slane %v5488_v3, 1 }
 0x28d   : > { %v5511_v24 = vcombine.low %v2170_v62, %v2162_v5  ;;  %v5503_v28 = vcombine.low %v2154_v44, %v2162_v5 }
 0x28e   : > { %2388 = vrot.lane.b32.xlu0 %v5493_v61, %s6327_s22  ;;  %v2163_v61 = vld [vmem:[#allocation2 + $0x44] sm:$0x1] }
 0x28f   : > { %v5512_v36 = vcombine.low %v2171_v37, %v2163_v61  ;;  %v2522_v38 = vrot.slane %v5511_v24, 1  ;;  %v2465_v27 = vshll.u32 %v5503_v28, 16  ;;  %v5504_v40 = vcombine.low %v2155_v51, %v2163_v61 }
 0x290   : > { %2390 = vrot.lane.b32.xlu1 %v5494_v30, %s6327_s22  ;;  %v7336_v30 = vld [vmem:[#allocation2 + $0x38] sm:$0xf]  ;;  %v2463_v8 = vshrl.u32 %v5503_v28, 16 }
 0x292   : > { %2532 = vrot.lane.b32.xlu0 %v2520_v52, %s6328_s11  ;;  %v2178_v52 = vld [vmem:[#allocation2 + $0x40] sm:$0xf] }
 0x293   : > { %v5527_v33 = vcombine.low %v2178_v52, %v7339_v31  ;;  %v5519_v45 = vcombine.low %v2178_v52, %v2178_v52 }
 0x294   : > { %2534 = vrot.lane.b32.xlu1 %v2521_v57, %s6328_s11  ;;  %v5480_v57 = vcombine.low %v7336_v30, %v2139_v59  ;;  %v2470_v59 = vshrl.u32 %v5504_v40, 16 }
 0x295   : > { %v2649_v49 = vshll.u32 %v5527_v33, 16  ;;  %v2647_v55 = vshrl.u32 %v5527_v33, 16 }
 0x296   : > { %2572 = vrot.lane.b32.xlu0 %v5517_v16, %s6326_s29  ;;  %v2523_v16 = vrot.slane %v5512_v36, 1  ;;  %v2288_v0 = vshll.u32 %v5480_v57, 16 }
 0x297   : > { %v2651_v14 = vrot.slane %v2649_v49, 1 }
 0x298   : > { %2666 = vrot.lane.b32.xlu1 %v2631_v4, %s6329_s19  ;;  %v5528_v4 = vcombine.low %v7144_v19, %v7345_v50  ;;  %v2290_v10 = vrot.slane %v2288_v0, 1 }
 0x299   : > { %v2652_v54 = vor.u32 %v2651_v14, %v2647_v55 }
 0x29a   : > { %2352 = vrot.lane.b32.xlu0 %v2338_v56, %s6324_s27  ;;  %v2467_v56 = vrot.slane %v2465_v27, 1  ;;  %v2656_v47 = vshll.u32 %v5528_v4, 16 }
 0x29c   : > { %2302 = vrot.lane.b32.xlu1 %v2277_v34, %s6323_s14  ;;  %v2472_v34 = vshll.u32 %v5504_v40, 16  ;;  %v2468_v17 = vor.u32 %v2467_v56, %v2463_v8  ;;  %v2658_v7 = vrot.slane %v2656_v47, 1  ;;  %v2190_v40 = vld [vmem:[#allocation2 + $0x20] sm:$0xe] }
 0x29d   : > { %v5531_v56 = vcombine.low %v2190_v40, %v7290_v32 }
 0x29e   : > { %2484 = vrot.lane.b32.xlu0 %v2454_v1, %s6325_s28  ;;  %v2286_v1 = vshrl.u32 %v5480_v57, 16  ;;  %v2474_v18 = vrot.slane %v2472_v34, 1 }
 0x2a0   : > { %2486 = vrot.lane.b32.xlu1 %v2461_v35, %s6325_s28  ;;  %v2291_v19 = vor.u32 %v2290_v10, %v2286_v1  ;;  %v2654_v35 = vshrl.u32 %v5528_v4, 16  ;;  %v2475_v25 = vor.u32 %v2474_v18, %v2470_v59  ;;  %v5532_v4 = vcombine.low %v2191_v22, %v7305_v46 }
 0x2a1   : > { %v2702_v46 = vrot.slane %v5531_v56, 1 }
 0x2a2   : > { %2668 = vrot.lane.b32.xlu0 %v2638_v39, %s6329_s19  ;;  %v2293_v39 = vpop.permute.xlu0 %2292  ;;  %v2659_v53 = vor.u32 %v2658_v7, %v2654_v35  ;;  %v2703_v10 = vrot.slane %v5532_v4, 1 }
 0x2a3   : > { %v2711_v28 = vsel %vm2708_vm3, %v7140_v20, %v2293_v39 }
 0x2a4   : > { %2574 = vrot.lane.b32.xlu1 %v5518_v48, %s6326_s29  ;;  %v5540_v55 = vcombine.low %v2702_v46, %v2703_v10 }
 0x2a6   : > { %2304 = vrot.lane.b32.xlu0 %v2284_v9, %s6323_s14  ;;  %v2341_v48 = vpop.permute.xlu0 %2340 }
 0x2a7   : > { %v2734_v36 = vsel %vm1481_vm14, %v2711_v28, %v2341_v48 }
 0x2a8   : > { %2354 = vrot.lane.b32.xlu1 %v2339_v12, %s6324_s27 }
 0x2aa   : > { %2392 = vrot.lane.b32.xlu0 %v5495_v29, %s6327_s22 }
 0x2ac   : > { %2394 = vrot.lane.b32.xlu1 %v5496_v21, %s6327_s22 }
 0x2ae   : > { %2536 = vrot.lane.b32.xlu0 %v2522_v38, %s6328_s11 }
 0x2b0   : > { %2538 = vrot.lane.b32.xlu1 %v2523_v16, %s6328_s11  ;;  %s6331_s11 = smov 56  }
 0x2b2   : > { %2576 = vrot.lane.b32.xlu0 %v5519_v45, %s6326_s29  ;;  %s6330_s29 = smov 8  }
 0x2b4   : > { %2670 = vrot.lane.b32.xlu1 %v2645_v42, %s6329_s19 }
 0x2b6   : > { %2488 = vrot.lane.b32.xlu0 %v2468_v17, %s6325_s28 }
 0x2b8   : > { %2306 = vrot.lane.b32.xlu1 %v2291_v19, %s6323_s14 }
 0x2ba   : > { %2672 = vrot.lane.b32.xlu0 %v2652_v54, %s6329_s19 }
 0x2bc   : > { %2490 = vrot.lane.b32.xlu1 %v2475_v25, %s6325_s28 }
 0x2c0   : > { %2674 = vrot.lane.b32.xlu1 %v2659_v53, %s6329_s19  ;;  %s6337_s19 = smov 20  }
 0x2c7   : > { %v2381_v3 = vpop.permute.xlu0 %2380 }
 0x2c8   : > { %v2751_v27 = vsel %vm2749_vm4, %v2734_v36, %v2381_v3 }
 0x2ca   : > { %v2343_v9 = vpop.permute.xlu1 %2342 }
 0x2cb   : > { %v2525_v44 = vpop.permute.xlu0 %2524 }
 0x2ce   : > { %v2383_v5 = vpop.permute.xlu1 %2382 }
 0x2cf   : > { %v2565_v62 = vpop.permute.xlu0 %2564 }
 0x2d2   : > { %v2527_v12 = vpop.permute.xlu1 %2526 }
 0x2d4   : > { %v2345_v51 = vpop.permute.xlu0 %2344 }
 0x2d6   : > { %v2295_v60 = vpop.permute.xlu1 %2294 }
 0x2d7   : > { %v2714_v21 = vsel %vm2708_vm3, %v7204_v2, %v2295_v60 }
 0x2d8   : > { %v2477_v61 = vpop.permute.xlu0 %2476  ;;  %v2736_v57 = vsel %vm1481_vm14, %v2714_v21, %v2343_v9 }
 0x2d9   : > { %v2767_v33 = vsel %vm1506_vm15, %v2751_v27, %v2477_v61  ;;  %v2753_v20 = vsel %vm2749_vm4, %v2736_v57, %v2383_v5 }
 0x2da   : > { %v2479_v37 = vpop.permute.xlu1 %2478  ;;  %v2784_v2 = vsel %vm2782_vm5, %v2767_v33, %v2525_v44 }
 0x2db   : > { %v2769_v45 = vsel %vm1506_vm15, %v2753_v20, %v2479_v37  ;;  %v2800_v49 = vsel %vm1523_vm0, %v2784_v2, %v2565_v62  ;;  %v2192_v37 = vld [vmem:[#allocation2 + $0x30] sm:$0xe] }
 0x2dc   : > { %v2661_v29 = vpop.permute.xlu0 %2660  ;;  %v2786_v8 = vsel %vm2782_vm5, %v2769_v45, %v2527_v12  ;;  %v2193_v12 = vld [vmem:[#allocation2 + $0x38] sm:$0xe] }
 0x2dd   : > { %v2817_v17 = vsel %vm2815_vm6, %v2800_v49, %v2661_v29 }
 0x2de   : > { %v2567_v24 = vpop.permute.xlu1 %2566 }
 0x2df   : > { %v2802_v34 = vsel %vm1523_vm0, %v2786_v8, %v2567_v24  ;;  %v5533_v24 = vcombine.low %v2192_v37, %v7316_v43 }
 0x2e0   : > { %v2297_v52 = vpop.permute.xlu0 %2296 }
 0x2e1   : > { %v2717_v25 = vsel %vm2708_vm3, %v7245_v63, %v2297_v52  ;;  %v2704_v33 = vrot.slane %v5533_v24, 1 }
 0x2e2   : > { %v2347_v58 = vpop.permute.xlu1 %2346  ;;  %v2738_v48 = vsel %vm1481_vm14, %v2717_v25, %v2345_v51 }
 0x2e4   : > { %v2385_v38 = vpop.permute.xlu0 %2384 }
 0x2e5   : > { %v2755_v44 = vsel %vm2749_vm4, %v2738_v48, %v2385_v38 }
 0x2e6   : > { %v2387_v16 = vpop.permute.xlu1 %2386 }
 0x2e8   : > { %v2529_v0 = vpop.permute.xlu0 %2528 }
 0x2ea   : > { %v2531_v6 = vpop.permute.xlu1 %2530 }
 0x2ec   : > { %v2569_v42 = vpop.permute.xlu0 %2568 }
 0x2ee   : > { %v2663_v47 = vpop.permute.xlu1 %2662 }
 0x2ef   : > { %v2819_v1 = vsel %vm2815_vm6, %v2802_v34, %v2663_v47  ;;  %v2195_v34 = vld [vmem:[#allocation2 + $0x48] sm:$0xe] }
 0x2f0   : > { %v5537_v14 = vcombine.low %v2817_v17, %v2819_v1  ;;  %v2349_v19 = vpop.permute.xlu0 %2348  ;;  %v2194_v1 = vld [vmem:[#allocation2 + $0x40] sm:$0xe] }
 0x2f2   : > { %2985 = vmatmul.mubr.bf16.vlgmr.msra.gmra.mrb[8].mxu1 %v5537_v14  ;;  %v2299_v32 = vpop.permute.xlu1 %2298 }
 0x2f3   : > { %5555 = vmatprep.mubr.msk.bf16.mxu1 %vm2708_vm3, %v5540_v55  ;;  %v2720_v39 = vsel %vm2708_vm3, %v7280_v41, %v2299_v32  ;;  %v5534_v41 = vcombine.low %v2193_v12, %v7331_v26  ;;  %v5535_v55 = vcombine.low %v2194_v1, %v7339_v31 }
 0x2f4   : > { %v2481_v18 = vpop.permute.xlu0 %2480  ;;  %v2740_v3 = vsel %vm1481_vm14, %v2720_v39, %v2347_v58 }
 0x2f5   : > { %v2771_v5 = vsel %vm1506_vm15, %v2755_v44, %v2481_v18  ;;  %v2757_v60 = vsel %vm2749_vm4, %v2740_v3, %v2387_v16  ;;  %v2705_v36 = vrot.slane %v5534_v41, 1  ;;  %v2706_v25 = vrot.slane %v5535_v55, 1 }
 0x2f6   : > { %v2483_v35 = vpop.permute.xlu1 %2482  ;;  %v2788_v63 = vsel %vm2782_vm5, %v2771_v5, %v2529_v0 }
 0x2f7   : > { %v2773_v29 = vsel %vm1506_vm15, %v2757_v60, %v2483_v35  ;;  %v2804_v28 = vsel %vm1523_vm0, %v2788_v63, %v2569_v42  ;;  %v5542_v22 = vcombine.low %v2704_v33, %v2705_v36  ;;  %v7437_v33 = vld [vmem:[#allocation2 + $0x4c] sm:$0x1] }
 0x2f8   : > { %v2665_v7 = vpop.permute.xlu0 %2664  ;;  %v2790_v21 = vsel %vm2782_vm5, %v2773_v29, %v2531_v6 }
 0x2f9   : > { %v2821_v38 = vsel %vm2815_vm6, %v2804_v28, %v2665_v7 }
 0x2fa   : > { %v2571_v54 = vpop.permute.xlu1 %2570 }
 0x2fb   : > { %v2806_v58 = vsel %vm1523_vm0, %v2790_v21, %v2571_v54 }
 0x2fc   : > { %v2301_v59 = vpop.permute.xlu0 %2300 }
 0x2fd   : > { %v2723_v45 = vsel %vm2708_vm3, %v7295_v15, %v2301_v59  ;;  %v5536_v15 = vcombine.low %v2195_v34, %v7345_v50 }
 0x2fe   : > { %v2351_v53 = vpop.permute.xlu1 %2350  ;;  %v2742_v49 = vsel %vm1481_vm14, %v2723_v45, %v2349_v19 }
 0x2ff   : > { %v2707_v7 = vrot.slane %v5536_v15, 1 }
 0x300   : > { %v2389_v9 = vpop.permute.xlu0 %2388 }
 0x301   : > { %v2759_v10 = vsel %vm2749_vm4, %v2742_v49, %v2389_v9  ;;  %v5544_v5 = vcombine.low %v2706_v25, %v2707_v7  ;;  %v7447_v49 = vld [vmem:[%s8106_s5] ss:$0 sm:$0xff] }
 0x302   : > { %v2391_v62 = vpop.permute.xlu1 %2390 }
 0x304   : > { %v2533_v61 = vpop.permute.xlu0 %2532 }
 0x306   : > { %v2535_v51 = vpop.permute.xlu1 %2534 }
 0x308   : > { %v2573_v52 = vpop.permute.xlu0 %2572 }
 0x30a   : > { %v2667_v57 = vpop.permute.xlu1 %2666 }
 0x30b   : > { %v2823_v27 = vsel %vm2815_vm6, %v2806_v58, %v2667_v57  ;;  %v7434_v58 = vld [vmem:[#allocation2] sm:$0xf]  ;;  %v3211_v57 = vld [vmem:[#allocation2 + $0x4] sm:$0x1] }
 0x30c   : > { %v5539_v26 = vcombine.low %v2821_v38, %v2823_v27  ;;  %v2353_v16 = vpop.permute.xlu0 %2352  ;;  %v5567_v38 = vcombine.low %v7434_v58, %v3211_v57  ;;  %v3258_v27 = vld [vmem:[#allocation2 + $0x48] sm:$0xf] }
 0x30e   : > { %2993 = vmatmul.mubr.bf16.gmra.mrb[12].mxu1 %v5539_v26  ;;  %v2303_v20 = vpop.permute.xlu1 %2302  ;;  %v5614_v26 = vcombine.low %v3258_v27, %v3258_v27 }
 0x30f   : > { %5556 = vmatprep.mubr.msk.bf16.mxu1 %vm2708_vm3, %v5542_v22  ;;  %v2726_v6 = vsel %vm2708_vm3, %v7310_v11, %v2303_v20  ;;  %v3219_v22 = vld [vmem:[#allocation2] sm:$0xe]  ;;  %v3318_v20 = vshll.u32 %v5567_v38, 16 }
 0x310   : > { %v2485_v43 = vpop.permute.xlu0 %2484  ;;  %v2744_v42 = vsel %vm1481_vm14, %v2726_v6, %v2351_v53  ;;  %3657 = vrot.lane.b32.xlu1 %v5614_v26, %s6327_s22 }
 0x311   : > { %v2775_v47 = vsel %vm1506_vm15, %v2759_v10, %v2485_v43  ;;  %v2761_v46 = vsel %vm2749_vm4, %v2744_v42, %v2391_v62 }
 0x312   : > { %v2487_v0 = vpop.permute.xlu1 %2486  ;;  %v2792_v11 = vsel %vm2782_vm5, %v2775_v47, %v2533_v61 }
 0x313   : > { %v2777_v19 = vsel %vm1506_vm15, %v2761_v46, %v2487_v0  ;;  %v2808_v18 = vsel %vm1523_vm0, %v2792_v11, %v2573_v52 }
 0x314   : > { %v2669_v40 = vpop.permute.xlu0 %2668  ;;  %v2794_v54 = vsel %vm2782_vm5, %v2777_v19, %v2535_v51 }
 0x315   : > { %v2825_v53 = vsel %vm2815_vm6, %v2808_v18, %v2669_v40  ;;  %v3320_v40 = vrot.slane %v3318_v20, 1 }
 0x316   : > { %v2575_v2 = vpop.permute.xlu1 %2574 }
 0x317   : > { %v2810_v39 = vsel %vm1523_vm0, %v2794_v54, %v2575_v2  ;;  %v5575_v2 = vcombine.low %v3219_v22, %v3211_v57 }
 0x318   : > { %v2305_v4 = vpop.permute.xlu0 %2304 }
 0x319   : > { %v2729_v59 = vsel %vm2708_vm3, %v7321_v23, %v2305_v4 }
 0x31a   : > { %v2355_v56 = vpop.permute.xlu1 %2354  ;;  %v2746_v48 = vsel %vm1481_vm14, %v2729_v59, %v2353_v16  ;;  %v5622_v16 = vcombine.low %v3258_v27, %v7437_v33 }
 0x31c   : > { %v2393_v8 = vpop.permute.xlu0 %2392  ;;  %v3733_v43 = vshrl.u32 %v5622_v16, 16  ;;  %v3735_v0 = vshll.u32 %v5622_v16, 16 }
 0x31d   : > { %v2763_v44 = vsel %vm2749_vm4, %v2746_v48, %v2393_v8 }
 0x31e   : > { %v2395_v17 = vpop.permute.xlu1 %2394  ;;  %v3737_v4 = vrot.slane %v3735_v0, 1 }
 0x320   : > { %v2537_v14 = vpop.permute.xlu0 %2536  ;;  %v3738_v6 = vor.u32 %v3737_v4, %v3733_v43 }
 0x322   : > { %v2539_v32 = vpop.permute.xlu1 %2538  ;;  %3753 = vrot.lane.b32.xlu1 %v3738_v6, %s6331_s11 }
 0x324   : > { %v2577_v35 = vpop.permute.xlu0 %2576 }
 0x326   : > { %v2671_v50 = vpop.permute.xlu1 %2670 }
 0x327   : > { %v2827_v31 = vsel %vm2815_vm6, %v2810_v39, %v2671_v50  ;;  %v3158_v39 = vld [vmem:[#allocation2 + $0xc] sm:$0x1]  ;;  %v6255_v50 = vld [vmem:[#allocation2 + $0x8] sm:$0xf] }
 0x328   : > { %v5541_v3 = vcombine.low %v2825_v53, %v2827_v31  ;;  %v2489_v9 = vpop.permute.xlu0 %2488 }
 0x329   : > { %v2779_v62 = vsel %vm1506_vm15, %v2763_v44, %v2489_v9  ;;  %v3161_v9 = vld [vmem:[#allocation2 + $0x10] sm:$0xf]  ;;  %v3164_v44 = vld [vmem:[#allocation2 + $0x14] sm:$0x1] }
 0x32a   : > { %3001 = vmatmul.mubr.bf16.gmra.mrb[16].mxu1 %v5541_v3  ;;  %v2307_v12 = vpop.permute.xlu1 %2306  ;;  %v2796_v61 = vsel %vm2782_vm5, %v2779_v62, %v2537_v14 }
 0x32b   : > { %v2732_v23 = vsel %vm2708_vm3, %v7336_v30, %v2307_v12  ;;  %5557 = vmatprep.mubr.msk.bf16.mxu1 %vm2708_vm3, %v5544_v5  ;;  %v2812_v29 = vsel %vm1523_vm0, %v2796_v61, %v2577_v35 }
 0x32c   : > { %v2748_v60 = vsel %vm1481_vm14, %v2732_v23, %v2355_v56  ;;  %v2673_v51 = vpop.permute.xlu0 %2672  ;;  %v3411_v56 = vrot.slane %v5575_v2, 1 }
 0x32d   : > { %v2765_v37 = vsel %vm2749_vm4, %v2748_v60, %v2395_v17  ;;  %v2829_v52 = vsel %vm2815_vm6, %v2812_v29, %v2673_v51 }
 0x32e   : > { %v2491_v63 = vpop.permute.xlu1 %2490 }
 0x32f   : > { %v2781_v41 = vsel %vm1506_vm15, %v2765_v37, %v2491_v63 }
 0x330   : > { %v2798_v24 = vsel %vm2782_vm5, %v2781_v41, %v2539_v32  ;;  %vm3910_vm5 = vcmask 457728  }
 0x331   : > { %v2814_v28 = vsel %vm1523_vm0, %v2798_v24, %v7358_v13  ;;  %v3316_v13 = vshrl.u32 %v5567_v38, 16  ;;  %vm3877_vm0 = vcmask 326656  }
 0x332   : > { %v2675_v30 = vpop.permute.xlu1 %2674 }
 0x333   : > { %v2831_v21 = vsel %vm2815_vm6, %v2814_v28, %v2675_v30  ;;  %v3321_v45 = vor.u32 %v3320_v40, %v3316_v13  ;;  %vm3999_vm6 = vcmask 588800  }
 0x334   : > { %v5543_v36 = vcombine.low %v2829_v52, %v2831_v21 }
 0x335   : > { %3371 = vrot.lane.b32.xlu0 %v3321_v45, %s6330_s29 }
 0x336   : > { %3009 = vmatmul.mubr.bf16.gmra.mrb[20].mxu1 %v5543_v36 }
 0x339   : > { %3419 = vrot.lane.b32.xlu0 %v3411_v56, %s6323_s14 }
 0x3c5   : > { %v2986_v42 = vpop.f32.mrb[8].mxu1 }
 0x3c6   : > { %v3024_v8 = vadd.f32 %v7447_v49, %v2986_v42  ;;  %v2988_v10 = vpop.f32.mrb[9].mxu1 }
 0x3c7   : > { %v2989_v34 = vpop.f32.mrb[10].mxu1 }
 0x3c8   : > { %v3032_v47 = vmax.f32 %v3024_v8, 0.0  ;;  %v3025_v17 = vadd.f32 %v7447_v49, %v2989_v34  ;;  %v2991_v1 = vpop.f32.mrb[11].mxu1 }
 0x3ca   : > { %v5757_v46 = vpack.c.bf16 %v3032_v47, %v3032_v47  ;;  %v3033_v14 = vmax.f32 %v3025_v17, 0.0 }
 0x3cc   : > { %v3073_v15 = vshrl.u32 %v5757_v46, 16  ;;  %v5758_v11 = vpack.c.bf16 %v3033_v14, %v3033_v14  ;;  %v3076_v19 = vshll.u32 %v5757_v46, 16 }
 0x3ce   : > { %v3075_v55 = vrot.slane %v3073_v15, 7  ;;  %v3081_v18 = vshrl.u32 %v5758_v11, 16  ;;  %v3084_v25 = vshll.u32 %v5758_v11, 16 }
 0x3d0   : > { %v3078_v7 = vor.u32 %v3076_v19, %v3075_v55  ;;  %v3079_v54 = vrot.slane %v3075_v55, 4  ;;  %v3083_v59 = vrot.slane %v3081_v18, 7 }
 0x3d2   : > { %v3154_v53 = vsel %vm7452_vm9, %v3078_v7, %v6255_v50  ;;  %v3159_v31 = vsel %vm7457_vm10, %v3079_v54, %v3158_v39  ;;  %v3086_v48 = vor.u32 %v3084_v25, %v3083_v59  ;;  %v3087_v3 = vrot.slane %v3083_v59, 4 }
 0x3d3   : > { %3160 = vst [vmem:[#allocation2 + $0xc] sm:$0x1] %v3159_v31  ;;  %3155 = vst [vmem:[#allocation2 + $0x8] sm:$0xf] %v3154_v53 }
 0x3d4   : > { %v3162_v5 = vsel %vm7452_vm9, %v3086_v48, %v3161_v9  ;;  %v3165_v62 = vsel %vm7457_vm10, %v3087_v3, %v3164_v44 }
 0x3d5   : > { %3163 = vst [vmem:[#allocation2 + $0x10] sm:$0xf] %v3162_v5  ;;  %3166 = vst [vmem:[#allocation2 + $0x14] sm:$0x1] %v3165_v62 }
 0x3da   : > { %v3227_v12 = vld [vmem:[#allocation2 + $0x8] sm:$0xf]  ;;  %v3212_v23 = vld [vmem:[#allocation2 + $0xc] sm:$0x1] }
 0x3db   : > { %v3220_v60 = vld [vmem:[#allocation2 + $0x8] sm:$0xe]  ;;  %v5583_v61 = vcombine.low %v3227_v12, %v3227_v12  ;;  %v3235_v63 = vld [vmem:[#allocation2 + $0xc] sm:$0x1] }
 0x3dc   : > { %v5576_v37 = vcombine.low %v3220_v60, %v3212_v23  ;;  %v3243_v41 = vld [vmem:[#allocation2 + $0x8] sm:$0xe]  ;;  %v3228_v30 = vld [vmem:[#allocation2 + $0x10] sm:$0xf]  ;;  %v3236_v52 = vld [vmem:[#allocation2 + $0x14] sm:$0x1]  ;;  %v5591_v6 = vcombine.low %v3227_v12, %v3235_v63 }
 0x3dd   : > { %v7469_v29 = vld [vmem:[#allocation2 + $0x8] sm:$0xf]  ;;  %v5599_v51 = vcombine.low %v3243_v41, %v3235_v63  ;;  %3459 = vrot.lane.b32.xlu0 %v5583_v61, %s6332_s21  ;;  %v3244_v21 = vld [vmem:[#allocation2 + $0x10] sm:$0xe]  ;;  %v3213_v38 = vld [vmem:[#allocation2 + $0x14] sm:$0x1]  ;;  %v5584_v16 = vcombine.low %v3228_v30, %v3228_v30  ;;  %v5592_v20 = vcombine.low %v3228_v30, %v3236_v52 }
 0x3de   : > { %v3412_v24 = vrot.slane %v5576_v37, 1  ;;  %v5568_v28 = vcombine.low %v7469_v29, %v3212_v23  ;;  %v7474_v57 = vld [vmem:[#allocation2 + $0x10] sm:$0xf]  ;;  %v5600_v22 = vcombine.low %v3244_v21, %v3236_v52  ;;  %v3259_v45 = vld [vmem:[#allocation2 + $0x14] sm:$0x1]  ;;  %v3502_v19 = vshll.u32 %v5591_v6, 16 }
 0x3df   : > { %v3595_v36 = vrot.slane %v5599_v51, 1  ;;  %v3221_v27 = vld [vmem:[#allocation2 + $0x10] sm:$0xe]  ;;  %v5607_v2 = vcombine.low %v7474_v57, %v7474_v57  ;;  %v3509_v1 = vshll.u32 %v5592_v20, 16  ;;  %v3507_v48 = vshrl.u32 %v5592_v20, 16 }
 0x3e0   : > { %3421 = vrot.lane.b32.xlu1 %v3412_v24, %s6323_s14  ;;  %v3325_v13 = vshll.u32 %v5568_v28, 16  ;;  %v5577_v4 = vcombine.low %v3221_v27, %v3213_v38  ;;  %v3267_v10 = vld [vmem:[#allocation2 + $0x10] sm:$0xe]  ;;  %v3596_v47 = vrot.slane %v5600_v22, 1  ;;  %v3323_v15 = vshrl.u32 %v5568_v28, 16 }
 0x3e1   : > { %3603 = vrot.lane.b32.xlu0 %v3595_v36, %s6333_s26  ;;  %v2994_v26 = vpop.f32.mrb[12].mxu1  ;;  %v7482_v34 = vld [vmem:[#allocation2 + $0x10] sm:$0xf]  ;;  %v5623_v55 = vcombine.low %v3267_v10, %v3259_v45  ;;  %v3511_v25 = vrot.slane %v3509_v1, 1  ;;  %v3504_v3 = vrot.slane %v3502_v19, 1  ;;  %v3500_v37 = vshrl.u32 %v5591_v6, 16 }
 0x3e2   : > { %v3026_v43 = vadd.f32 %v7447_v49, %v2994_v26  ;;  %v2996_v0 = vpop.f32.mrb[13].mxu1  ;;  %v3327_v17 = vrot.slane %v3325_v13, 1  ;;  %v3413_v11 = vrot.slane %v5577_v4, 1  ;;  %v5569_v18 = vcombine.low %v7482_v34, %v3213_v38  ;;  %v3167_v23 = vld [vmem:[#allocation2 + $0x18] sm:$0xf] }
 0x3e3   : > { %v2997_v40 = vpop.f32.mrb[14].mxu1  ;;  %v3779_v31 = vrot.slane %v5623_v55, 1  ;;  %v3170_v60 = vld [vmem:[#allocation2 + $0x1c] sm:$0x1]  ;;  %v3512_v61 = vor.u32 %v3511_v25, %v3507_v48  ;;  %v3173_v28 = vld [vmem:[#allocation2 + $0x20] sm:$0xf]  ;;  %v3505_v52 = vor.u32 %v3504_v3, %v3500_v37  ;;  %v5615_v36 = vcombine.low %v7474_v57, %v3259_v45 }
 0x3e4   : > { %3461 = vrot.lane.b32.xlu1 %v5584_v16, %s6332_s21  ;;  %v3034_v56 = vmax.f32 %v3026_v43, 0.0  ;;  %v3027_v42 = vadd.f32 %v7447_v49, %v2997_v40  ;;  %v2999_v8 = vpop.f32.mrb[15].mxu1  ;;  %v3328_v59 = vor.u32 %v3327_v17, %v3323_v15  ;;  %v3332_v9 = vshll.u32 %v5569_v18, 16  ;;  %v3176_v30 = vld [vmem:[#allocation2 + $0x24] sm:$0x1] }
 0x3e5   : > { %3643 = vrot.lane.b32.xlu0 %v5607_v2, %s6327_s22  ;;  %v3330_v26 = vshrl.u32 %v5569_v18, 16  ;;  %v3686_v22 = vshll.u32 %v5615_v36, 16 }
 0x3e6   : > { %v5759_v46 = vpack.c.bf16 %v3034_v56, %v3034_v56  ;;  %v3035_v14 = vmax.f32 %v3027_v42, 0.0  ;;  %v3334_v21 = vrot.slane %v3332_v9, 1  ;;  %v3684_v56 = vshrl.u32 %v5615_v36, 16 }
 0x3e7   : > { %v3688_v40 = vrot.slane %v3686_v22, 1 }
 0x3e8   : > { %3605 = vrot.lane.b32.xlu1 %v3596_v47, %s6333_s26  ;;  %v3089_v7 = vshrl.u32 %v5759_v46, 16  ;;  %v5760_v54 = vpack.c.bf16 %v3035_v14, %v3035_v14  ;;  %v3092_v50 = vshll.u32 %v5759_v46, 16  ;;  %v3335_v16 = vor.u32 %v3334_v21, %v3330_v26 }
 0x3e9   : > { %3423 = vrot.lane.b32.xlu0 %v3413_v11, %s6323_s14  ;;  %v3689_v42 = vor.u32 %v3688_v40, %v3684_v56 }
 0x3ea   : > { %v3091_v39 = vrot.slane %v3089_v7, 7  ;;  %v3097_v53 = vshrl.u32 %v5760_v54, 16  ;;  %v3100_v12 = vshll.u32 %v5760_v54, 16 }
 0x3ec   : > { %3373 = vrot.lane.b32.xlu1 %v3328_v59, %s6330_s29  ;;  %v3094_v44 = vor.u32 %v3092_v50, %v3091_v39  ;;  %v3095_v5 = vrot.slane %v3091_v39, 4  ;;  %v3099_v62 = vrot.slane %v3097_v53, 7 }
 0x3ed   : > { %3787 = vrot.lane.b32.xlu0 %v3779_v31, %s6325_s28 }
 0x3ee   : > { %v3168_v63 = vsel %vm7452_vm9, %v3094_v44, %v3167_v23  ;;  %v3171_v41 = vsel %vm7457_vm10, %v3095_v5, %v3170_v60  ;;  %v3102_v51 = vor.u32 %v3100_v12, %v3099_v62  ;;  %v3103_v24 = vrot.slane %v3099_v62, 4  ;;  %v6165_v44 = vld [vmem:[%s8107_s6] sm:$0xff]  }
 0x3ef   : > { %3169 = vst [vmem:[#allocation2 + $0x18] sm:$0xf] %v3168_v63  ;;  %3172 = vst [vmem:[#allocation2 + $0x1c] sm:$0x1] %v3171_v41  ;;  %5847 = vmatprep.subr.bf16.mxu0 %v6165_v44 }
 0x3f0   : > { %3557 = vrot.lane.b32.xlu1 %v3512_v61, %s6324_s27  ;;  %v3174_v38 = vsel %vm7452_vm9, %v3102_v51, %v3173_v28  ;;  %v3177_v27 = vsel %vm7457_vm10, %v3103_v24, %v3176_v30  ;;  %5848 = vmatpush3.bf16.msra.mxu0 %v6165_v44 }
 0x3f1   : > { %3175 = vst [vmem:[#allocation2 + $0x20] sm:$0xf] %v3174_v38  ;;  %3178 = vst [vmem:[#allocation2 + $0x24] sm:$0x1] %v3177_v27  ;;  %3555 = vrot.lane.b32.xlu0 %v3505_v52, %s6324_s27 }
 0x3f5   : > { %3375 = vrot.lane.b32.xlu0 %v3335_v16, %s6330_s29 }
 0x3f6   : > { %v3252_v13 = vld [vmem:[#allocation2 + $0x18] sm:$0xf]  ;;  %v3214_v43 = vld [vmem:[#allocation2 + $0x1c] sm:$0x1] }
 0x3f7   : > { %v3229_v20 = vld [vmem:[#allocation2 + $0x18] sm:$0xf]  ;;  %v5608_v0 = vcombine.low %v3252_v13, %v3252_v13  ;;  %v3237_v45 = vld [vmem:[#allocation2 + $0x1c] sm:$0x1] }
 0x3f8   : > { %v5585_v57 = vcombine.low %v3229_v20, %v3229_v20  ;;  %v3222_v2 = vld [vmem:[#allocation2 + $0x18] sm:$0xe]  ;;  %v3230_v47 = vld [vmem:[#allocation2 + $0x20] sm:$0xf]  ;;  %v3260_v17 = vld [vmem:[#allocation2 + $0x1c] sm:$0x1]  ;;  %v7520_v61 = vcombine.low %v3229_v20, %v3237_v45 }
 0x3f9   : > { %v5578_v4 = vcombine.low %v3222_v2, %v3214_v43  ;;  %v3245_v6 = vld [vmem:[#allocation2 + $0x18] sm:$0xe]  ;;  %3645 = vrot.lane.b32.xlu1 %v5608_v0, %s6327_s22  ;;  %v3253_v55 = vld [vmem:[#allocation2 + $0x20] sm:$0xf]  ;;  %v5586_v7 = vcombine.low %v3230_v47, %v3230_v47  ;;  %v3261_v59 = vld [vmem:[#allocation2 + $0x24] sm:$0x1]  ;;  %v7515_v9 = vcombine.low %v3252_v13, %v3260_v17 }
 0x3fa   : > { %3463 = vrot.lane.b32.xlu0 %v5585_v57, %s6332_s21  ;;  %v5601_v10 = vcombine.low %v3245_v6, %v3237_v45  ;;  %v3268_v1 = vld [vmem:[#allocation2 + $0x18] sm:$0xe]  ;;  %v3269_v25 = vld [vmem:[#allocation2 + $0x20] sm:$0xe]  ;;  %v3238_v48 = vld [vmem:[#allocation2 + $0x24] sm:$0x1]  ;;  %v5609_v37 = vcombine.low %v3253_v55, %v3253_v55  ;;  %v7528_v36 = vcombine.low %v3253_v55, %v3261_v59 }
 0x3fb   : > { %v3414_v8 = vrot.slane %v5578_v4, 1  ;;  %v7504_v46 = vld [vmem:[#allocation2 + $0x18] sm:$0xf]  ;;  %v5624_v54 = vcombine.low %v3268_v1, %v3260_v17  ;;  %v3246_v3 = vld [vmem:[#allocation2 + $0x20] sm:$0xe]  ;;  %v5625_v12 = vcombine.low %v3269_v25, %v3261_v59  ;;  %v3693_v52 = vshll.u32 %v7515_v9, 16 }
 0x3fc   : > { %v3597_v18 = vrot.slane %v5601_v10, 1  ;;  %v7510_v39 = vcombine.low %v7504_v46, %v3214_v43  ;;  %v3215_v23 = vld [vmem:[#allocation2 + $0x24] sm:$0x1]  ;;  %v3223_v60 = vld [vmem:[#allocation2 + $0x20] sm:$0xe]  ;;  %v5602_v41 = vcombine.low %v3246_v3, %v3238_v48  ;;  %v7526_v21 = vcombine.low %v3230_v47, %v3238_v48  ;;  %v6166_v17 = vld [vmem:[%s8107_s6 + $0x8] sm:$0xff]  }
 0x3fd   : > { %3425 = vrot.lane.b32.xlu1 %v3414_v8, %s6323_s14  ;;  %v3002_v14 = vpop.f32.mrb[16].mxu1  ;;  %v3780_v63 = vrot.slane %v5624_v54, 1  ;;  %v5579_v30 = vcombine.low %v3223_v60, %v3215_v23  ;;  %v3781_v16 = vrot.slane %v5625_v12, 1  ;;  %v7530_v22 = vld [vmem:[#allocation2 + $0x20] sm:$0xf]  ;;  %v3516_v57 = vshll.u32 %v7520_v61, 16  ;;  %5849 = vmatprep.subr.bf16.mxu0 %v6166_v17 }
 0x3fe   : > { %3739 = vrot.lane.b32.xlu0 %v3689_v42, %s6331_s11  ;;  %v3028_v15 = vadd.f32 %v7447_v49, %v3002_v14  ;;  %v3004_v11 = vpop.f32.mrb[17].mxu1  ;;  %v3339_v51 = vshll.u32 %v7510_v39, 16  ;;  %v3179_v13 = vld [vmem:[#allocation2 + $0x28] sm:$0xf]  ;;  %v3598_v20 = vrot.slane %v5602_v41, 1  ;;  %v3337_v43 = vshrl.u32 %v7510_v39, 16  ;;  %5850 = vmatpush3.bf16.msra.mxu0 %v6166_v17 }
 0x3ff   : > { %v3005_v19 = vpop.f32.mrb[18].mxu1  ;;  %v3182_v4 = vld [vmem:[#allocation2 + $0x2c] sm:$0x1]  ;;  %v3415_v42 = vrot.slane %v5579_v30, 1  ;;  %v3695_v8 = vrot.slane %v3693_v52, 1  ;;  %v3523_v10 = vshll.u32 %v7526_v21, 16  ;;  %v7538_v47 = vcombine.low %v7530_v22, %v3215_v23 }
 0x400   : > { %v3036_v50 = vmax.f32 %v3028_v15, 0.0  ;;  %v3029_v53 = vadd.f32 %v7447_v49, %v3005_v19  ;;  %v3007_v31 = vpop.f32.mrb[19].mxu1  ;;  %v3341_v0 = vrot.slane %v3339_v51, 1  ;;  %v3185_v55 = vld [vmem:[#allocation2 + $0x30] sm:$0xf]  ;;  %v3518_v25 = vrot.slane %v3516_v57, 1 }
 0x401   : > { %3465 = vrot.lane.b32.xlu1 %v5586_v7, %s6332_s21  ;;  %v3700_v39 = vshll.u32 %v7528_v36, 16  ;;  %v3691_v44 = vshrl.u32 %v7515_v9, 16  ;;  %v3525_v12 = vrot.slane %v3523_v10, 1  ;;  %v3346_v23 = vshll.u32 %v7538_v47, 16 }
 0x402   : > { %3607 = vrot.lane.b32.xlu0 %v3597_v18, %s6333_s26  ;;  %v5761_v5 = vpack.c.bf16 %v3036_v50, %v3036_v50  ;;  %v3037_v62 = vmax.f32 %v3029_v53, 0.0  ;;  %v3188_v18 = vld [vmem:[#allocation2 + $0x34] sm:$0x1]  ;;  %v3342_v59 = vor.u32 %v3341_v0, %v3337_v43  ;;  %v3521_v51 = vshrl.u32 %v7526_v21, 16 }
 0x403   : > { %v3698_v9 = vshrl.u32 %v7528_v36, 16  ;;  %v3348_v52 = vrot.slane %v3346_v23, 1  ;;  %v3344_v21 = vshrl.u32 %v7538_v47, 16  ;;  %v3200_v47 = vld [vmem:[#allocation2 + $0x44] sm:$0x1] }
 0x404   : > { %v3105_v24 = vshrl.u32 %v5761_v5, 16  ;;  %v5762_v28 = vpack.c.bf16 %v3037_v62, %v3037_v62  ;;  %v3108_v27 = vshll.u32 %v5761_v5, 16  ;;  %v3514_v5 = vshrl.u32 %v7520_v61, 16 }
 0x405   : > { %3789 = vrot.lane.b32.xlu1 %v3780_v63, %s6325_s28  ;;  %v3702_v63 = vrot.slane %v3700_v39, 1  ;;  %v3526_v30 = vor.u32 %v3525_v12, %v3521_v51 }
 0x406   : > { %3647 = vrot.lane.b32.xlu0 %v5609_v37, %s6327_s22  ;;  %v3107_v38 = vrot.slane %v3105_v24, 7  ;;  %v3113_v26 = vshrl.u32 %v5762_v28, 16  ;;  %v3116_v6 = vshll.u32 %v5762_v28, 16  ;;  %v3696_v37 = vor.u32 %v3695_v8, %v3691_v44  ;;  %v6167_v24 = vld [vmem:[%s8107_s6 + $0x10] sm:$0xff]  }
 0x407   : > { %5851 = vmatprep.subr.bf16.mxu0 %v6167_v24 }
 0x408   : > { %v3110_v40 = vor.u32 %v3108_v27, %v3107_v38  ;;  %v3111_v2 = vrot.slane %v3107_v38, 4  ;;  %v3115_v45 = vrot.slane %v3113_v26, 7  ;;  %v3703_v26 = vor.u32 %v3702_v63, %v3698_v9  ;;  %5852 = vmatpush3.bf16.msra.mxu0 %v6167_v24 }
 0x409   : > { %3609 = vrot.lane.b32.xlu1 %v3598_v20, %s6333_s26  ;;  %v3010_v56 = vpop.f32.mrb[20].mxu1 }
 0x40a   : > { %3791 = vrot.lane.b32.xlu0 %v3781_v16, %s6325_s28  ;;  %v3180_v1 = vsel %vm7452_vm9, %v3110_v40, %v3179_v13  ;;  %v3183_v14 = vsel %vm7457_vm10, %v3111_v2, %v3182_v4  ;;  %v3118_v15 = vor.u32 %v3116_v6, %v3115_v45  ;;  %v3119_v11 = vrot.slane %v3115_v45, 4  ;;  %v3012_v19 = vpop.f32.mrb[21].mxu1  ;;  %v6168_v13 = vld [vmem:[%s8107_s6 + $0x18] sm:$0xff]  }
 0x40b   : > { %3181 = vst [vmem:[#allocation2 + $0x28] sm:$0xf] %v3180_v1  ;;  %3184 = vst [vmem:[#allocation2 + $0x2c] sm:$0x1] %v3183_v14  ;;  %v3030_v7 = vadd.f32 %v7447_v49, %v3010_v56  ;;  %v3013_v54 = vpop.f32.mrb[22].mxu1  ;;  %5853 = vmatprep.subr.bf16.mxu0 %v6168_v13 }
 0x40c   : > { %v3186_v50 = vsel %vm7452_vm9, %v3118_v15, %v3185_v55  ;;  %v3189_v53 = vsel %vm7457_vm10, %v3119_v11, %v3188_v18  ;;  %v3031_v31 = vadd.f32 %v7447_v49, %v3013_v54  ;;  %v3015_v48 = vpop.f32.mrb[23].mxu1  ;;  %v3519_v49 = vor.u32 %v3518_v25, %v3514_v5  ;;  %v3191_v2 = vld [vmem:[#allocation2 + $0x38] sm:$0xf]  ;;  %v3194_v4 = vld [vmem:[#allocation2 + $0x3c] sm:$0x1]  ;;  %5854 = vmatpush3.bf16.msra.mxu0 %v6168_v13 }
 0x40d   : > { %3187 = vst [vmem:[#allocation2 + $0x30] sm:$0xf] %v3186_v50  ;;  %3190 = vst [vmem:[#allocation2 + $0x34] sm:$0x1] %v3189_v53  ;;  %v3038_v3 = vmax.f32 %v3030_v7, 0.0  ;;  %3377 = vrot.lane.b32.xlu1 %v3342_v59, %s6330_s29 }
 0x40e   : > { %3427 = vrot.lane.b32.xlu0 %v3415_v42, %s6323_s14  ;;  %v3039_v62 = vmax.f32 %v3031_v31, 0.0  ;;  %v3197_v56 = vld [vmem:[#allocation2 + $0x40] sm:$0xf]  ;;  %v3349_v42 = vor.u32 %v3348_v52, %v3344_v21 }
 0x40f   : > { %v5763_v60 = vpack.c.bf16 %v3038_v3, %v3038_v3 }
 0x410   : > { %v5764_v41 = vpack.c.bf16 %v3039_v62, %v3039_v62 }
 0x411   : > { %v3121_v28 = vshrl.u32 %v5763_v60, 16  ;;  %3741 = vrot.lane.b32.xlu1 %v3696_v37, %s6331_s11  ;;  %v3124_v27 = vshll.u32 %v5763_v60, 16 }
 0x412   : > { %3559 = vrot.lane.b32.xlu0 %v3519_v49, %s6324_s27  ;;  %v3129_v61 = vshrl.u32 %v5764_v41, 16  ;;  %v3254_v16 = vld [vmem:[#allocation2 + $0x28] sm:$0xf]  ;;  %v3132_v43 = vshll.u32 %v5764_v41, 16  ;;  %v3262_v0 = vld [vmem:[#allocation2 + $0x2c] sm:$0x1] }
 0x413   : > { %v3123_v38 = vrot.slane %v3121_v28, 7  ;;  %v3270_v57 = vld [vmem:[#allocation2 + $0x28] sm:$0xe]  ;;  %v5610_v17 = vcombine.low %v3254_v16, %v3254_v16  ;;  %v3239_v15 = vld [vmem:[#allocation2 + $0x2c] sm:$0x1]  ;;  %v5618_v50 = vcombine.low %v3254_v16, %v3262_v0 }
 0x414   : > { %v3131_v20 = vrot.slane %v3129_v61, 7  ;;  %v5626_v1 = vcombine.low %v3270_v57, %v3262_v0  ;;  %v3231_v14 = vld [vmem:[#allocation2 + $0x28] sm:$0xf]  ;;  %v3216_v18 = vld [vmem:[#allocation2 + $0x2c] sm:$0x1] }
 0x415   : > { %v3126_v36 = vor.u32 %v3124_v27, %v3123_v38  ;;  %v3127_v40 = vrot.slane %v3123_v38, 4  ;;  %3561 = vrot.lane.b32.xlu1 %v3526_v30, %s6324_s27  ;;  %v3247_v19 = vld [vmem:[#allocation2 + $0x28] sm:$0xe]  ;;  %v5587_v59 = vcombine.low %v3231_v14, %v3231_v14  ;;  %v3255_v32 = vld [vmem:[#allocation2 + $0x30] sm:$0xf]  ;;  %v3707_v60 = vshll.u32 %v5618_v50, 16 }
 0x416   : > { %3743 = vrot.lane.b32.xlu0 %v3703_v26, %s6331_s11  ;;  %v3134_v45 = vor.u32 %v3132_v43, %v3131_v20  ;;  %v3135_v6 = vrot.slane %v3131_v20, 4  ;;  %v3224_v7 = vld [vmem:[#allocation2 + $0x28] sm:$0xe]  ;;  %v3782_v54 = vrot.slane %v5626_v1, 1  ;;  %v5603_v25 = vcombine.low %v3247_v19, %v3239_v15  ;;  %v3232_v35 = vld [vmem:[#allocation2 + $0x30] sm:$0xf] }
 0x417   : > { %v3192_v8 = vsel %vm7452_vm9, %v3126_v36, %v3191_v2  ;;  %v3195_v10 = vsel %vm7457_vm10, %v3127_v40, %v3194_v4  ;;  %v5580_v39 = vcombine.low %v3224_v7, %v3216_v18  ;;  %v3240_v48 = vld [vmem:[#allocation2 + $0x34] sm:$0x1]  ;;  %v3248_v3 = vld [vmem:[#allocation2 + $0x30] sm:$0xe]  ;;  %v7584_v62 = vld [vmem:[#allocation2 + $0x28] sm:$0xf]  ;;  %v5611_v12 = vcombine.low %v3255_v32, %v3255_v32 }
 0x418   : > { %3193 = vst [vmem:[#allocation2 + $0x38] sm:$0xf] %v3192_v8  ;;  %3196 = vst [vmem:[#allocation2 + $0x3c] sm:$0x1] %v3195_v10  ;;  %v3198_v11 = vsel %vm7452_vm9, %v3134_v45, %v3197_v56  ;;  %v3201_v55 = vsel %vm7457_vm10, %v3135_v6, %v3200_v47  ;;  %v3599_v53 = vrot.slane %v5603_v25, 1  ;;  %v5604_v23 = vcombine.low %v3248_v3, %v3240_v48 }
 0x419   : > { %3202 = vst [vmem:[#allocation2 + $0x44] sm:$0x1] %v3201_v55  ;;  %3199 = vst [vmem:[#allocation2 + $0x40] sm:$0xf] %v3198_v11  ;;  %3649 = vrot.lane.b32.xlu1 %v5610_v17, %s6327_s22  ;;  %v3416_v31 = vrot.slane %v5580_v39, 1  ;;  %v5588_v37 = vcombine.low %v3232_v35, %v3232_v35  ;;  %v5572_v51 = vcombine.low %v7584_v62, %v3216_v18  ;;  %v3709_v61 = vrot.slane %v3707_v60, 1 }
 0x41a   : > { %3379 = vrot.lane.b32.xlu0 %v3349_v42, %s6330_s29  ;;  %v3217_v44 = vld [vmem:[#allocation2 + $0x34] sm:$0x1]  ;;  %v3225_v5 = vld [vmem:[#allocation2 + $0x30] sm:$0xe]  ;;  %v5595_v24 = vcombine.low %v3231_v14, %v3239_v15  ;;  %v3600_v9 = vrot.slane %v5604_v23, 1  ;;  %v5596_v52 = vcombine.low %v3232_v35, %v3240_v48  ;;  %v3705_v13 = vshrl.u32 %v5618_v50, 16 }
 0x41b   : > { %v5581_v49 = vcombine.low %v3225_v5, %v3217_v44  ;;  %v3263_v63 = vld [vmem:[#allocation2 + $0x34] sm:$0x1]  ;;  %v3271_v41 = vld [vmem:[#allocation2 + $0x30] sm:$0xe]  ;;  %v3353_v27 = vshll.u32 %v5572_v51, 16  ;;  %v3351_v4 = vshrl.u32 %v5572_v51, 16 }
 0x41c   : > { %v7589_v28 = vld [vmem:[#allocation2 + $0x30] sm:$0xf]  ;;  %v5627_v30 = vcombine.low %v3271_v41, %v3263_v63  ;;  %v3530_v26 = vshll.u32 %v5595_v24, 16  ;;  %v6169_v16 = vld [vmem:[%s8107_s6 + $0x20] ss:$0 sps:$4 sm:$0xff]   ;;  %v3710_v20 = vor.u32 %v3709_v61, %v3705_v13  ;;  %v3537_v36 = vshll.u32 %v5596_v52, 16 }
 0x41d   : > { %3793 = vrot.lane.b32.xlu1 %v3782_v54, %s6325_s28  ;;  %v3417_v38 = vrot.slane %v5581_v49, 1  ;;  %v5573_v21 = vcombine.low %v7589_v28, %v3217_v44  ;;  %v3355_v0 = vrot.slane %v3353_v27, 1  ;;  %5885 = vmatprep.subr.msk.bf16.mxu0 %vm4012_vm11, %v6169_v16  ;;  %v4014_v2 = vsel %vm4012_vm11, %v6169_v16, 0 }
 0x41e   : > { %3467 = vrot.lane.b32.xlu0 %v5587_v59, %s6332_s21  ;;  %v3783_v43 = vrot.slane %v5627_v30, 1  ;;  %v3532_v57 = vrot.slane %v3530_v26, 1  ;;  %v3528_v45 = vshrl.u32 %v5595_v24, 16  ;;  %v5619_v6 = vcombine.low %v3255_v32, %v3263_v63  ;;  %5856 = vmatpush3.bf16.msra.mxu0 %v4014_v2  ;;  %v3372_v26 = vpop.permute.xlu0 %3371 }
 0x41f   : > { %v3360_v40 = vshll.u32 %v5573_v21, 16  ;;  %v3356_v56 = vor.u32 %v3355_v0, %v3351_v4  ;;  %v3539_v8 = vrot.slane %v3537_v36, 1  ;;  %v3535_v47 = vshrl.u32 %v5596_v52, 16  ;;  %v3256_v15 = vld [vmem:[#allocation2 + $0x38] sm:$0xf] }
 0x420   : > { %v3533_v42 = vor.u32 %v3532_v57, %v3528_v45  ;;  %v3358_v17 = vshrl.u32 %v5573_v21, 16  ;;  %v3714_v11 = vshll.u32 %v5619_v6, 16  ;;  %v3233_v55 = vld [vmem:[#allocation2 + $0x38] sm:$0xf]  ;;  %v3218_v19 = vld [vmem:[#allocation2 + $0x3c] sm:$0x1]  ;;  %v5612_v7 = vcombine.low %v3256_v15, %v3256_v15 }
 0x421   : > { %3429 = vrot.lane.b32.xlu1 %v3416_v31, %s6323_s14  ;;  %v3362_v10 = vrot.slane %v3360_v40, 1  ;;  %v3540_v1 = vor.u32 %v3539_v8, %v3535_v47  ;;  %v3226_v18 = vld [vmem:[#allocation2 + $0x38] sm:$0xe]  ;;  %v5589_v54 = vcombine.low %v3233_v55, %v3233_v55  ;;  %v3241_v39 = vld [vmem:[#allocation2 + $0x3c] sm:$0x1]  ;;  %v3712_v35 = vshrl.u32 %v5619_v6, 16 }
 0x422   : > { %3611 = vrot.lane.b32.xlu0 %v3599_v53, %s6333_s26  ;;  %v3716_v59 = vrot.slane %v3714_v11, 1  ;;  %v5582_v25 = vcombine.low %v3226_v18, %v3218_v19  ;;  %v3249_v32 = vld [vmem:[#allocation2 + $0x38] sm:$0xe]  ;;  %v3234_v50 = vld [vmem:[#allocation2 + $0x40] sm:$0xf]  ;;  %v5597_v53 = vcombine.low %v3233_v55, %v3241_v39  ;;  %v3420_v6 = vpop.permute.xlu0 %3419  ;;  %vm4908_vm9 = vcmask 97280  }
 0x423   : > { %v3363_v14 = vor.u32 %v3362_v10, %v3358_v17  ;;  %v5605_v3 = vcombine.low %v3249_v32, %v3241_v39  ;;  %v3257_v44 = vld [vmem:[#allocation2 + $0x40] sm:$0xf]  ;;  %v3264_v5 = vld [vmem:[#allocation2 + $0x3c] sm:$0x1]  ;;  %v3265_v23 = vld [vmem:[#allocation2 + $0x44] sm:$0x1] }
 0x424   : > { %v3717_v31 = vor.u32 %v3716_v59, %v3712_v35  ;;  %v3418_v48 = vrot.slane %v5582_v25, 1  ;;  %v7607_v60 = vld [vmem:[#allocation2 + $0x38] sm:$0xf]  ;;  %v3544_v49 = vshll.u32 %v5597_v53, 16  ;;  %v3242_v51 = vld [vmem:[#allocation2 + $0x44] sm:$0x1]  ;;  %v5613_v30 = vcombine.low %v3257_v44, %v3257_v44 }
 0x425   : > { %3469 = vrot.lane.b32.xlu1 %v5588_v37, %s6332_s21  ;;  %v5590_v37 = vcombine.low %v3234_v50, %v3234_v50  ;;  %v3601_v63 = vrot.slane %v5605_v3, 1  ;;  %v3250_v24 = vld [vmem:[#allocation2 + $0x40] sm:$0xe]  ;;  %v5574_v61 = vcombine.low %v7607_v60, %v3218_v19  ;;  %v5620_v13 = vcombine.low %v3256_v15, %v3264_v5  ;;  %v3274_v11 = vld [vmem:[#allocation2 + $0x48] sm:$0xe] }
 0x426   : > { %3651 = vrot.lane.b32.xlu0 %v5611_v12, %s6327_s22  ;;  %v3272_v12 = vld [vmem:[#allocation2 + $0x38] sm:$0xe]  ;;  %v3546_v52 = vrot.slane %v3544_v49, 1  ;;  %v3273_v2 = vld [vmem:[#allocation2 + $0x40] sm:$0xe]  ;;  %v5598_v45 = vcombine.low %v3234_v50, %v3242_v51  ;;  %v5630_v25 = vcombine.low %v3274_v11, %v7437_v33  ;;  %vm4941_vm10 = vcmask 162816  }
 0x427   : > { %v5628_v41 = vcombine.low %v3272_v12, %v3264_v5  ;;  %v3367_v16 = vshll.u32 %v5574_v61, 16  ;;  %v3721_v4 = vshll.u32 %v5620_v13, 16  ;;  %v5629_v8 = vcombine.low %v3273_v2, %v3265_v23 }
 0x428   : > { %v3719_v15 = vshrl.u32 %v5620_v13, 16  ;;  %v3549_v59 = vshrl.u32 %v5598_v45, 16  ;;  %v3786_v50 = vrot.slane %v5630_v25, 1  ;;  %vm4974_vm11 = vcmask 228352  }
 0x429   : > { %3613 = vrot.lane.b32.xlu1 %v3600_v9, %s6333_s26  ;;  %v5621_v9 = vcombine.low %v3257_v44, %v3265_v23  ;;  %v3784_v27 = vrot.slane %v5628_v41, 1  ;;  %v3369_v40 = vrot.slane %v3367_v16, 1  ;;  %v3785_v19 = vrot.slane %v5629_v8, 1 }
 0x42a   : > { %3431 = vrot.lane.b32.xlu0 %v3417_v38, %s6323_s14  ;;  %v5606_v38 = vcombine.low %v3250_v24, %v3242_v51  ;;  %v3806_v24 = vsel %vm3803_vm12, %v7434_v58, %v3372_v26 }
 0x42b   : > { %v3728_v21 = vshll.u32 %v5621_v9, 16 }
 0x42c   : > { %v3602_v57 = vrot.slane %v5606_v38, 1 }
 0x42d   : > { %3745 = vrot.lane.b32.xlu1 %v3710_v20, %s6331_s11  ;;  %v3542_v20 = vshrl.u32 %v5597_v53, 16  ;;  %v3730_v36 = vrot.slane %v3728_v21, 1 }
 0x42e   : > { %3795 = vrot.lane.b32.xlu0 %v3783_v43, %s6325_s28  ;;  %v7616_v43 = vpop.permute.xlu1 %3657 }
 0x42f   : > { %v3547_v0 = vor.u32 %v3546_v52, %v3542_v20 }
 0x431   : > { %3381 = vrot.lane.b32.xlu1 %v3356_v56, %s6330_s29  ;;  %v3726_v56 = vshrl.u32 %v5621_v9, 16 }
 0x432   : > { %3563 = vrot.lane.b32.xlu0 %v3533_v42, %s6324_s27  ;;  %v3365_v42 = vshrl.u32 %v5574_v61, 16  ;;  %v7620_v17 = vpop.permute.xlu1 %3753  ;;  %v3829_v61 = vsel %vm2708_vm3, %v3806_v24, %v3420_v6 }
 0x433   : > { %v3731_v10 = vor.u32 %v3730_v36, %v3726_v56 }
 0x434   : > { %v3370_v47 = vor.u32 %v3369_v40, %v3365_v42 }
 0x435   : > { %3565 = vrot.lane.b32.xlu1 %v3540_v1, %s6324_s27  ;;  %v3723_v1 = vrot.slane %v3721_v4, 1 }
 0x436   : > { %3383 = vrot.lane.b32.xlu0 %v3363_v14, %s6330_s29  ;;  %v3551_v14 = vshll.u32 %v5598_v45, 16 }
 0x437   : > { %v3724_v18 = vor.u32 %v3723_v1, %v3719_v15 }
 0x439   : > { %3653 = vrot.lane.b32.xlu1 %v5612_v7, %s6327_s22  ;;  %v3553_v7 = vrot.slane %v3551_v14, 1 }
 0x43a   : > { %3471 = vrot.lane.b32.xlu0 %v5589_v54, %s6332_s21 }
 0x43b   : > { %v3554_v32 = vor.u32 %v3553_v7, %v3549_v59 }
 0x43d   : > { %3433 = vrot.lane.b32.xlu1 %v3418_v48, %s6323_s14 }
 0x43e   : > { %3747 = vrot.lane.b32.xlu0 %v3717_v31, %s6331_s11 }
 0x441   : > { %3473 = vrot.lane.b32.xlu1 %v5590_v37, %s6332_s21 }
 0x442   : > { %3615 = vrot.lane.b32.xlu0 %v3601_v63, %s6333_s26 }
 0x445   : > { %3797 = vrot.lane.b32.xlu1 %v3784_v27, %s6325_s28 }
 0x446   : > { %3655 = vrot.lane.b32.xlu0 %v5613_v30, %s6327_s22  ;;  %s6335_s22 = smov 28  }
 0x449   : > { %3617 = vrot.lane.b32.xlu1 %v3602_v57, %s6333_s26  ;;  %s6338_s26 = smov [#allocation4]  }
 0x44a   : > { %3567 = vrot.lane.b32.xlu0 %v3547_v0, %s6324_s27 }
 0x44d   : > { %3385 = vrot.lane.b32.xlu1 %v3370_v47, %s6330_s29 }
 0x44e   : > { %3751 = vrot.lane.b32.xlu0 %v3731_v10, %s6331_s11 }
 0x44f   : > { %v3460_v55 = vpop.permute.xlu0 %3459 }
 0x450   : > { %v3846_v27 = vsel %vm3844_vm13, %v3829_v61, %v3460_v55 }
 0x451   : > { %3749 = vrot.lane.b32.xlu1 %v3724_v18, %s6331_s11 }
 0x452   : > { %3799 = vrot.lane.b32.xlu0 %v3785_v19, %s6325_s28  ;;  %v3422_v54 = vpop.permute.xlu1 %3421 }
 0x453   : > { %v3604_v39 = vpop.permute.xlu0 %3603 }
 0x455   : > { %3569 = vrot.lane.b32.xlu1 %v3554_v32, %s6324_s27 }
 0x456   : > { %v3462_v35 = vpop.permute.xlu1 %3461 }
 0x457   : > { %v3644_v53 = vpop.permute.xlu0 %3643 }
 0x459   : > { %3801 = vrot.lane.b32.xlu1 %v3786_v50, %s6325_s28  ;;  %s6334_s28 = smov 4  }
 0x45a   : > { %v3606_v31 = vpop.permute.xlu1 %3605 }
 0x45b   : > { %v3424_v48 = vpop.permute.xlu0 %3423 }
 0x45e   : > { %v3374_v44 = vpop.permute.xlu1 %3373 }
 0x45f   : > { %v3788_v3 = vpop.permute.xlu0 %3787  ;;  %v3809_v9 = vsel %vm3803_vm12, %v7469_v29, %v3374_v44 }
 0x460   : > { %v3831_v38 = vsel %vm2708_vm3, %v3809_v9, %v3422_v54 }
 0x461   : > { %v3848_v20 = vsel %vm3844_vm13, %v3831_v38, %v3462_v35 }
 0x462   : > { %v3558_v12 = vpop.permute.xlu1 %3557 }
 0x463   : > { %v3556_v5 = vpop.permute.xlu0 %3555  ;;  %v3864_v29 = vsel %vm1481_vm14, %v3848_v20, %v3558_v12 }
 0x464   : > { %v3862_v21 = vsel %vm1481_vm14, %v3846_v27, %v3556_v5  ;;  %v3881_v36 = vsel %vm3877_vm0, %v3864_v29, %v3606_v31 }
 0x465   : > { %v3879_v58 = vsel %vm3877_vm0, %v3862_v21, %v3604_v39 }
 0x466   : > { %v3895_v57 = vsel %vm2749_vm4, %v3879_v58, %v3644_v53 }
 0x467   : > { %v3376_v23 = vpop.permute.xlu0 %3375 }
 0x468   : > { %v3812_v55 = vsel %vm3803_vm12, %v7482_v34, %v3376_v23 }
 0x469   : > { %v3833_v19 = vsel %vm2708_vm3, %v3812_v55, %v3424_v48 }
 0x46b   : > { %v3646_v49 = vpop.permute.xlu1 %3645 }
 0x46c   : > { %v3464_v37 = vpop.permute.xlu0 %3463  ;;  %v3897_v2 = vsel %vm2749_vm4, %v3881_v36, %v3646_v49 }
 0x46d   : > { %v3850_v54 = vsel %vm3844_vm13, %v3833_v19, %v3464_v37 }
 0x46f   : > { %v3426_v33 = vpop.permute.xlu1 %3425 }
 0x470   : > { %v3740_v63 = vpop.permute.xlu0 %3739 }
 0x471   : > { %v3912_v40 = vsel %vm3910_vm5, %v3895_v57, %v3740_v63 }
 0x472   : > { %v3928_v56 = vsel %vm1506_vm15, %v3912_v40, %v3788_v3 }
 0x473   : > { %v3466_v51 = vpop.permute.xlu1 %3465 }
 0x474   : > { %v3608_v41 = vpop.permute.xlu0 %3607 }
 0x477   : > { %v3790_v52 = vpop.permute.xlu1 %3789 }
 0x478   : > { %v3648_v30 = vpop.permute.xlu0 %3647 }
 0x47b   : > { %v3610_v13 = vpop.permute.xlu1 %3609 }
 0x47c   : > { %v3792_v16 = vpop.permute.xlu0 %3791 }
 0x47f   : > { %v3378_v0 = vpop.permute.xlu1 %3377 }
 0x480   : > { %v3428_v26 = vpop.permute.xlu0 %3427  ;;  %v3815_v59 = vsel %vm3803_vm12, %v7504_v46, %v3378_v0 }
 0x481   : > { %v3835_v39 = vsel %vm2708_vm3, %v3815_v59, %v3426_v33 }
 0x482   : > { %v3852_v53 = vsel %vm3844_vm13, %v3835_v39, %v3466_v51 }
 0x483   : > { %v3742_v45 = vpop.permute.xlu1 %3741 }
 0x484   : > { %v3560_v4 = vpop.permute.xlu0 %3559  ;;  %v3914_v6 = vsel %vm3910_vm5, %v3897_v2, %v3742_v45 }
 0x485   : > { %v3930_v42 = vsel %vm1506_vm15, %v3914_v6, %v3790_v52  ;;  %v3866_v25 = vsel %vm1481_vm14, %v3850_v54, %v3560_v4 }
 0x486   : > { %v5631_v8 = vcombine.low %v3928_v56, %v3930_v42  ;;  %v3883_v50 = vsel %vm3877_vm0, %v3866_v25, %v3608_v41 }
 0x487   : > { %v3562_v47 = vpop.permute.xlu1 %3561  ;;  %v3899_v34 = vsel %vm2749_vm4, %v3883_v50, %v3648_v30 }
 0x488   : > { %v3744_v10 = vpop.permute.xlu0 %3743  ;;  %5857 = vmatprep.mubr.msk.bf16.mxu0 %vm3999_vm6, %v5631_v8  ;;  %v3868_v31 = vsel %vm1481_vm14, %v3852_v53, %v3562_v47 }
 0x489   : > { %v3916_v44 = vsel %vm3910_vm5, %v3899_v34, %v3744_v10  ;;  %v3885_v46 = vsel %vm3877_vm0, %v3868_v31, %v3610_v13 }
 0x48a   : > { %v3932_v49 = vsel %vm1506_vm15, %v3916_v44, %v3792_v16 }
 0x48b   : > { %v3650_v14 = vpop.permute.xlu1 %3649 }
 0x48c   : > { %v3380_v1 = vpop.permute.xlu0 %3379  ;;  %v3901_v5 = vsel %vm2749_vm4, %v3885_v46, %v3650_v14  ;;  %v7707_v46 = vld [vmem:[#allocation2] sm:$0xf] }
 0x48d   : > { %v3818_v13 = vsel %vm3803_vm12, %v7530_v22, %v3380_v1 }
 0x48e   : > { %v3837_v29 = vsel %vm2708_vm3, %v3818_v13, %v3428_v26 }
 0x48f   : > { %v3794_v11 = vpop.permute.xlu1 %3793 }
 0x490   : > { %v3468_v15 = vpop.permute.xlu0 %3467 }
 0x491   : > { %v3854_v57 = vsel %vm3844_vm13, %v3837_v29, %v3468_v15 }
 0x493   : > { %v3430_v7 = vpop.permute.xlu1 %3429 }
 0x494   : > { %v3612_v18 = vpop.permute.xlu0 %3611 }
 0x497   : > { %v3470_v35 = vpop.permute.xlu1 %3469 }
 0x498   : > { %v3652_v32 = vpop.permute.xlu0 %3651 }
 0x49b   : > { %v3614_v3 = vpop.permute.xlu1 %3613 }
 0x49c   : > { %v3432_v48 = vpop.permute.xlu0 %3431 }
 0x49f   : > { %v3746_v23 = vpop.permute.xlu1 %3745 }
 0x4a0   : > { %v3796_v12 = vpop.permute.xlu0 %3795  ;;  %v3918_v37 = vsel %vm3910_vm5, %v3901_v5, %v3746_v23  ;;  %v4275_v5 = vld [vmem:[#allocation2 + $0x4] sm:$0x1]  ;;  %v4322_v23 = vld [vmem:[#allocation2 + $0x48] sm:$0xf] }
 0x4a1   : > { %v3934_v63 = vsel %vm1506_vm15, %v3918_v37, %v3794_v11  ;;  %v5700_v37 = vcombine.low %v4322_v23, %v4322_v23 }
 0x4a2   : > { %v5632_v33 = vcombine.low %v3932_v49, %v3934_v63 }
 0x4a3   : > { %v3382_v51 = vpop.permute.xlu1 %3381  ;;  %4721 = vrot.lane.b32.xlu1 %v5700_v37, %s6332_s21 }
 0x4a4   : > { %v3564_v41 = vpop.permute.xlu0 %3563  ;;  %5858 = vmatmul.mubr.msk.bf16.vlgmr.msra.gmra.mrb[16].mxu0 %vm3999_vm6, %v5632_v33  ;;  %v3821_v16 = vsel %vm3803_vm12, %v7584_v62, %v3382_v51 }
 0x4a5   : > { %v3839_v0 = vsel %vm2708_vm3, %v3821_v16, %v3430_v7  ;;  %v3870_v36 = vsel %vm1481_vm14, %v3854_v57, %v3564_v41 }
 0x4a6   : > { %v3856_v2 = vsel %vm3844_vm13, %v3839_v0, %v3470_v35  ;;  %v3887_v45 = vsel %vm3877_vm0, %v3870_v36, %v3612_v18 }
 0x4a7   : > { %v3566_v9 = vpop.permute.xlu1 %3565  ;;  %v3903_v42 = vsel %vm2749_vm4, %v3887_v45, %v3652_v32 }
 0x4a8   : > { %v3384_v24 = vpop.permute.xlu0 %3383  ;;  %v3872_v62 = vsel %vm1481_vm14, %v3856_v2, %v3566_v9 }
 0x4a9   : > { %v3824_v4 = vsel %vm3803_vm12, %v7589_v28, %v3384_v24  ;;  %v3889_v10 = vsel %vm3877_vm0, %v3872_v62, %v3614_v3 }
 0x4aa   : > { %v3841_v26 = vsel %vm2708_vm3, %v3824_v4, %v3432_v48 }
 0x4ab   : > { %v3654_v30 = vpop.permute.xlu1 %3653 }
 0x4ac   : > { %v3472_v61 = vpop.permute.xlu0 %3471  ;;  %v3905_v1 = vsel %vm2749_vm4, %v3889_v10, %v3654_v30 }
 0x4ad   : > { %v3858_v56 = vsel %vm3844_vm13, %v3841_v26, %v3472_v61 }
 0x4af   : > { %v3434_v38 = vpop.permute.xlu1 %3433 }
 0x4b0   : > { %v3748_v52 = vpop.permute.xlu0 %3747 }
 0x4b1   : > { %v3920_v47 = vsel %vm3910_vm5, %v3903_v42, %v3748_v52 }
 0x4b2   : > { %v3936_v19 = vsel %vm1506_vm15, %v3920_v47, %v3796_v12  ;;  %v5653_v12 = vcombine.low %v7707_v46, %v4275_v5 }
 0x4b3   : > { %v3474_v21 = vpop.permute.xlu1 %3473 }
 0x4b4   : > { %v3616_v27 = vpop.permute.xlu0 %3615  ;;  %v4380_v63 = vshrl.u32 %v5653_v12, 16  ;;  %v4382_v33 = vshll.u32 %v5653_v12, 16 }
 0x4b6   : > { %v4384_v24 = vrot.slane %v4382_v33, 1 }
 0x4b7   : > { %v3798_v58 = vpop.permute.xlu1 %3797 }
 0x4b8   : > { %v3656_v20 = vpop.permute.xlu0 %3655  ;;  %v4385_v30 = vor.u32 %v4384_v24, %v4380_v63  ;;  %v4228_v63 = vld [vmem:[#allocation2 + $0x14] sm:$0x1] }
 0x4ba   : > { %4435 = vrot.lane.b32.xlu0 %v4385_v30, %s6334_s28 }
 0x4bb   : > { %v3618_v40 = vpop.permute.xlu1 %3617 }
 0x4bc   : > { %v3568_v22 = vpop.permute.xlu0 %3567 }
 0x4bd   : > { %v3874_v28 = vsel %vm1481_vm14, %v3858_v56, %v3568_v22 }
 0x4be   : > { %v3891_v18 = vsel %vm3877_vm0, %v3874_v28, %v3616_v27  ;;  %v7720_v27 = vld [vmem:[%s8108_s7] ss:$0 sm:$0xff] }
 0x4bf   : > { %v3386_v6 = vpop.permute.xlu1 %3385  ;;  %v3907_v25 = vsel %vm2749_vm4, %v3891_v18, %v3656_v20 }
 0x4c0   : > { %v3827_v8 = vsel %vm3803_vm12, %v7607_v60, %v3386_v6  ;;  %v3752_v14 = vpop.permute.xlu0 %3751 }
 0x4c1   : > { %v3843_v11 = vsel %vm2708_vm3, %v3827_v8, %v3434_v38  ;;  %v3924_v53 = vsel %vm3910_vm5, %v3907_v25, %v3752_v14 }
 0x4c2   : > { %v3860_v54 = vsel %vm3844_vm13, %v3843_v11, %v3474_v21 }
 0x4c3   : > { %v3750_v15 = vpop.permute.xlu1 %3749 }
 0x4c4   : > { %v3922_v55 = vsel %vm3910_vm5, %v3905_v1, %v3750_v15  ;;  %v3800_v32 = vpop.permute.xlu0 %3799 }
 0x4c5   : > { %v3938_v60 = vsel %vm1506_vm15, %v3922_v55, %v3798_v58  ;;  %v3940_v48 = vsel %vm1506_vm15, %v3924_v53, %v3800_v32 }
 0x4c6   : > { %v5633_v7 = vcombine.low %v3936_v19, %v3938_v60  ;;  %v4231_v19 = vld [vmem:[#allocation2 + $0x18] sm:$0xf] }
 0x4c7   : > { %v3570_v59 = vpop.permute.xlu1 %3569 }
 0x4c8   : > { %v3876_v39 = vsel %vm1481_vm14, %v3860_v54, %v3570_v59  ;;  %5861 = vmatprep.mubr.msk.bf16.mxu0 %vm3999_vm6, %v5633_v7  ;;  %v4234_v7 = vld [vmem:[#allocation2 + $0x1c] sm:$0x1] }
 0x4c9   : > { %v3893_v35 = vsel %vm3877_vm0, %v3876_v39, %v3618_v40  ;;  %vm5047_vm0 = vcmask 293888  }
 0x4ca   : > { %v3909_v50 = vsel %vm2749_vm4, %v3893_v35, %v7616_v43  ;;  %v7710_v43 = vld [vmem:[#allocation2 + $0x4c] sm:$0x1]  ;;  %vm4220_vm4 = vcmask 24576  }
 0x4cb   : > { %v3926_v34 = vsel %vm3910_vm5, %v3909_v50, %v7620_v17  ;;  %v3802_v31 = vpop.permute.xlu1 %3801  ;;  %v5708_v49 = vcombine.low %v4322_v23, %v7710_v43  ;;  %v4283_v17 = vld [vmem:[#allocation2] sm:$0xe]  ;;  %vm7732_vm8 = vmand %vm4220_vm4, %vm384_vm1  ;;  %v4222_v50 = vld [vmem:[#allocation2 + $0xc] sm:$0x1]  ;;  %vm5060_vm1 = vcmask 1041408   ;;  %vm5248_vm5 = vcmask 1044484  }
 0x4cc   : > { %v3942_v3 = vsel %vm1506_vm15, %v3926_v34, %v3802_v31  ;;  %v5661_v9 = vcombine.low %v4283_v17, %v4275_v5  ;;  %vm4216_vm15 = vcmask 27648   ;;  %v6256_v31 = vld [vmem:[#allocation2 + $0x8] sm:$0xf]  ;;  %v4240_v5 = vld [vmem:[#allocation2 + $0x24] sm:$0x1]  ;;  %vm5254_vm4 = vcmask 1047559  }
 0x4cd   : > { %v5634_v44 = vcombine.low %v3940_v48, %v3942_v3  ;;  %v4797_v41 = vshrl.u32 %v5708_v49, 16  ;;  %v4799_v51 = vshll.u32 %v5708_v49, 16  ;;  %vm7727_vm7 = vmand %vm4216_vm15, %vm410_vm2  ;;  %v4225_v17 = vld [vmem:[#allocation2 + $0x10] sm:$0xf]  ;;  %vm4867_vm2 = vcmask 31744  }
 0x4ce   : > { %v4475_v38 = vrot.slane %v5661_v9, 1  ;;  %vm5252_vm15 = vcmask 1046534  }
 0x4cf   : > { %5862 = vmatmul.mubr.msk.bf16.gmra.mrb[20].mxu0 %vm3999_vm6, %v5634_v44  ;;  %v4801_v61 = vrot.slane %v4799_v51, 1  ;;  %v4237_v44 = vld [vmem:[#allocation2 + $0x20] sm:$0xf]  ;;  %vm5250_vm6 = vcmask 1045509  }
 0x4d0   : > { %4483 = vrot.lane.b32.xlu0 %v4475_v38, %s6330_s29 }
 0x4d1   : > { %v4802_v52 = vor.u32 %v4801_v61, %v4797_v41 }
 0x4d3   : > { %4817 = vrot.lane.b32.xlu1 %v4802_v52, %s6335_s22 }
 0x577   : > { %v5859_v21 = vpop.f32.mrb[16].mxu0 }
 0x578   : > { %v4090_v13 = vadd.f32 %v5859_v21, %v7720_v27  ;;  %v4050_v16 = vpop.f32.mrb[17].mxu0 }
 0x579   : > { %v4088_v20 = vadd.f32 %v7720_v27, %v4050_v16  ;;  %v5860_v58 = vpop.f32.mrb[18].mxu0 }
 0x57a   : > { %v4098_v29 = vmax.f32 %v4090_v13, 0.0  ;;  %v4091_v0 = vadd.f32 %v5860_v58, %v7720_v27  ;;  %v4053_v57 = vpop.f32.mrb[19].mxu0 }
 0x57b   : > { %v4096_v36 = vmax.f32 %v4088_v20, 0.0  ;;  %v4089_v40 = vadd.f32 %v7720_v27, %v4053_v57 }
 0x57c   : > { %v5767_v2 = vpack.c.bf16 %v4098_v29, %v4098_v29  ;;  %v4099_v4 = vmax.f32 %v4091_v0, 0.0 }
 0x57d   : > { %v5765_v22 = vpack.c.bf16 %v4096_v36, %v4096_v36  ;;  %v4097_v45 = vmax.f32 %v4089_v40, 0.0 }
 0x57e   : > { %v4153_v62 = vshrl.u32 %v5767_v2, 16  ;;  %v5768_v6 = vpack.c.bf16 %v4099_v4, %v4099_v4  ;;  %v4156_v8 = vshll.u32 %v5767_v2, 16 }
 0x57f   : > { %v4137_v26 = vshrl.u32 %v5765_v22, 16  ;;  %v5766_v56 = vpack.c.bf16 %v4097_v45, %v4097_v45  ;;  %v4140_v14 = vshll.u32 %v5765_v22, 16 }
 0x580   : > { %v4155_v42 = vrot.slane %v4153_v62, 7  ;;  %v4161_v47 = vshrl.u32 %v5768_v6, 16  ;;  %v4164_v60 = vshll.u32 %v5768_v6, 16 }
 0x581   : > { %v4139_v1 = vrot.slane %v4137_v26, 7  ;;  %v4145_v15 = vshrl.u32 %v5766_v56, 16  ;;  %v4148_v39 = vshll.u32 %v5766_v56, 16 }
 0x582   : > { %v4158_v11 = vor.u32 %v4156_v8, %v4155_v42  ;;  %v4159_v55 = vrot.slane %v4155_v42, 4  ;;  %v4163_v18 = vrot.slane %v4161_v47, 7 }
 0x583   : > { %v4142_v54 = vor.u32 %v4140_v14, %v4139_v1  ;;  %v4143_v59 = vrot.slane %v4139_v1, 4  ;;  %v4147_v25 = vrot.slane %v4145_v15, 7 }
 0x584   : > { %v4232_v32 = vsel %vm7727_vm7, %v4158_v11, %v4231_v19  ;;  %v4235_v35 = vsel %vm7732_vm8, %v4159_v55, %v4234_v7  ;;  %v4166_v53 = vor.u32 %v4164_v60, %v4163_v18  ;;  %v4167_v34 = vrot.slane %v4163_v18, 4 }
 0x585   : > { %4233 = vst [vmem:[#allocation2 + $0x18] sm:$0xf] %v4232_v32  ;;  %4236 = vst [vmem:[#allocation2 + $0x1c] sm:$0x1] %v4235_v35  ;;  %v4218_v48 = vsel %vm7727_vm7, %v4142_v54, %v6256_v31  ;;  %v4223_v3 = vsel %vm7732_vm8, %v4143_v59, %v4222_v50  ;;  %v4150_v12 = vor.u32 %v4148_v39, %v4147_v25  ;;  %v4151_v23 = vrot.slane %v4147_v25, 4 }
 0x586   : > { %4219 = vst [vmem:[#allocation2 + $0x8] sm:$0xf] %v4218_v48  ;;  %4224 = vst [vmem:[#allocation2 + $0xc] sm:$0x1] %v4223_v3  ;;  %v4238_v37 = vsel %vm7727_vm7, %v4166_v53, %v4237_v44  ;;  %v4241_v49 = vsel %vm7732_vm8, %v4167_v34, %v4240_v5 }
 0x587   : > { %4239 = vst [vmem:[#allocation2 + $0x20] sm:$0xf] %v4238_v37  ;;  %4242 = vst [vmem:[#allocation2 + $0x24] sm:$0x1] %v4241_v49  ;;  %v4226_v33 = vsel %vm7727_vm7, %v4150_v12, %v4225_v17  ;;  %v4229_v41 = vsel %vm7732_vm8, %v4151_v23, %v4228_v63 }
 0x588   : > { %4227 = vst [vmem:[#allocation2 + $0x10] sm:$0xf] %v4226_v33  ;;  %4230 = vst [vmem:[#allocation2 + $0x14] sm:$0x1] %v4229_v41 }
 0x58c   : > { %v4316_v51 = vld [vmem:[#allocation2 + $0x18] sm:$0xf]  ;;  %v4278_v9 = vld [vmem:[#allocation2 + $0x1c] sm:$0x1] }
 0x58d   : > { %v4293_v24 = vld [vmem:[#allocation2 + $0x18] sm:$0xf]  ;;  %v5694_v61 = vcombine.low %v4316_v51, %v4316_v51  ;;  %v4291_v21 = vld [vmem:[#allocation2 + $0x8] sm:$0xf]  ;;  %v4301_v13 = vld [vmem:[#allocation2 + $0x1c] sm:$0x1] }
 0x58e   : > { %v5671_v30 = vcombine.low %v4293_v24, %v4293_v24  ;;  %v4286_v52 = vld [vmem:[#allocation2 + $0x18] sm:$0xe]  ;;  %v5669_v58 = vcombine.low %v4291_v21, %v4291_v21  ;;  %v7754_v0 = vld [vmem:[#allocation2 + $0x20] sm:$0xf]  ;;  %v4324_v57 = vld [vmem:[#allocation2 + $0x1c] sm:$0x1]  ;;  %v7783_v53 = vcombine.low %v4293_v24, %v4301_v13 }
 0x58f   : > { %v5664_v38 = vcombine.low %v4286_v52, %v4278_v9  ;;  %v4309_v16 = vld [vmem:[#allocation2 + $0x18] sm:$0xe]  ;;  %4709 = vrot.lane.b32.xlu1 %v5694_v61, %s6332_s21  ;;  %v5672_v2 = vcombine.low %v7754_v0, %v7754_v0  ;;  %v7760_v4 = vld [vmem:[#allocation2 + $0x20] sm:$0xf]  ;;  %v4299_v45 = vld [vmem:[#allocation2 + $0xc] sm:$0x1]  ;;  %v7773_v18 = vcombine.low %v4316_v51, %v4324_v57 }
 0x590   : > { %4527 = vrot.lane.b32.xlu0 %v5671_v30, %s6336_s13  ;;  %v5687_v29 = vcombine.low %v4309_v16, %v4301_v13  ;;  %v4332_v36 = vld [vmem:[#allocation2 + $0x18] sm:$0xe]  ;;  %v4307_v62 = vld [vmem:[#allocation2 + $0x8] sm:$0xe]  ;;  %v4276_v6 = vld [vmem:[#allocation2 + $0xc] sm:$0x1]  ;;  %v5695_v42 = vcombine.low %v7760_v4, %v7760_v4  ;;  %v7792_v37 = vcombine.low %v4291_v21, %v4299_v45 }
 0x591   : > { %v4478_v20 = vrot.slane %v5664_v38, 1  ;;  %v5710_v22 = vcombine.low %v4332_v36, %v4324_v57  ;;  %v4284_v26 = vld [vmem:[#allocation2 + $0x8] sm:$0xe]  ;;  %v7764_v56 = vld [vmem:[#allocation2 + $0x18] sm:$0xf]  ;;  %v5685_v47 = vcombine.low %v4307_v62, %v4299_v45  ;;  %v4757_v23 = vshll.u32 %v7773_v18, 16 }
 0x592   : > { %v4661_v40 = vrot.slane %v5687_v29, 1  ;;  %v5662_v1 = vcombine.low %v4284_v26, %v4276_v6  ;;  %v4279_v14 = vld [vmem:[#allocation2 + $0x24] sm:$0x1]  ;;  %v7771_v15 = vcombine.low %v7764_v56, %v4278_v9  ;;  %v4287_v11 = vld [vmem:[#allocation2 + $0x20] sm:$0xe]  ;;  %v4755_v51 = vshrl.u32 %v7773_v18, 16 }
 0x593   : > { %4489 = vrot.lane.b32.xlu1 %v4478_v20, %s6330_s29  ;;  %v4844_v8 = vrot.slane %v5710_v22, 1  ;;  %v4302_v55 = vld [vmem:[#allocation2 + $0x24] sm:$0x1]  ;;  %v4310_v19 = vld [vmem:[#allocation2 + $0x20] sm:$0xe]  ;;  %v4659_v60 = vrot.slane %v5685_v47, 1  ;;  %v5665_v39 = vcombine.low %v4287_v11, %v4279_v14 }
 0x594   : > { %4523 = vrot.lane.b32.xlu0 %v5669_v58, %s6336_s13  ;;  %v4476_v7 = vrot.slane %v5662_v1, 1  ;;  %v7775_v54 = vld [vmem:[#allocation2 + $0x10] sm:$0xf]  ;;  %v7778_v25 = vld [vmem:[#allocation2 + $0x8] sm:$0xf]  ;;  %v5688_v32 = vcombine.low %v4310_v19, %v4302_v55  ;;  %v4403_v48 = vshll.u32 %v7771_v15, 16  ;;  %v7809_v16 = vcombine.low %v7754_v0, %v4302_v55 }
 0x595   : > { %v4292_v59 = vld [vmem:[#allocation2 + $0x10] sm:$0xf]  ;;  %v7781_v35 = vld [vmem:[#allocation2 + $0x24] sm:$0x1]  ;;  %v4333_v50 = vld [vmem:[#allocation2 + $0x20] sm:$0xe]  ;;  %v5693_v3 = vcombine.low %v7775_v54, %v7775_v54  ;;  %v7795_v49 = vcombine.low %v7778_v25, %v4276_v6 }
 0x596   : > { %v4300_v34 = vld [vmem:[#allocation2 + $0x14] sm:$0x1]  ;;  %v4308_v31 = vld [vmem:[#allocation2 + $0x10] sm:$0xe]  ;;  %v5670_v44 = vcombine.low %v4292_v59, %v4292_v59  ;;  %v7788_v5 = vld [vmem:[#allocation2 + $0x20] sm:$0xf]  ;;  %v5711_v63 = vcombine.low %v4333_v50, %v7781_v35 }
 0x597   : > { %4529 = vrot.lane.b32.xlu1 %v5672_v2, %s6336_s13  ;;  %v4401_v12 = vshrl.u32 %v7771_v15, 16  ;;  %v7798_v33 = vld [vmem:[#allocation2 + $0x14] sm:$0x1]  ;;  %v4285_v41 = vld [vmem:[#allocation2 + $0x10] sm:$0xe]  ;;  %v4479_v61 = vrot.slane %v5665_v39, 1  ;;  %v5686_v52 = vcombine.low %v4308_v31, %v4300_v34  ;;  %v7806_v13 = vcombine.low %v7788_v5, %v4279_v14 }
 0x598   : > { %4671 = vrot.lane.b32.xlu0 %v4661_v40, %s6337_s19  ;;  %v4662_v30 = vrot.slane %v5688_v32, 1  ;;  %v4405_v20 = vrot.slane %v4403_v48, 1  ;;  %v7811_v58 = vld [vmem:[#allocation2 + $0x14] sm:$0x1]  ;;  %v4331_v29 = vld [vmem:[#allocation2 + $0x10] sm:$0xe]  ;;  %v5663_v2 = vcombine.low %v4285_v41, %v7798_v33  ;;  %v7816_v26 = vcombine.low %v4292_v59, %v4300_v34 }
 0x599   : > { %v4759_v22 = vrot.slane %v4757_v23, 1  ;;  %v4845_v6 = vrot.slane %v5711_v63, 1  ;;  %v5709_v47 = vcombine.low %v4331_v29, %v7811_v58  ;;  %v4389_v11 = vshll.u32 %v7795_v49, 16  ;;  %v4255_v63 = vld [vmem:[#allocation2 + $0x38] sm:$0xf] }
 0x59a   : > { %v4406_v15 = vor.u32 %v4405_v20, %v4401_v12  ;;  %v4580_v59 = vshll.u32 %v7783_v53, 16  ;;  %v4587_v39 = vshll.u32 %v7809_v16, 16  ;;  %v4243_v20 = vld [vmem:[#allocation2 + $0x28] sm:$0xf]  ;;  %v4246_v29 = vld [vmem:[#allocation2 + $0x2c] sm:$0x1] }
 0x59b   : > { %4853 = vrot.lane.b32.xlu1 %v4844_v8, %s6324_s27  ;;  %v4660_v8 = vrot.slane %v5686_v52, 1  ;;  %v4760_v18 = vor.u32 %v4759_v22, %v4755_v51  ;;  %v4843_v31 = vrot.slane %v5709_v47, 1  ;;  %v4391_v12 = vrot.slane %v4389_v11, 1  ;;  %v4261_v22 = vld [vmem:[#allocation2 + $0x40] sm:$0xf] }
 0x59c   : > { %4711 = vrot.lane.b32.xlu0 %v5695_v42, %s6332_s21  ;;  %v4252_v47 = vld [vmem:[#allocation2 + $0x34] sm:$0x1]  ;;  %v4573_v10 = vshll.u32 %v7816_v26, 16 }
 0x59f   : > { %4485 = vrot.lane.b32.xlu1 %v4476_v7, %s6330_s29 }
 0x5a0   : > { %4667 = vrot.lane.b32.xlu0 %v4659_v60, %s6337_s19 }
 0x5a2   : > { %v5863_v17 = vpop.f32.mrb[20].mxu0 }
 0x5a3   : > { %v4094_v24 = vadd.f32 %v5863_v17, %v7720_v27  ;;  %4525 = vrot.lane.b32.xlu1 %v5670_v44, %s6336_s13  ;;  %v4066_v9 = vpop.f32.mrb[21].mxu0 }
 0x5a4   : > { %4707 = vrot.lane.b32.xlu0 %v5693_v3, %s6332_s21  ;;  %v4092_v38 = vadd.f32 %v7720_v27, %v4066_v9  ;;  %v5864_v21 = vpop.f32.mrb[22].mxu0 }
 0x5a5   : > { %v4102_v57 = vmax.f32 %v4094_v24, 0.0  ;;  %v4095_v36 = vadd.f32 %v5864_v21, %v7720_v27  ;;  %v4069_v40 = vpop.f32.mrb[23].mxu0  ;;  %v4258_v24 = vld [vmem:[#allocation2 + $0x3c] sm:$0x1] }
 0x5a6   : > { %v4100_v45 = vmax.f32 %v4092_v38, 0.0  ;;  %v4093_v62 = vadd.f32 %v7720_v27, %v4069_v40  ;;  %v4477_v27 = vrot.slane %v5663_v2, 1 }
 0x5a7   : > { %v5771_v42 = vpack.c.bf16 %v4102_v57, %v4102_v57  ;;  %v4103_v0 = vmax.f32 %v4095_v36, 0.0  ;;  %4673 = vrot.lane.b32.xlu1 %v4662_v30, %s6337_s19 }
 0x5a8   : > { %4491 = vrot.lane.b32.xlu0 %v4479_v61, %s6330_s29  ;;  %v5769_v1 = vpack.c.bf16 %v4100_v45, %v4100_v45  ;;  %v4101_v14 = vmax.f32 %v4093_v62, 0.0  ;;  %v4264_v45 = vld [vmem:[#allocation2 + $0x44] sm:$0x1] }
 0x5a9   : > { %v4185_v55 = vshrl.u32 %v5771_v42, 16  ;;  %v5772_v19 = vpack.c.bf16 %v4103_v0, %v4103_v0  ;;  %v4188_v50 = vshll.u32 %v5771_v42, 16 }
 0x5aa   : > { %v4169_v60 = vshrl.u32 %v5769_v1, 16  ;;  %v5770_v7 = vpack.c.bf16 %v4101_v14, %v4101_v14  ;;  %v4172_v3 = vshll.u32 %v5769_v1, 16  ;;  %v4582_v1 = vrot.slane %v4580_v59, 1 }
 0x5ab   : > { %v4187_v32 = vrot.slane %v4185_v55, 7  ;;  %v4193_v34 = vshrl.u32 %v5772_v19, 16  ;;  %4669 = vrot.lane.b32.xlu1 %v4660_v8, %s6337_s19  ;;  %v4196_v51 = vshll.u32 %v5772_v19, 16  ;;  %v4249_v8 = vld [vmem:[#allocation2 + $0x30] sm:$0xf]  ;;  %v4566_v14 = vshll.u32 %v7792_v37, 16 }
 0x5ac   : > { %4855 = vrot.lane.b32.xlu0 %v4845_v6, %s6324_s27  ;;  %v4171_v48 = vrot.slane %v4169_v60, 7  ;;  %v4177_v44 = vshrl.u32 %v5770_v7, 16  ;;  %v4180_v52 = vshll.u32 %v5770_v7, 16  ;;  %v4387_v55 = vshrl.u32 %v7795_v49, 16  ;;  %v7852_v7 = vld [vmem:[#allocation2 + $0x10] sm:$0xf] }
 0x5ad   : > { %v4190_v23 = vor.u32 %v4188_v50, %v4187_v32  ;;  %v4191_v17 = vrot.slane %v4187_v32, 4  ;;  %v4195_v41 = vrot.slane %v4193_v34, 7  ;;  %v4578_v19 = vshrl.u32 %v7783_v53, 16 }
 0x5ae   : > { %v4174_v9 = vor.u32 %v4172_v3, %v4171_v48  ;;  %v4175_v61 = vrot.slane %v4171_v48, 4  ;;  %v4179_v30 = vrot.slane %v4177_v44, 7  ;;  %v4589_v60 = vrot.slane %v4587_v39, 1 }
 0x5af   : > { %v4256_v38 = vsel %vm7727_vm7, %v4190_v23, %v4255_v63  ;;  %v4259_v21 = vsel %vm7732_vm8, %v4191_v17, %v4258_v24  ;;  %v4198_v57 = vor.u32 %v4196_v51, %v4195_v41  ;;  %v4199_v36 = vrot.slane %v4195_v41, 4  ;;  %4441 = vrot.lane.b32.xlu1 %v4406_v15, %s6334_s28 }
 0x5b0   : > { %4487 = vrot.lane.b32.xlu0 %v4477_v27, %s6330_s29  ;;  %4257 = vst [vmem:[#allocation2 + $0x38] sm:$0xf] %v4256_v38  ;;  %4260 = vst [vmem:[#allocation2 + $0x3c] sm:$0x1] %v4259_v21  ;;  %v4244_v40 = vsel %vm7727_vm7, %v4174_v9, %v4243_v20  ;;  %v4247_v2 = vsel %vm7732_vm8, %v4175_v61, %v4246_v29  ;;  %v4182_v62 = vor.u32 %v4180_v52, %v4179_v30 }
 0x5b1   : > { %v4183_v6 = vrot.slane %v4179_v30, 4  ;;  %4245 = vst [vmem:[#allocation2 + $0x28] sm:$0xf] %v4244_v40  ;;  %4248 = vst [vmem:[#allocation2 + $0x2c] sm:$0x1] %v4247_v2  ;;  %v4262_v42 = vsel %vm7727_vm7, %v4198_v57, %v4261_v22  ;;  %v4265_v0 = vsel %vm7732_vm8, %v4199_v36, %v4264_v45  ;;  %v5703_v27 = vcombine.low %v7760_v4, %v7781_v35 }
 0x5b2   : > { %4263 = vst [vmem:[#allocation2 + $0x40] sm:$0xf] %v4262_v42  ;;  %4266 = vst [vmem:[#allocation2 + $0x44] sm:$0x1] %v4265_v0  ;;  %v4250_v15 = vsel %vm7727_vm7, %v4182_v62, %v4249_v8  ;;  %v4392_v28 = vor.u32 %v4391_v12, %v4387_v55  ;;  %v4583_v59 = vor.u32 %v4582_v1, %v4578_v19  ;;  %v4568_v32 = vrot.slane %v4566_v14, 1 }
 0x5b3   : > { %v4253_v11 = vsel %vm7732_vm8, %v4183_v6, %v4252_v47  ;;  %4251 = vst [vmem:[#allocation2 + $0x30] sm:$0xf] %v4250_v15  ;;  %4805 = vrot.lane.b32.xlu1 %v4760_v18, %s6335_s22  ;;  %v4410_v50 = vshll.u32 %v7806_v13, 16  ;;  %v4585_v18 = vshrl.u32 %v7809_v16, 16  ;;  %v4564_v53 = vshrl.u32 %v7792_v37, 16 }
 0x5b4   : > { %4254 = vst [vmem:[#allocation2 + $0x34] sm:$0x1] %v4253_v11  ;;  %4851 = vrot.lane.b32.xlu0 %v4843_v31, %s6324_s27  ;;  %v5655_v4 = vcombine.low %v7852_v7, %v7798_v33  ;;  %v4575_v39 = vrot.slane %v4573_v10, 1  ;;  %v4764_v31 = vshll.u32 %v5703_v27, 16  ;;  %v4571_v16 = vshrl.u32 %v7816_v26, 16 }
 0x5b5   : > { %v4590_v35 = vor.u32 %v4589_v60, %v4585_v18  ;;  %v4569_v49 = vor.u32 %v4568_v32, %v4564_v53  ;;  %v4412_v34 = vrot.slane %v4410_v50, 1  ;;  %v4408_v48 = vshrl.u32 %v7806_v13, 16 }
 0x5b6   : > { %v5701_v3 = vcombine.low %v7775_v54, %v7811_v58  ;;  %v4576_v37 = vor.u32 %v4575_v39, %v4571_v16  ;;  %v4766_v12 = vrot.slane %v4764_v31, 1  ;;  %v4396_v33 = vshll.u32 %v5655_v4, 16 }
 0x5b7   : > { %4437 = vrot.lane.b32.xlu1 %v4392_v28, %s6334_s28  ;;  %v4413_v44 = vor.u32 %v4412_v34, %v4408_v48  ;;  %v7867_v23 = vld [vmem:[#allocation2 + $0x38] sm:$0xf]  ;;  %v4762_v17 = vshrl.u32 %v5703_v27, 16  ;;  %v4282_v54 = vld [vmem:[#allocation2 + $0x3c] sm:$0x1]  ;;  %v4394_v24 = vshrl.u32 %v5655_v4, 16 }
 0x5b8   : > { %4623 = vrot.lane.b32.xlu0 %v4583_v59, %s6323_s14  ;;  %v5698_v26 = vcombine.low %v7867_v23, %v7867_v23  ;;  %v4398_v41 = vrot.slane %v4396_v33, 1  ;;  %v4750_v13 = vshll.u32 %v5701_v3, 16  ;;  %v7873_v51 = vld [vmem:[#allocation2 + $0x28] sm:$0xf]  ;;  %v4290_v58 = vld [vmem:[#allocation2 + $0x38] sm:$0xe] }
 0x5b9   : > { %v4767_v63 = vor.u32 %v4766_v12, %v4762_v17  ;;  %v5696_v61 = vcombine.low %v7873_v51, %v7873_v51  ;;  %v5668_v52 = vcombine.low %v4290_v58, %v4282_v54  ;;  %v4748_v38 = vshrl.u32 %v5701_v3, 16  ;;  %v4297_v29 = vld [vmem:[#allocation2 + $0x38] sm:$0xf]  ;;  %v7881_v57 = vld [vmem:[#allocation2 + $0x40] sm:$0xf] }
 0x5ba   : > { %v4399_v9 = vor.u32 %v4398_v41, %v4394_v24  ;;  %v4752_v30 = vrot.slane %v4750_v13, 1  ;;  %v4280_v36 = vld [vmem:[#allocation2 + $0x2c] sm:$0x1]  ;;  %v4288_v40 = vld [vmem:[#allocation2 + $0x28] sm:$0xe]  ;;  %v5675_v2 = vcombine.low %v4297_v29, %v4297_v29  ;;  %v5676_v22 = vcombine.low %v7881_v57, %v7881_v57  ;;  %v6234_v28 = vld [vmem:[%s8109_s8] sm:$0xff]  }
 0x5bb   : > { %4625 = vrot.lane.b32.xlu1 %v4590_v35, %s6323_s14  ;;  %v4482_v20 = vrot.slane %v5668_v52, 1  ;;  %v5666_v45 = vcombine.low %v4288_v40, %v4280_v36  ;;  %v7887_v62 = vld [vmem:[#allocation2 + $0x28] sm:$0xf]  ;;  %v4305_v6 = vld [vmem:[#allocation2 + $0x3c] sm:$0x1]  ;;  %5879 = vmatprep.subr.bf16.mxu1 %v6234_v28 }
 0x5bc   : > { %4619 = vrot.lane.b32.xlu0 %v4569_v49, %s6323_s14  ;;  %v4753_v21 = vor.u32 %v4752_v30, %v4748_v38  ;;  %v4313_v42 = vld [vmem:[#allocation2 + $0x38] sm:$0xe]  ;;  %v5673_v0 = vcombine.low %v7887_v62, %v7887_v62  ;;  %v7893_v1 = vld [vmem:[#allocation2 + $0x30] sm:$0xf]  ;;  %v4326_v14 = vld [vmem:[#allocation2 + $0x2c] sm:$0x1]  ;;  %5865 = vmatprep.subr.bf16.mxu0 %v6234_v28 }
 0x5bd   : > { %v4480_v8 = vrot.slane %v5666_v45, 1  ;;  %v5691_v47 = vcombine.low %v4313_v42, %v4305_v6  ;;  %v4334_v15 = vld [vmem:[#allocation2 + $0x28] sm:$0xe]  ;;  %v7897_v11 = vld [vmem:[#allocation2 + $0x38] sm:$0xf]  ;;  %v5674_v19 = vcombine.low %v7893_v1, %v7893_v1  ;;  %5882 = vmatpush3.bf16.msra.mxu1 %v6234_v28  ;;  %5866 = vmatpush3.bf16.msra.mxu0 %v6234_v28 }
 0x5be   : > { %v4321_v27 = vld [vmem:[#allocation2 + $0x40] sm:$0xf]  ;;  %v5712_v60 = vcombine.low %v4334_v15, %v4326_v14  ;;  %v4303_v10 = vld [vmem:[#allocation2 + $0x2c] sm:$0x1]  ;;  %v4311_v59 = vld [vmem:[#allocation2 + $0x28] sm:$0xe]  ;;  %v5660_v18 = vcombine.low %v7897_v11, %v4282_v54  ;;  %v5683_v54 = vcombine.low %v4297_v29, %v4305_v6 }
 0x5bf   : > { %4621 = vrot.lane.b32.xlu1 %v4576_v37, %s6323_s14  ;;  %v4665_v55 = vrot.slane %v5691_v47, 1  ;;  %v4306_v32 = vld [vmem:[#allocation2 + $0x44] sm:$0x1]  ;;  %v4314_v50 = vld [vmem:[#allocation2 + $0x40] sm:$0xe]  ;;  %v5699_v4 = vcombine.low %v4321_v27, %v4321_v27  ;;  %v5689_v49 = vcombine.low %v4311_v59, %v4303_v10  ;;  %v6235_v52 = vld [vmem:[%s8109_s8 + $0x8] sm:$0xff]  }
 0x5c0   : > { %4443 = vrot.lane.b32.xlu0 %v4413_v44, %s6334_s28  ;;  %v7907_v53 = vld [vmem:[#allocation2 + $0x3c] sm:$0x1]  ;;  %v4846_v35 = vrot.slane %v5712_v60, 1  ;;  %v5692_v39 = vcombine.low %v4314_v50, %v4306_v32  ;;  %v4304_v34 = vld [vmem:[#allocation2 + $0x34] sm:$0x1]  ;;  %v4431_v48 = vshll.u32 %v5660_v18, 16  ;;  %5867 = vmatprep.subr.bf16.mxu0 %v6235_v52 }
 0x5c1   : > { %v4312_v31 = vld [vmem:[#allocation2 + $0x30] sm:$0xe]  ;;  %v5706_v16 = vcombine.low %v7867_v23, %v7907_v53  ;;  %v7913_v3 = vld [vmem:[#allocation2 + $0x28] sm:$0xf]  ;;  %v4663_v37 = vrot.slane %v5689_v49, 1  ;;  %v4608_v45 = vshll.u32 %v5683_v54, 16  ;;  %5880 = vmatprep.subr.bf16.mxu1 %v6235_v52  ;;  %5868 = vmatpush3.bf16.msra.mxu0 %v6235_v52 }
 0x5c2   : > { %v4666_v44 = vrot.slane %v5692_v39, 1  ;;  %v5690_v12 = vcombine.low %v4312_v31, %v4304_v34  ;;  %v7915_v33 = vld [vmem:[#allocation2 + $0x30] sm:$0xf]  ;;  %v4281_v17 = vld [vmem:[#allocation2 + $0x34] sm:$0x1]  ;;  %v4433_v41 = vrot.slane %v4431_v48, 1  ;;  %5883 = vmatpush3.bf16.msra.mxu1 %v6235_v52 }
 0x5c3   : > { %4717 = vrot.lane.b32.xlu1 %v5698_v26, %s6332_s21  ;;  %v5658_v26 = vcombine.low %v7913_v3, %v4280_v36  ;;  %v4785_v13 = vshll.u32 %v5706_v16, 16  ;;  %v5697_v23 = vcombine.low %v7915_v33, %v7915_v33  ;;  %v4335_v30 = vld [vmem:[#allocation2 + $0x30] sm:$0xe]  ;;  %v7927_v38 = vld [vmem:[#allocation2 + $0x44] sm:$0x1]  ;;  %v4783_v6 = vshrl.u32 %v5706_v16, 16 }
 0x5c4   : > { %4807 = vrot.lane.b32.xlu0 %v4767_v63, %s6335_s22  ;;  %v4289_v63 = vld [vmem:[#allocation2 + $0x30] sm:$0xe]  ;;  %v4664_v58 = vrot.slane %v5690_v12, 1  ;;  %v5707_v42 = vcombine.low %v4321_v27, %v7927_v38  ;;  %v4606_v60 = vshrl.u32 %v5683_v54, 16 }
 0x5c5   : > { %v5667_v24 = vcombine.low %v4289_v63, %v4281_v17  ;;  %v4787_v36 = vrot.slane %v4785_v13, 1  ;;  %v7938_v47 = vld [vmem:[#allocation2 + $0x30] sm:$0xf] }
 0x5c6   : > { %v5659_v28 = vcombine.low %v7938_v47, %v4281_v17  ;;  %v4790_v17 = vshrl.u32 %v5707_v42, 16 }
 0x5c7   : > { %4713 = vrot.lane.b32.xlu1 %v5696_v61, %s6332_s21  ;;  %v4327_v61 = vld [vmem:[#allocation2 + $0x34] sm:$0x1]  ;;  %v4481_v40 = vrot.slane %v5667_v24, 1 }
 0x5c8   : > { %4439 = vrot.lane.b32.xlu0 %v4399_v9, %s6334_s28  ;;  %v4429_v9 = vshrl.u32 %v5660_v18, 16  ;;  %v5705_v31 = vcombine.low %v7915_v33, %v4327_v61  ;;  %v4336_v33 = vld [vmem:[#allocation2 + $0x38] sm:$0xe] }
 0x5ca   : > { %v4434_v29 = vor.u32 %v4433_v41, %v4429_v9  ;;  %v7949_v41 = vpop.permute.xlu1 %4721  ;;  %v4422_v9 = vshrl.u32 %v5659_v28, 16 }
 0x5cb   : > { %4497 = vrot.lane.b32.xlu1 %v4482_v20, %s6330_s29  ;;  %v5681_v20 = vcombine.low %v7887_v62, %v4303_v10  ;;  %v4788_v62 = vor.u32 %v4787_v36, %v4783_v6  ;;  %v5682_v10 = vcombine.low %v7893_v1, %v4304_v34 }
 0x5cc   : > { %4803 = vrot.lane.b32.xlu0 %v4753_v21, %s6335_s22  ;;  %v5704_v21 = vcombine.low %v7873_v51, %v4326_v14  ;;  %v5684_v51 = vcombine.low %v7881_v57, %v4306_v32  ;;  %v4415_v57 = vshrl.u32 %v5658_v26, 16 }
 0x5cd   : > { %v4592_v39 = vshrl.u32 %v5681_v20, 16  ;;  %v4599_v24 = vshrl.u32 %v5682_v10, 16 }
 0x5ce   : > { %v4615_v32 = vshll.u32 %v5684_v51, 16  ;;  %v4769_v49 = vshrl.u32 %v5704_v21, 16  ;;  %v4613_v12 = vshrl.u32 %v5684_v51, 16  ;;  %v7958_v36 = vpop.permute.xlu1 %4817 }
 0x5cf   : > { %4537 = vrot.lane.b32.xlu1 %v5676_v22, %s6336_s13  ;;  %v4417_v22 = vshll.u32 %v5658_v26, 16 }
 0x5d0   : > { %4535 = vrot.lane.b32.xlu0 %v5675_v2, %s6336_s13  ;;  %v5713_v2 = vcombine.low %v4335_v30, %v4327_v61  ;;  %v4617_v1 = vrot.slane %v4615_v32, 1  ;;  %v4338_v61 = vld [vmem:[#allocation2 + $0x48] sm:$0xe] }
 0x5d1   : > { %v4419_v15 = vrot.slane %v4417_v22, 1 }
 0x5d2   : > { %v4847_v14 = vrot.slane %v5713_v2, 1  ;;  %v4618_v63 = vor.u32 %v4617_v1, %v4613_v12  ;;  %v5716_v2 = vcombine.low %v4338_v61, %v7710_v43 }
 0x5d3   : > { %4493 = vrot.lane.b32.xlu1 %v4480_v8, %s6330_s29  ;;  %v6236_v8 = vld [vmem:[%s8109_s8 + $0x10] ss:$0 sps:$4 sm:$0x33]   ;;  %v4420_v50 = vor.u32 %v4419_v15, %v4415_v57 }
 0x5d4   : > { %4531 = vrot.lane.b32.xlu0 %v5673_v0, %s6336_s13  ;;  %v4771_v0 = vshll.u32 %v5704_v21, 16  ;;  %5886 = vmatprep.subr.msk.bf16.mxu0 %vm5060_vm1, %v6236_v8  ;;  %v5062_v27 = vsel %vm5060_vm1, %v6236_v8, 0  ;;  %v5714_v21 = vcombine.low %v4336_v33, %v7907_v53  ;;  %v4850_v53 = vrot.slane %v5716_v2, 1 }
 0x5d5   : > { %5887 = vmatprep.subr.msk.bf16.mxu1 %vm5060_vm1, %v6236_v8  ;;  %5870 = vmatpush3.bf16.msra.mxu0 %v5062_v27 }
 0x5d6   : > { %v4773_v59 = vrot.slane %v4771_v0, 1  ;;  %5884 = vmatpush3.bf16.msra.mxu1 %v5062_v27 }
 0x5d7   : > { %4533 = vrot.lane.b32.xlu1 %v5674_v19, %s6336_s13  ;;  %v4594_v19 = vshll.u32 %v5681_v20, 16 }
 0x5d8   : > { %4679 = vrot.lane.b32.xlu0 %v4665_v55, %s6337_s19  ;;  %v4610_v55 = vrot.slane %v4608_v45, 1  ;;  %v4774_v16 = vor.u32 %v4773_v59, %v4769_v49  ;;  %v4848_v45 = vrot.slane %v5714_v21, 1 }
 0x5da   : > { %v4611_v18 = vor.u32 %v4610_v55, %v4606_v60 }
 0x5db   : > { %4857 = vrot.lane.b32.xlu1 %v4846_v35, %s6324_s27  ;;  %v4792_v35 = vshll.u32 %v5707_v42, 16 }
 0x5dc   : > { %4719 = vrot.lane.b32.xlu0 %v5699_v4, %s6332_s21  ;;  %v4596_v4 = vrot.slane %v4594_v19, 1 }
 0x5dd   : > { %v4794_v48 = vrot.slane %v4792_v35, 1 }
 0x5de   : > { %v4597_v34 = vor.u32 %v4596_v4, %v4592_v39 }
 0x5df   : > { %4681 = vrot.lane.b32.xlu1 %v4666_v44, %s6337_s19  ;;  %v4424_v44 = vshll.u32 %v5659_v28, 16  ;;  %v4795_v26 = vor.u32 %v4794_v48, %v4790_v17 }
 0x5e0   : > { %4675 = vrot.lane.b32.xlu0 %v4663_v37, %s6337_s19  ;;  %v4601_v37 = vshll.u32 %v5682_v10, 16 }
 0x5e1   : > { %v4426_v54 = vrot.slane %v4424_v44, 1 }
 0x5e2   : > { %v4603_v13 = vrot.slane %v4601_v37, 1 }
 0x5e3   : > { %4677 = vrot.lane.b32.xlu1 %v4664_v58, %s6337_s19  ;;  %v7951_v58 = vpop.permute.xlu0 %4435  ;;  %v4427_v52 = vor.u32 %v4426_v54, %v4422_v9 }
 0x5e4   : > { %4715 = vrot.lane.b32.xlu0 %v5697_v23, %s6332_s21  ;;  %v4778_v23 = vshll.u32 %v5705_v31, 16  ;;  %v4604_v30 = vor.u32 %v4603_v13, %v4599_v24  ;;  %s6261_s21 = sshll.u32 %s6338_s26, 4  ;;  %s6262_s21 = int_to_ptr.vmem [resolvable:$false] %s6261_s21 }
 0x5e5   : > { %s6263_s13 = scalar_lea.vmem %s6262_s21, 256 }
 0x5e6   : > { %v4780_v20 = vrot.slane %v4778_v23, 1 }
 0x5e7   : > { %4449 = vrot.lane.b32.xlu1 %v4434_v29, %s6334_s28  ;;  %v4337_v29 = vld [vmem:[#allocation2 + $0x40] sm:$0xe]  ;;  %v4484_v22 = vpop.permute.xlu0 %4483 }
 0x5e8   : > { %4495 = vrot.lane.b32.xlu0 %v4481_v40, %s6330_s29  ;;  %v4776_v40 = vshrl.u32 %v5705_v31, 16  ;;  %v5715_v42 = vcombine.low %v4337_v29, %v7927_v38  ;;  %s5730_s29 = sshll.u32 %s6418_s9, 7 }
 0x5e9   : > { %s8058_s12 = scalar_lea.hbm %s8111_s10, %s5730_s29 }
 0x5ea   : > { %v4781_v6 = vor.u32 %v4780_v20, %v4776_v40  ;;  %v4849_v0 = vrot.slane %v5715_v42, 1 }
 0x5eb   : > { %4813 = vrot.lane.b32.xlu1 %v4788_v62, %s6335_s22 }
 0x5ec   : > { %4859 = vrot.lane.b32.xlu0 %v4847_v14, %s6324_s27 }
 0x5ef   : > { %4445 = vrot.lane.b32.xlu1 %v4420_v50, %s6334_s28 }
 0x5f0   : > { %4631 = vrot.lane.b32.xlu0 %v4611_v18, %s6323_s14 }
 0x5f3   : > { %4809 = vrot.lane.b32.xlu1 %v4774_v16, %s6335_s22 }
 0x5f4   : > { %4627 = vrot.lane.b32.xlu0 %v4597_v34, %s6323_s14 }
 0x5f7   : > { %4633 = vrot.lane.b32.xlu1 %v4618_v63, %s6323_s14 }
 0x5f8   : > { %4815 = vrot.lane.b32.xlu0 %v4795_v26, %s6335_s22  ;;  %v4870_v26 = vsel %vm4867_vm2, %v7707_v46, %v7951_v58 }
 0x5fb   : > { %4629 = vrot.lane.b32.xlu1 %v4604_v30, %s6323_s14  ;;  %s363_s14 = sand.u32 1, %s6311_s16  }
 0x5fc   : > { %4447 = vrot.lane.b32.xlu0 %v4427_v52, %s6334_s28  ;;  %s5259_s9 = scalar_lea.sflag [#allocation5], %s363_s14 }
 0x5ff   : > { %4861 = vrot.lane.b32.xlu1 %v4848_v45, %s6324_s27 }
 0x600   : > { %4811 = vrot.lane.b32.xlu0 %v4781_v6, %s6335_s22 }
 0x601   : > { %v4710_v62 = vpop.permute.xlu1 %4709 }
 0x602   : > { %v4528_v51 = vpop.permute.xlu0 %4527 }
 0x603   : > { %4865 = vrot.lane.b32.xlu1 %v4850_v53, %s6324_s27 }
 0x604   : > { %4863 = vrot.lane.b32.xlu0 %v4849_v0, %s6324_s27  ;;  %s5347_s27 = sshll.u32 %s363_s14, 3 }
 0x605   : > { %v4490_v14 = vpop.permute.xlu1 %4489  ;;  %s365_s28 = scalar_lea.vmem [#allocation4], %s5347_s27 }
 0x606   : > { %v4524_v8 = vpop.permute.xlu0 %4523  ;;  %s5272_s22 = sshll.u32 %s365_s28, 4  ;;  %s8060_s22 = int_to_ptr.vmem [resolvable:$true] %s5272_s22 }
 0x607   : > { %s6257_s11 = scalar_lea.vmem %s8060_s22, 128  ;;  %p6264_p0 = scmp.lt.s32.totalorder %s8060_s22, %s6262_s21 }
 0x608   : > { %p6258_p11 = scmp.ne.s32.totalorder %s8060_s22, %s6257_s11  ;;  %p6265_p1 = scmp.lt.s32.totalorder %s6263_s13, %s6257_s11 }
 0x609   : > { %v4530_v15 = vpop.permute.xlu1 %4529 }
 0x60a   : > { %v4672_v43 = vpop.permute.xlu0 %4671  ;;  %p6259_p12 = pnand %p6258_p11, %p6435_p5  ;;  %p6266_p2 = por %p6265_p1, %p6264_p0 }
 0x60c   : > { %p6260_p13 = pneg %p6259_p12 }
 0x60d   : > { %v4854_v19 = vpop.permute.xlu1 %4853 }
 0x60e   : > { %v4712_v55 = vpop.permute.xlu0 %4711  ;;  %p6267_p3 = pnand %p6266_p2, %p6260_p13 }
 0x611   : > { %v4486_v38 = vpop.permute.xlu1 %4485 }
 0x612   : > { %v4668_v27 = vpop.permute.xlu0 %4667 }
 0x615   : > { %v4526_v60 = vpop.permute.xlu1 %4525 }
 0x616   : > { %v4708_v57 = vpop.permute.xlu0 %4707 }
 0x619   : > { %v4674_v28 = vpop.permute.xlu1 %4673 }
 0x61a   : > { %v7966_v10 = vpop.permute.xlu0 %4491 }
 0x61d   : > { %v4670_v32 = vpop.permute.xlu1 %4669 }
 0x61e   : > { %v4856_v59 = vpop.permute.xlu0 %4855 }
 0x621   : > { %v4442_v18 = vpop.permute.xlu1 %4441 }
 0x622   : > { %v4488_v50 = vpop.permute.xlu0 %4487  ;;  %v4879_v4 = vsel %vm4867_vm2, %v7764_v56, %v4442_v18 }
 0x623   : > { %v4899_v35 = vsel %vm3803_vm12, %v4879_v4, %v4490_v14 }
 0x624   : > { %v4916_v49 = vsel %vm4908_vm9, %v4899_v35, %v4530_v15 }
 0x625   : > { %v4806_v31 = vpop.permute.xlu1 %4805 }
 0x626   : > { %v4852_v39 = vpop.permute.xlu0 %4851 }
 0x629   : > { %v4438_v1 = vpop.permute.xlu1 %4437 }
 0x62a   : > { %v4624_v16 = vpop.permute.xlu0 %4623  ;;  %v4873_v34 = vsel %vm4867_vm2, %v7778_v25, %v4438_v1  ;;  %v4893_v25 = vsel %vm3803_vm12, %v4870_v26, %v4484_v22 }
 0x62b   : > { %v4895_v12 = vsel %vm3803_vm12, %v4873_v34, %v4486_v38  ;;  %v4910_v24 = vsel %vm4908_vm9, %v4893_v25, %v4524_v8 }
 0x62c   : > { %v4912_v13 = vsel %vm4908_vm9, %v4895_v12, %v4526_v60 }
 0x62d   : > { %v4626_v37 = vpop.permute.xlu1 %4625 }
 0x62e   : > { %v4620_v48 = vpop.permute.xlu0 %4619  ;;  %v4932_v44 = vsel %vm2708_vm3, %v4916_v49, %v4626_v37 }
 0x62f   : > { %v4949_v56 = vsel %vm4941_vm10, %v4932_v44, %v4674_v28  ;;  %v4926_v61 = vsel %vm2708_vm3, %v4910_v24, %v4620_v48 }
 0x630   : > { %v4943_v46 = vsel %vm4941_vm10, %v4926_v61, %v4668_v27 }
 0x631   : > { %v4622_v63 = vpop.permute.xlu1 %4621  ;;  %v4959_v22 = vsel %vm3844_vm13, %v4943_v46, %v4708_v57 }
 0x632   : > { %v4444_v17 = vpop.permute.xlu0 %4443  ;;  %v4928_v54 = vsel %vm2708_vm3, %v4912_v13, %v4622_v63 }
 0x633   : > { %v4945_v9 = vsel %vm4941_vm10, %v4928_v54, %v4670_v32  ;;  %v4882_v37 = vsel %vm4867_vm2, %v7788_v5, %v4444_v17 }
 0x634   : > { %v4961_v30 = vsel %vm3844_vm13, %v4945_v9, %v4710_v62 }
 0x635   : > { %v7983_v33 = vpop.permute.xlu1 %4717  ;;  %v4978_v40 = vsel %vm4974_vm11, %v4961_v30, %v4806_v31 }
 0x636   : > { %v4808_v23 = vpop.permute.xlu0 %4807 }
 0x639   : > { %v4714_v21 = vpop.permute.xlu1 %4713 }
 0x63a   : > { %v4440_v52 = vpop.permute.xlu0 %4439 }
 0x63b   : > { %v4876_v58 = vsel %vm4867_vm2, %v7852_v7, %v4440_v52  ;;  %v4994_v7 = vsel %vm1481_vm14, %v4978_v40, %v4854_v19 }
 0x63c   : > { %v4897_v20 = vsel %vm3803_vm12, %v4876_v58, %v4488_v50 }
 0x63d   : > { %v4914_v29 = vsel %vm4908_vm9, %v4897_v20, %v4528_v51  ;;  %v4498_v6 = vpop.permute.xlu1 %4497 }
 0x63e   : > { %v4930_v2 = vsel %vm2708_vm3, %v4914_v29, %v4624_v16  ;;  %v4804_v45 = vpop.permute.xlu0 %4803 }
 0x63f   : > { %v4947_v42 = vsel %vm4941_vm10, %v4930_v2, %v4672_v43  ;;  %v4976_v53 = vsel %vm4974_vm11, %v4959_v22, %v4804_v45 }
 0x640   : > { %v4992_v62 = vsel %vm1481_vm14, %v4976_v53, %v4852_v39  ;;  %v4963_v0 = vsel %vm3844_vm13, %v4947_v42, %v4712_v55 }
 0x641   : > { %v5717_v51 = vcombine.low %v4992_v62, %v4994_v7  ;;  %v4980_v8 = vsel %vm4974_vm11, %v4963_v0, %v4808_v23  ;;  %v4538_v15 = vpop.permute.xlu1 %4537 }
 0x642   : > { %v4536_v14 = vpop.permute.xlu0 %4535  ;;  %v4996_v27 = vsel %vm1481_vm14, %v4980_v8, %v4856_v59  ;;  %v4965_v59 = vsel %vm3844_vm13, %v4949_v56, %v4714_v21  ;;  %v4901_v56 = vsel %vm3803_vm12, %v4882_v37, %v7966_v10 }
 0x643   : > { %5871 = vmatprep.mubr.msk.bf16.mxu0 %vm5047_vm0, %v5717_v51 }
 0x645   : > { %v4494_v43 = vpop.permute.xlu1 %4493 }
 0x646   : > { %v4532_v38 = vpop.permute.xlu0 %4531 }
 0x647   : > { %v4918_v25 = vsel %vm4908_vm9, %v4901_v56, %v4532_v38 }
 0x649   : > { %v4534_v60 = vpop.permute.xlu1 %4533 }
 0x64a   : > { %v4680_v57 = vpop.permute.xlu0 %4679 }
 0x64d   : > { %v4858_v32 = vpop.permute.xlu1 %4857 }
 0x64e   : > { %v4720_v28 = vpop.permute.xlu0 %4719 }
 0x651   : > { %v4682_v19 = vpop.permute.xlu1 %4681 }
 0x652   : > { %v4676_v50 = vpop.permute.xlu0 %4675 }
 0x655   : > { %v4678_v4 = vpop.permute.xlu1 %4677 }
 0x656   : > { %v4716_v18 = vpop.permute.xlu0 %4715 }
 0x659   : > { %v4450_v35 = vpop.permute.xlu1 %4449 }
 0x65a   : > { %v4496_v55 = vpop.permute.xlu0 %4495  ;;  %v4891_v1 = vsel %vm4867_vm2, %v7897_v11, %v4450_v35 }
 0x65b   : > { %v4907_v26 = vsel %vm3803_vm12, %v4891_v1, %v4498_v6 }
 0x65d   : > { %v4814_v39 = vpop.permute.xlu1 %4813 }
 0x65e   : > { %v4860_v49 = vpop.permute.xlu0 %4859 }
 0x661   : > { %v4446_v16 = vpop.permute.xlu1 %4445 }
 0x662   : > { %v4632_v31 = vpop.permute.xlu0 %4631  ;;  %v4885_v12 = vsel %vm4867_vm2, %v7913_v3, %v4446_v16  ;;  %v4924_v3 = vsel %vm4908_vm9, %v4907_v26, %v4538_v15 }
 0x663   : > { %v4903_v23 = vsel %vm3803_vm12, %v4885_v12, %v4494_v43 }
 0x664   : > { %v4920_v9 = vsel %vm4908_vm9, %v4903_v23, %v4534_v60 }
 0x665   : > { %v4810_v48 = vpop.permute.xlu1 %4809 }
 0x666   : > { %v4628_v34 = vpop.permute.xlu0 %4627  ;;  %v4982_v44 = vsel %vm4974_vm11, %v4965_v59, %v4810_v48 }
 0x667   : > { %v4998_v63 = vsel %vm1481_vm14, %v4982_v44, %v4858_v32  ;;  %v4934_v5 = vsel %vm2708_vm3, %v4918_v25, %v4628_v34 }
 0x668   : > { %v5718_v13 = vcombine.low %v4996_v27, %v4998_v63  ;;  %v4951_v10 = vsel %vm4941_vm10, %v4934_v5, %v4676_v50 }
 0x669   : > { %v4634_v11 = vpop.permute.xlu1 %4633  ;;  %v4967_v2 = vsel %vm3844_vm13, %v4951_v10, %v4716_v18 }
 0x66a   : > { %v4816_v54 = vpop.permute.xlu0 %4815  ;;  %5872 = vmatmul.mubr.msk.bf16.vlgmr.msra.gmra.mrb[24].mxu0 %vm5047_vm0, %v5718_v13  ;;  %v4940_v17 = vsel %vm2708_vm3, %v4924_v3, %v4634_v11 }
 0x66b   : > { %v4957_v21 = vsel %vm4941_vm10, %v4940_v17, %v4682_v19 }
 0x66c   : > { %v4973_v62 = vsel %vm3844_vm13, %v4957_v21, %v7949_v41  ;;  %v5728_v41 = vld [vmem:[#allocation3] ss:$0 sm:$0xff] }
 0x66d   : > { %v4630_v61 = vpop.permute.xlu1 %4629 }
 0x66e   : > { %v4448_v24 = vpop.permute.xlu0 %4447  ;;  %v4936_v52 = vsel %vm2708_vm3, %v4920_v9, %v4630_v61 }
 0x66f   : > { %v4888_v30 = vsel %vm4867_vm2, %v7938_v47, %v4448_v24  ;;  %v4953_v58 = vsel %vm4941_vm10, %v4936_v52, %v4678_v4 }
 0x670   : > { %v4905_v46 = vsel %vm3803_vm12, %v4888_v30, %v4496_v55  ;;  %v4969_v29 = vsel %vm3844_vm13, %v4953_v58, %v7983_v33 }
 0x671   : > { %v4922_v20 = vsel %vm4908_vm9, %v4905_v46, %v4536_v14  ;;  %v4986_v47 = vsel %vm4974_vm11, %v4969_v29, %v4814_v39  ;;  %v4862_v45 = vpop.permute.xlu1 %4861  ;;  %v4990_v14 = vsel %vm4974_vm11, %v4973_v62, %v7958_v36 }
 0x672   : > { %v4938_v40 = vsel %vm2708_vm3, %v4922_v20, %v4632_v31  ;;  %v4812_v22 = vpop.permute.xlu0 %4811  ;;  %v5002_v42 = vsel %vm1481_vm14, %v4986_v47, %v4862_v45  ;;  %vm5244_vm3 = vcmask 1042434  }
 0x673   : > { %v4984_v6 = vsel %vm4974_vm11, %v4967_v2, %v4812_v22  ;;  %v4955_v53 = vsel %vm4941_vm10, %v4938_v40, %v4680_v57 }
 0x674   : > { %v5000_v7 = vsel %vm1481_vm14, %v4984_v6, %v4860_v49  ;;  %v4971_v33 = vsel %vm3844_vm13, %v4955_v53, %v4720_v28  ;;  %v8150_v6 = vlaneseq  ;;  %vm5246_vm13 = vcmask 1043459  }
 0x675   : > { %v5719_v0 = vcombine.low %v5000_v7, %v5002_v42  ;;  %v4988_v51 = vsel %vm4974_vm11, %v4971_v33, %v4816_v54  ;;  %v4866_v15 = vpop.permute.xlu1 %4865  ;;  %v8151_v7 = vld [vmem:[#allocation7_spill] sm:$0xff] }
 0x676   : > { %v4864_v8 = vpop.permute.xlu0 %4863  ;;  %v5006_v38 = vsel %vm1481_vm14, %v4990_v14, %v4866_v15  ;;  %v5209_v42 = vand.u32 127, %v8150_v6 }
 0x677   : > { %v5004_v27 = vsel %vm1481_vm14, %v4988_v51, %v4864_v8  ;;  %5875 = vmatprep.mubr.msk.bf16.mxu1 %vm5047_vm0, %v5719_v0  ;;  %vm5242_vm14 = vcmask 1041409  }
 0x678   : > { %v5720_v43 = vcombine.low %v5004_v27, %v5006_v38  ;;  %v5212_v33 = vsub.s32 %v5209_v42, %v8151_v7 }
 0x67a   : > { %5876 = vmatmul.mubr.msk.bf16.vlgmr.msra.gmra.mrb[24].mxu1 %vm5047_vm0, %v5720_v43 }
 0x73d   : > { %v5873_v57 = vpop.f32.mrb[24].mxu0 }
 0x73e   : > { %v5138_v60 = vadd.f32 %v5873_v57, %v5728_v41  ;;  %v5098_v28 = vpop.f32.mrb[25].mxu0 }
 0x73f   : > { %v5136_v32 = vadd.f32 %v5728_v41, %v5098_v28  ;;  %v5874_v50 = vpop.f32.mrb[26].mxu0 }
 0x740   : > { %v5146_v19 = vmul.f32 0.5, %v5138_v60  ;;  %v5139_v18 = vadd.f32 %v5874_v50, %v5728_v41  ;;  %v5101_v4 = vpop.f32.mrb[27].mxu0 }
 0x741   : > { %v5144_v36 = vmul.f32 0.5, %v5136_v32  ;;  %v5137_v55 = vadd.f32 %v5728_v41, %v5101_v4 }
 0x742   : > { %6237 = vtanh.f32 %v5146_v19  ;;  %v5147_v35 = vmul.f32 0.5, %v5139_v18 }
 0x743   : > { %6239 = vtanh.f32 %v5144_v36  ;;  %v5145_v49 = vmul.f32 0.5, %v5137_v55 }
 0x744   : > { %6241 = vtanh.f32 %v5147_v35 }
 0x745   : > { %6243 = vtanh.f32 %v5145_v49 }
 0x74c   : > { %v6238_v39 = vpop.eup %6237 }
 0x74d   : > { %v5877_v31 = vpop.f32.mrb[24].mxu1  ;;  %v6240_v16 = vpop.eup %6239  ;;  %v5162_v59 = vadd.f32 1.0, %v6238_v39 }
 0x74e   : > { %v5142_v1 = vadd.f32 %v5877_v31, %v5728_v41  ;;  %v5114_v34 = vpop.f32.mrb[25].mxu1  ;;  %v6242_v48 = vpop.eup %6241  ;;  %v5160_v37 = vadd.f32 1.0, %v6240_v16 }
 0x74f   : > { %v5140_v44 = vadd.f32 %v5728_v41, %v5114_v34  ;;  %v5878_v12 = vpop.f32.mrb[26].mxu1  ;;  %v6244_v63 = vpop.eup %6243  ;;  %v5170_v26 = vmul.f32 0.5, %v5162_v59  ;;  %v5163_v13 = vadd.f32 1.0, %v6242_v48 }
 0x750   : > { %v5150_v56 = vmul.f32 0.5, %v5142_v1  ;;  %v5143_v54 = vadd.f32 %v5878_v12, %v5728_v41  ;;  %v5117_v11 = vpop.f32.mrb[27].mxu1  ;;  %v5168_v25 = vmul.f32 0.5, %v5160_v37  ;;  %v5161_v23 = vadd.f32 1.0, %v6244_v63 }
 0x751   : > { %v5148_v5 = vmul.f32 0.5, %v5140_v44  ;;  %v5141_v3 = vadd.f32 %v5728_v41, %v5117_v11  ;;  %5191 = vperm.xlu1 %5944, %v5170_v26   ;;  %v5171_v61 = vmul.f32 0.5, %v5163_v13 }
 0x752   : > { %6245 = vtanh.f32 %v5150_v56  ;;  %v5151_v17 = vmul.f32 0.5, %v5143_v54  ;;  %v5169_v24 = vmul.f32 0.5, %v5161_v23  ;;  %5185 = vperm.xlu0 %5945, %v5168_v25  }
 0x753   : > { %6247 = vtanh.f32 %v5148_v5  ;;  %v5149_v9 = vmul.f32 0.5, %v5141_v3 }
 0x754   : > { %6249 = vtanh.f32 %v5151_v17 }
 0x755   : > { %6251 = vtanh.f32 %v5149_v9  ;;  %5188 = vperm.xlu1 %5944, %v5169_v24  }
 0x756   : > { %5194 = vperm.xlu0 %5945, %v5171_v61  }
 0x75c   : > { %v6246_v10 = vpop.eup %6245 }
 0x75d   : > { %v6248_v30 = vpop.eup %6247  ;;  %v5166_v58 = vadd.f32 1.0, %v6246_v10 }
 0x75e   : > { %v6250_v52 = vpop.eup %6249  ;;  %v5164_v21 = vadd.f32 1.0, %v6248_v30 }
 0x75f   : > { %v6252_v46 = vpop.eup %6251  ;;  %v5167_v40 = vadd.f32 1.0, %v6250_v52  ;;  %v5174_v22 = vmul.f32 0.5, %v5166_v58 }
 0x760   : > { %v5172_v20 = vmul.f32 0.5, %v5164_v21  ;;  %v5165_v29 = vadd.f32 1.0, %v6252_v46 }
 0x761   : > { %v5175_v47 = vmul.f32 0.5, %v5167_v40 }
 0x762   : > { %v5173_v2 = vmul.f32 0.5, %v5165_v29  ;;  %5197 = vperm.xlu1 %5944, %v5172_v20  }
 0x764   : > { %5200 = vperm.xlu0 %5945, %v5173_v2  }
 0x766   : > { %5203 = vperm.xlu1 %5944, %v5174_v22  }
 0x768   : > { %5206 = vperm.xlu0 %5945, %v5175_v47  }
 0x7d0   : > { %v5192_v45 = vpop.permute.xlu1 %5191 }
 0x7d1   : > { %v5186_v53 = vpop.permute.xlu0 %5185  ;;  %v5221_v15 = vrot.slane %v5192_v45, %v5212_v33 }
 0x7d2   : > { %v5213_v51 = vrot.slane %v5186_v53, %v5212_v33 }
 0x7d4   : > { %v5189_v62 = vpop.permute.xlu1 %5188 }
 0x7d5   : > { %v5217_v0 = vrot.slane %v5189_v62, %v5212_v33  ;;  %v5195_v8 = vpop.permute.xlu0 %5194 }
 0x7d6   : > { %v5225_v27 = vrot.slane %v5195_v8, %v5212_v33 }
 0x7d7   : > { %v5243_v14 = vsel %vm5242_vm14, %v5217_v0, %v5213_v51 }
 0x7d8   : > { %v5245_v38 = vsel %vm5244_vm3, %v5221_v15, %v5243_v14 }
 0x7d9   : > { %v5247_v57 = vsel %vm5246_vm13, %v5225_v27, %v5245_v38 }
 0x7e1   : > { %v5198_v43 = vpop.permute.xlu1 %5197 }
 0x7e2   : > { %v5229_v41 = vrot.slane %v5198_v43, %v5212_v33 }
 0x7e3   : > { %v5201_v60 = vpop.permute.xlu0 %5200 }
 0x7e4   : > { %v5249_v28 = vsel %vm5248_vm5, %v5229_v41, %v5247_v57  ;;  %v5233_v32 = vrot.slane %v5201_v60, %v5212_v33 }
 0x7e5   : > { %v5204_v50 = vpop.permute.xlu1 %5203 }
 0x7e6   : > { %v5251_v19 = vsel %vm5250_vm6, %v5233_v32, %v5249_v28  ;;  %v5237_v18 = vrot.slane %v5204_v50, %v5212_v33 }
 0x7e7   : > { %v5207_v4 = vpop.permute.xlu0 %5206 }
 0x7e8   : > { %v5253_v36 = vsel %vm5252_vm15, %v5237_v18, %v5251_v19  ;;  %v5241_v55 = vrot.slane %v5207_v4, %v5212_v33 }
 0x7ea   : > { %v5255_v35 = vsel %vm5254_vm4, %v5241_v55, %v5253_v36 }
 0x7eb   : > { %5257 = vst.msk [vmem:[%s365_s28] sm:$0xff] %vm3803_vm12, %v5255_v35 }
 0x7ec   : > { %6270 = shalt.err (!%p6267_p3)
}
 0x7ed   : > { %s6271_s14 = scalar_lea.hbm %s8058_s12, 128  ;;  %s6275_s28 = scalar_lea.hbm %s8111_s10, 256 }
 0x7ee   : > { %p6272_p4 = scmp.ne.s32.totalorder %s8058_s12, %s6271_s14  ;;  %p6276_p9 = scmp.lt.u32.totalorder %s8058_s12, %s8111_s10 }
 0x7ef   : > { %p6277_p10 = scmp.lt.u32.totalorder %s6275_s28, %s6271_s14  ;;  %p6279_p12 = scmp.lt.u32.totalorder %s6271_s14, %s8058_s12 }
 0x7f0   : > { %p6273_p7 = pnand %p6272_p4, %p6435_p5 }
 0x7f1   : > { %p6278_p11 = por %p6277_p10, %p6276_p9 }
 0x7f2   : > { %p6274_p8 = pneg %p6273_p7 }
 0x7f3   : > { %p6280_p13 = por %p6279_p12, %p6278_p11 }
 0x7f5   : > { %p6281_p0 = pnand %p6280_p13, %p6274_p8 }
 0x7f7   : > { %6284 = shalt.err (!%p6281_p0)
}
 0x7f8   : > { %5888 = dma.vmem_to_hbm [thread:$0]  (%p6435_p5), %s8060_s22, 128, %s8058_s12, %s5259_s9  }
 0x7f9 PF: > { %p5894_p1 = scmp.ge.s32.totalorder %s6319_s18, 2  ;;  %s5284_s11 = sand.u32 1, %s6307_s15  }
 0x7fa   : > { %s5285_s26 = scalar_lea.sflag [#allocation5], %s5284_s11 }
 0x7fb   : > { %p5891_p2 = pnand %p5894_p1, %p6439_p6 }
 0x7fd   : > { %6302 = dma.done.wait (!%p5891_p2), %s5285_s26, 128  }
 0x7fe   : > { %6304 = vsyncadd (!%p5891_p2), %s5285_s26, 4294967168  ;;  %p22_p3 = scmp.ge.s32.totalorder %s6422_s20, 4   ;;  %s8152_s15 = smov %s6311_s16 }
 0x7ff   : > { %s8153_s16 = smov %s6315_s17  ;;  %s8154_s17 = smov %s6433_s23 }
 0x800   : > { %s8155_s18 = smov %s6422_s20  ;;  %24 = sbr.rel (!%p22_p3) target bundleno = 6 (0x6), region = 101 }
 0x807   :  { %5290 = vsyncpa [#allocation5], 1 }
 0x808   :  { %5292 = vsyncpa [#allocation5 + $0x1], 1 }

</bundles_post_ra>
